<compile_context>
chip_gen: v5e
topology: v5e:2x2
jax: 0.10.0
libtpu: 0.0.40
codegen_flags: <defaults>
</compile_context>

<pallas_src>
import functools
import math

import jax
import jax.numpy as jnp
from jax.experimental import pallas as pl
from jax.experimental.pallas import tpu as pltpu


# ----------------------------- configuration ---------------------------------
class CFG:
    in_ch = 3
    img = 32
    patch = 8
    grid = img // patch                  # 4
    seq_enc = grid * grid                # 16 encoder tokens
    backbone_ch = 48                     # stand-in for ResNet-50's 2048
    d_model = 32                         # stand-in for 256
    n_heads = 4
    head_dim = d_model // n_heads        # 8
    ffn = 64
    num_queries = 8
    num_classes = 3                      # class head emits num_classes + 1 (no-object)
    num_enc_layers = 1
    num_dec_layers = 1
    threshold = 0.9


def _round_up(x, m):
    return (x + m - 1) // m * m


# --------------------------- parameter slab packing ---------------------------
class _SlabPacker:
    """Packs 2-D parameter tensors into one lane-dense (rows, 128) slab.

    Each entry starts at an 8-row-aligned offset and at lane 0, so in-kernel static
    slices are (8,128)-tile aligned.  Offsets/shapes are recorded for the kernel.
    """

    def __init__(self, dtype):
        self.dtype = dtype
        self._arrs = []
        self.index = {}
        self._rows = 0

    def add(self, name, arr):
        arr = jnp.asarray(arr, jnp.float32)
        r, c = arr.shape
        assert c <= 128, f"{name}: fan_out {c} > 128 lanes"
        self.index[name] = (self._rows, (r, c))
        self._arrs.append((self._rows, arr))
        self._rows += _round_up(r, 8)

    def build(self):
        total = max(_round_up(self._rows, 8), 8)
        slab = jnp.zeros((total, 128), jnp.float32)
        for off, arr in self._arrs:
            slab = slab.at[off:off + arr.shape[0], :arr.shape[1]].set(arr)
        return slab.astype(self.dtype)


# ------------------- in-kernel helpers (values, not refs) ---------------------
def _dot(a, b):
    # (M, K) @ (K, N) on the MXU: bf16 operands, f32 accumulation.
    return jax.lax.dot_general(a.astype(jnp.bfloat16), b.astype(jnp.bfloat16),
                               (((1,), (0,)), ((), ())),
                               preferred_element_type=jnp.float32)


def _dot_t(a, b):
    # a @ b.T without an explicit transpose: contract the last dims of both operands.
    return jax.lax.dot_general(a.astype(jnp.bfloat16), b.astype(jnp.bfloat16),
                               (((1,), (1,)), ((), ())),
                               preferred_element_type=jnp.float32)


def _tile_rows(x, n):
    return x if n == 1 else jnp.concatenate([x] * n, axis=0)


# ----------------------------- fused DETR kernel ------------------------------
def _make_detr_kernel(w_idx, v_idx, n_img):
    D = CFG.d_model
    C1 = CFG.num_classes + 1
    Q = CFG.num_queries
    S = CFG.seq_enc
    nH, hd = CFG.n_heads, CFG.head_dim
    scale = 1.0 / math.sqrt(hd)

    def kernel(patches_ref, w_ref, v_ref, out_ref):
        # ---- static slab readers (aligned static ref slices, loaded on use) ----
        def W(name):
            off, (r, c) = w_idx[name]
            return w_ref[off:off + r, :c]          # bf16 weight (r, c)

        def V(name):
            off, (r, c) = v_idx[name]
            return v_ref[off:off + r, :c]          # f32 bias / LN / pos (r, c)

        def linear(x, wn, bn, relu=False):
            y = _dot(x, W(wn)) + V(bn)
            return jnp.maximum(y, 0.0) if relu else y

        def layernorm(x, gn, bn):                  # f32 statistics
            mu = jnp.mean(x, axis=-1, keepdims=True)
            xc = x - mu
            var = jnp.mean(xc * xc, axis=-1, keepdims=True)
            return xc * jax.lax.rsqrt(var + 1e-5) * V(gn) + V(bn)

        def mha(q, k, v, wo_n, bo_n, sq, sk):
            """Multi-head attention over `n_img` images folded into the row dim.

            q: (n_img*sq, D), k/v: (n_img*sk, D).  Heads are static 8-lane slices.
            """
            # 1) Score tiles for every (image, head) pair stacked along sublanes so the
            #    softmax runs once on full vregs instead of nH*n_img times on tiny tiles.
            parts = []
            for b in range(n_img):
                qb = q[b * sq:(b + 1) * sq]
                kb = k[b * sk:(b + 1) * sk]
                for h in range(nH):
                    sl = slice(h * hd, (h + 1) * hd)
                    parts.append(_dot_t(qb[:, sl], kb[:, sl]))       # (sq, sk)
            s = jnp.concatenate(parts, axis=0) * scale               # (n*nH*sq, sk)
            s = s - jnp.max(s, axis=-1, keepdims=True)
            p = jnp.exp(s)
            # approx reciprocal on the otherwise-idle EUP slot (~1e-3 rel err, OK for inference)
            p = p * pl.reciprocal(jnp.sum(p, axis=-1, keepdims=True), approx=True)

            # 2) Per-(image, head) value matmuls; heads re-assembled into a full-width
            #    (rows, D) value so the output projection is ONE (rows,D)@(D,D) matmul.
            imgs = []
            idx = 0
            for b in range(n_img):
                vb = v[b * sk:(b + 1) * sk]
                heads = []
                for h in range(nH):
                    sl = slice(h * hd, (h + 1) * hd)
                    heads.append(_dot(p[idx * sq:(idx + 1) * sq], vb[:, sl]))  # (sq, hd)
                    idx += 1
                imgs.append(jnp.concatenate(heads, axis=1))          # (sq, D)
            o = jnp.concatenate(imgs, axis=0) if n_img > 1 else imgs[0]
            return _dot(o, W(wo_n)) + V(bo_n)                        # (n*sq, D)

        def self_attn(x, posed, pre, sq):
            # DETR self-attention: q = k = (x + pos), v = x.  wq|wk fused into one matmul.
            qk = linear(x + posed, pre + "wqk", pre + "bqk")          # (rows, 2D)
            v = linear(x, pre + "wv", pre + "bv")                     # (rows, D)
            return mha(qk[:, :D], qk[:, D:], v, pre + "wo", pre + "bo", sq, sq)

        def cross_attn(tgt, qpos, memory, pos, pre):
            q = linear(tgt + qpos, pre + "wq", pre + "bq")
            k = linear(memory + pos, pre + "wk", pre + "bk")
            v = linear(memory, pre + "wv", pre + "bv")
            return mha(q, k, v, pre + "wo", pre + "bo", Q, S)

        # ---- backbone patchify "conv" + ReLU, then 1x1 input projection ----
        x = patches_ref[...]                                          # (n*S, Kp)
        feat = linear(x, "patch_w", "patch_b", relu=True)             # (n*S, 48)
        src = linear(feat, "proj_w", "proj_b")                        # (n*S, D)

        # ---- encoder ----
        pos = _tile_rows(V("enc_pos"), n_img)                         # (n*S, D)
        for i in range(CFG.num_enc_layers):
            pre = f"enc{i}."
            a = self_attn(src, pos, pre, S)
            src = layernorm(src + a, pre + "ln1_g", pre + "ln1_b")
            f = linear(linear(src, pre + "ffn_w1", pre + "ffn_b1", relu=True),
                       pre + "ffn_w2", pre + "ffn_b2")
            src = layernorm(src + f, pre + "ln2_g", pre + "ln2_b")
        memory = src

        # ---- decoder ----
        qpos = _tile_rows(V("query_embed"), n_img)                    # (n*Q, D)
        tgt = jnp.zeros((n_img * Q, D), jnp.float32)
        for i in range(CFG.num_dec_layers):
            pre = f"dec{i}."
            sa = self_attn(tgt, qpos, pre + "sa.", Q)
            tgt = layernorm(tgt + sa, pre + "ln1_g", pre + "ln1_b")
            ca = cross_attn(tgt, qpos, memory, pos, pre + "ca.")
            tgt = layernorm(tgt + ca, pre + "ln2_g", pre + "ln2_b")
            f = linear(linear(tgt, pre + "ffn_w1", pre + "ffn_b1", relu=True),
                       pre + "ffn_w2", pre + "ffn_b2")
            tgt = layernorm(tgt + f, pre + "ln3_g", pre + "ln3_b")

        # ---- heads: box-MLP layer 1 and class head fused as [box_w1 | cls_w] ----
        h1 = linear(tgt, "head1_w", "head1_b")                        # (n*Q, D+C1)
        logits = h1[:, D:D + C1]                                      # (n*Q, C1)
        bh = jnp.maximum(h1[:, :D], 0.0)
        bh = linear(bh, "box_w2", "box_b2", relu=True)
        boxes = jax.nn.sigmoid(linear(bh, "box_w3", "box_b3"))        # (n*Q, 4)

        # ---- lane-dense output: boxes lanes 0-3, logits lanes 4-3+C1, zero pad ----
        rows = n_img * Q
        pad = jnp.zeros((rows, 128 - 4 - C1), jnp.float32)
        out_ref[...] = jnp.concatenate([boxes, logits, pad], axis=1)

    return kernel


# ----------------------------- model wrapper ----------------------------------
def patchify(pixel_values):
    """NCHW -> im2col patch rows (B*S_enc, patch*patch*C). Pure layout op, done in XLA."""
    x = jnp.transpose(pixel_values, (0, 2, 3, 1))          # NCHW -> NHWC
    B, H, W, C = x.shape
    p = CFG.patch
    x = x.reshape(B, H // p, p, W // p, p, C).transpose(0, 1, 3, 2, 4, 5)
    return x.reshape(B * (H // p) * (W // p), p * p * C)


def post_process(logits, boxes, threshold):
    """HF post_process_object_detection + convert_detr_predictions (xyxy -> xywh)."""
    prob = jax.nn.softmax(logits, axis=-1)
    scores = prob[..., :-1].max(-1)
    labels = prob[..., :-1].argmax(-1)
    cx, cy, w, h = boxes[..., 0], boxes[..., 1], boxes[..., 2], boxes[..., 3]
    x1, y1, x2, y2 = cx - 0.5 * w, cy - 0.5 * h, cx + 0.5 * w, cy + 0.5 * h
    xywh = jnp.stack([x1, y1, x2 - x1, y2 - y1], axis=-1)   # xyxy -> xywh, normalized
    keep = scores > threshold
    # TODO(synk): dynamic-length boolean filtering of detections is not expressible with
    # static shapes on TPU; we return all queries plus a `keep` mask instead.
    return [
        {"scores": scores[i], "labels": labels[i], "boxes": xywh[i], "keep": keep[i]}
        for i in range(logits.shape[0])
    ]


def detr_forward(w_slab, v_slab, pixel_values, *, w_idx, v_idx, labels=None,
                 training=False, batch_block=None):
    B = pixel_values.shape[0]
    S = CFG.seq_enc
    Q = CFG.num_queries
    C1 = CFG.num_classes + 1
    Kp = CFG.in_ch * CFG.patch * CFG.patch

    # Batch folding: default = whole batch in ONE grid step (fold batch into matmul rows),
    # which is optimal on 1-TC v5e/v6e.  On v7x pass batch_block=B//2 so the "parallel"
    # batch-block axis is split across the 2 TensorCores.
    if batch_block is None:
        batch_block = B
    assert B % batch_block == 0
    num_blocks = B // batch_block

    patches = patchify(pixel_values)                        # (B*S, Kp)
    kernel = _make_detr_kernel(w_idx, v_idx, batch_block)

    out = pl.pallas_call(
        kernel,
        grid=(num_blocks,),
        out_shape=jax.ShapeDtypeStruct((B * Q, 128), jnp.float32),
        in_specs=[
            pl.BlockSpec((batch_block * S, Kp), lambda i: (i, 0)),
            # Weight slabs are grid-invariant (constant index_map): DMA'd once, resident.
            pl.BlockSpec(w_slab.shape, lambda i: (0, 0)),
            pl.BlockSpec(v_slab.shape, lambda i: (0, 0)),
        ],
        out_specs=pl.BlockSpec((batch_block * Q, 128), lambda i: (i, 0)),
        compiler_params=pltpu.CompilerParams(dimension_semantics=("parallel",)),
    )(patches, w_slab, v_slab)

    boxes = out[:, :4].reshape(B, Q, 4)
    logits = out[:, 4:4 + C1].reshape(B, Q, C1)

    outputs = {
        "logits": logits,
        "pred_boxes": boxes,
        "logits_stripped": logits[:, :, :-1],               # Detr.forward specific
    }
    if not training:
        outputs["predictions"] = post_process(logits, boxes, CFG.threshold)
    # TODO(synk): Hungarian-matching DETR loss (labels path) has no clean Pallas
    # equivalent (data-dependent bipartite matching); omitted.
    return outputs


# ----------------------------- parameter init --------------------------------
def init_packed_params(seed=1):
    key = jax.random.PRNGKey(seed)
    keys = iter(jax.random.split(key, 256))

    def w(shape, scale=0.02):
        return jax.random.normal(next(keys), shape, jnp.float32) * scale

    d = CFG.d_model
    wp = _SlabPacker(jnp.bfloat16)   # matmul weights -> bf16 MXU operands
    vp = _SlabPacker(jnp.float32)    # biases / LN params / pos embeddings -> f32

    def dense(wname, bname, fan_in, fan_out):
        wp.add(wname, w((fan_in, fan_out)))
        vp.add(bname, jnp.zeros((1, fan_out), jnp.float32))

    def ln(prefix):
        vp.add(prefix + "_g", jnp.ones((1, d), jnp.float32))
        vp.add(prefix + "_b", jnp.zeros((1, d), jnp.float32))

    def self_attn(prefix):
        wq_, wk_ = w((d, d)), w((d, d))
        wp.add(prefix + "wqk", jnp.concatenate([wq_, wk_], axis=1))   # fused q/k proj
        vp.add(prefix + "bqk", jnp.zeros((1, 2 * d), jnp.float32))
        dense(prefix + "wv", prefix + "bv", d, d)
        dense(prefix + "wo", prefix + "bo", d, d)

    # backbone patchify "conv" + input projection + embeddings
    dense("patch_w", "patch_b", CFG.in_ch * CFG.patch * CFG.patch, CFG.backbone_ch)
    dense("proj_w", "proj_b", CFG.backbone_ch, d)
    vp.add("enc_pos", w((CFG.seq_enc, d)))
    vp.add("query_embed", w((CFG.num_queries, d)))

    # encoder layers
    for i in range(CFG.num_enc_layers):
        pre = f"enc{i}."
        self_attn(pre)
        ln(pre + "ln1")
        dense(pre + "ffn_w1", pre + "ffn_b1", d, CFG.ffn)
        dense(pre + "ffn_w2", pre + "ffn_b2", CFG.ffn, d)
        ln(pre + "ln2")

    # decoder layers
    for i in range(CFG.num_dec_layers):
        pre = f"dec{i}."
        self_attn(pre + "sa.")
        for n in ("q", "k", "v", "o"):
            dense(pre + "ca.w" + n, pre + "ca.b" + n, d, d)
        ln(pre + "ln1")
        ln(pre + "ln2")
        ln(pre + "ln3")
        dense(pre + "ffn_w1", pre + "ffn_b1", d, CFG.ffn)
        dense(pre + "ffn_w2", pre + "ffn_b2", CFG.ffn, d)

    # heads: fuse box-MLP first layer and class head into one (D, D + C+1) weight,
    # box columns first so the D-wide slice inside the kernel starts at lane 0.
    C1 = CFG.num_classes + 1
    box_w1, cls_w = w((d, d)), w((d, C1))
    wp.add("head1_w", jnp.concatenate([box_w1, cls_w], axis=1))
    vp.add("head1_b", jnp.zeros((1, d + C1), jnp.float32))
    dense("box_w2", "box_b2", d, d)
    dense("box_w3", "box_b3", d, 4)

    return wp.build(), vp.build(), wp.index, vp.index


# ----------------------------------- main -------------------------------------
if __name__ == "__main__":
    key = jax.random.PRNGKey(0)
    pixel_values = jax.random.normal(key, (2, CFG.in_ch, CFG.img, CFG.img), jnp.float32)
    w_slab, v_slab, w_idx, v_idx = init_packed_params(seed=1)

    forward = jax.jit(functools.partial(detr_forward, w_idx=w_idx, v_idx=v_idx,
                                        training=False))
    outputs = forward(w_slab, v_slab, pixel_values)
    jax.block_until_ready(outputs["logits"])
    jax.block_until_ready(outputs["pred_boxes"])
    jax.block_until_ready(outputs["logits_stripped"])

    assert outputs["logits"].shape == (2, CFG.num_queries, CFG.num_classes + 1)
    assert outputs["logits_stripped"].shape == (2, CFG.num_queries, CFG.num_classes)
    assert outputs["pred_boxes"].shape == (2, CFG.num_queries, 4)
    assert len(outputs["predictions"]) == 2
    print("KERNEL_OK")
</pallas_src>

<mosaic_0001>
module attributes {stable_mosaic.version = 11 : i64} {
  func.func @kernel(%arg0: i32, %arg1: memref<32x192xf32, #tpu.memory_space<vmem>>, %arg2: memref<848x128xbf16, #tpu.memory_space<vmem>>, %arg3: memref<256x128xf32, #tpu.memory_space<vmem>>, %arg4: memref<16x128xf32, #tpu.memory_space<vmem>>) attributes {dimension_semantics = [#tpu.dimension_semantics<parallel>], iteration_bounds = array<i64: 1>, scalar_prefetch = 0 : i64, scratch_operands = 0 : i64, tpu.core_type = #tpu.core_type<tc>, window_params = [{transform_indices = @transform_0, window_bounds = array<i64: 32, 192>}, {pipeline_mode = #tpu.pipeline_mode<synchronous>, transform_indices = @transform_1, window_bounds = array<i64: 848, 128>}, {pipeline_mode = #tpu.pipeline_mode<synchronous>, transform_indices = @transform_2, window_bounds = array<i64: 256, 128>}, {transform_indices = @transform_3, window_bounds = array<i64: 16, 128>}]} {
    %c0 = arith.constant 0 : index
    %c0_0 = arith.constant 0 : index
    %0 = vector.load %arg1[%c0, %c0_0] : memref<32x192xf32, #tpu.memory_space<vmem>>, vector<32x192xf32>
    %c0_1 = arith.constant 0 : index
    %c0_2 = arith.constant 0 : index
    %1 = vector.load %arg2[%c0_1, %c0_2] : memref<848x128xbf16, #tpu.memory_space<vmem>>, vector<192x48xbf16>
    %2 = arith.truncf %0 : vector<32x192xf32> to vector<32x192xbf16>
    %cst = arith.constant dense<0.000000e+00> : vector<32x48xf32>
    %3 = tpu.matmul %2, %1, %cst {dimension_numbers = #tpu.dot_dimension_numbers<[1], [0], [0], [1], [0, 0, 1, 1], [], []>} : vector<32x192xbf16>, vector<192x48xbf16>, vector<32x48xf32> -> vector<32x48xf32>
    %c0_3 = arith.constant 0 : index
    %c0_4 = arith.constant 0 : index
    %4 = vector.load %arg3[%c0_3, %c0_4] : memref<256x128xf32, #tpu.memory_space<vmem>>, vector<1x48xf32>
    %5 = vector.broadcast %4 : vector<1x48xf32> to vector<32x48xf32>
    %6 = arith.addf %3, %5 : vector<32x48xf32>
    %cst_5 = arith.constant 0.000000e+00 : f32
    %7 = vector.broadcast %cst_5 : f32 to vector<32x48xf32>
    %8 = arith.maximumf %6, %7 : vector<32x48xf32>
    %c192 = arith.constant 192 : index
    %c0_6 = arith.constant 0 : index
    %9 = vector.load %arg2[%c192, %c0_6] : memref<848x128xbf16, #tpu.memory_space<vmem>>, vector<48x32xbf16>
    %10 = arith.truncf %8 : vector<32x48xf32> to vector<32x48xbf16>
    %cst_7 = arith.constant dense<0.000000e+00> : vector<32x32xf32>
    %11 = tpu.matmul %10, %9, %cst_7 {dimension_numbers = #tpu.dot_dimension_numbers<[1], [0], [0], [1], [0, 0, 1, 1], [], []>} : vector<32x48xbf16>, vector<48x32xbf16>, vector<32x32xf32> -> vector<32x32xf32>
    %c8 = arith.constant 8 : index
    %c0_8 = arith.constant 0 : index
    %12 = vector.load %arg3[%c8, %c0_8] : memref<256x128xf32, #tpu.memory_space<vmem>>, vector<1x32xf32>
    %13 = vector.broadcast %12 : vector<1x32xf32> to vector<32x32xf32>
    %14 = arith.addf %11, %13 : vector<32x32xf32>
    %c16 = arith.constant 16 : index
    %c0_9 = arith.constant 0 : index
    %15 = vector.load %arg3[%c16, %c0_9] : memref<256x128xf32, #tpu.memory_space<vmem>>, vector<16x32xf32>
    %16 = tpu.concatenate %15, %15 in 0 : vector<16x32xf32>, vector<16x32xf32> -> vector<32x32xf32>
    %17 = arith.addf %14, %16 : vector<32x32xf32>
    %c240 = arith.constant 240 : index
    %c0_10 = arith.constant 0 : index
    %18 = vector.load %arg2[%c240, %c0_10] : memref<848x128xbf16, #tpu.memory_space<vmem>>, vector<32x64xbf16>
    %19 = arith.truncf %17 : vector<32x32xf32> to vector<32x32xbf16>
    %cst_11 = arith.constant dense<0.000000e+00> : vector<32x64xf32>
    %20 = tpu.matmul %19, %18, %cst_11 {dimension_numbers = #tpu.dot_dimension_numbers<[1], [0], [0], [1], [0, 0, 1, 1], [], []>} : vector<32x32xbf16>, vector<32x64xbf16>, vector<32x64xf32> -> vector<32x64xf32>
    %c40 = arith.constant 40 : index
    %c0_12 = arith.constant 0 : index
    %21 = vector.load %arg3[%c40, %c0_12] : memref<256x128xf32, #tpu.memory_space<vmem>>, vector<1x64xf32>
    %22 = vector.broadcast %21 : vector<1x64xf32> to vector<32x64xf32>
    %23 = arith.addf %20, %22 : vector<32x64xf32>
    %c272 = arith.constant 272 : index
    %c0_13 = arith.constant 0 : index
    %24 = vector.load %arg2[%c272, %c0_13] : memref<848x128xbf16, #tpu.memory_space<vmem>>, vector<32x32xbf16>
    %25 = arith.truncf %14 : vector<32x32xf32> to vector<32x32xbf16>
    %cst_14 = arith.constant dense<0.000000e+00> : vector<32x32xf32>
    %26 = tpu.matmul %25, %24, %cst_14 {dimension_numbers = #tpu.dot_dimension_numbers<[1], [0], [0], [1], [0, 0, 1, 1], [], []>} : vector<32x32xbf16>, vector<32x32xbf16>, vector<32x32xf32> -> vector<32x32xf32>
    %c48 = arith.constant 48 : index
    %c0_15 = arith.constant 0 : index
    %27 = vector.load %arg3[%c48, %c0_15] : memref<256x128xf32, #tpu.memory_space<vmem>>, vector<1x32xf32>
    %28 = vector.broadcast %27 : vector<1x32xf32> to vector<32x32xf32>
    %29 = arith.addf %26, %28 : vector<32x32xf32>
    %30 = vector.extract_strided_slice %23 {offsets = [0, 0], sizes = [32, 32], strides = [1, 1]} : vector<32x64xf32> to vector<32x32xf32>
    %31 = vector.extract_strided_slice %23 {offsets = [0, 32], sizes = [32, 32], strides = [1, 1]} : vector<32x64xf32> to vector<32x32xf32>
    %32 = vector.extract_strided_slice %30 {offsets = [0, 0], sizes = [16, 32], strides = [1, 1]} : vector<32x32xf32> to vector<16x32xf32>
    %33 = vector.extract_strided_slice %31 {offsets = [0, 0], sizes = [16, 32], strides = [1, 1]} : vector<32x32xf32> to vector<16x32xf32>
    %34 = vector.extract_strided_slice %32 {offsets = [0, 0], sizes = [16, 8], strides = [1, 1]} : vector<16x32xf32> to vector<16x8xf32>
    %35 = vector.extract_strided_slice %33 {offsets = [0, 0], sizes = [16, 8], strides = [1, 1]} : vector<16x32xf32> to vector<16x8xf32>
    %36 = arith.truncf %34 : vector<16x8xf32> to vector<16x8xbf16>
    %37 = arith.truncf %35 : vector<16x8xf32> to vector<16x8xbf16>
    %cst_16 = arith.constant dense<0.000000e+00> : vector<16x16xf32>
    %38 = tpu.matmul %36, %37, %cst_16 {dimension_numbers = #tpu.dot_dimension_numbers<[1], [1], [0], [0], [0, 0, 1, 0], [], []>} : vector<16x8xbf16>, vector<16x8xbf16>, vector<16x16xf32> -> vector<16x16xf32>
    %39 = vector.extract_strided_slice %32 {offsets = [0, 8], sizes = [16, 8], strides = [1, 1]} : vector<16x32xf32> to vector<16x8xf32>
    %40 = vector.extract_strided_slice %33 {offsets = [0, 8], sizes = [16, 8], strides = [1, 1]} : vector<16x32xf32> to vector<16x8xf32>
    %41 = arith.truncf %39 : vector<16x8xf32> to vector<16x8xbf16>
    %42 = arith.truncf %40 : vector<16x8xf32> to vector<16x8xbf16>
    %cst_17 = arith.constant dense<0.000000e+00> : vector<16x16xf32>
    %43 = tpu.matmul %41, %42, %cst_17 {dimension_numbers = #tpu.dot_dimension_numbers<[1], [1], [0], [0], [0, 0, 1, 0], [], []>} : vector<16x8xbf16>, vector<16x8xbf16>, vector<16x16xf32> -> vector<16x16xf32>
    %44 = vector.extract_strided_slice %32 {offsets = [0, 16], sizes = [16, 8], strides = [1, 1]} : vector<16x32xf32> to vector<16x8xf32>
    %45 = vector.extract_strided_slice %33 {offsets = [0, 16], sizes = [16, 8], strides = [1, 1]} : vector<16x32xf32> to vector<16x8xf32>
    %46 = arith.truncf %44 : vector<16x8xf32> to vector<16x8xbf16>
    %47 = arith.truncf %45 : vector<16x8xf32> to vector<16x8xbf16>
    %cst_18 = arith.constant dense<0.000000e+00> : vector<16x16xf32>
    %48 = tpu.matmul %46, %47, %cst_18 {dimension_numbers = #tpu.dot_dimension_numbers<[1], [1], [0], [0], [0, 0, 1, 0], [], []>} : vector<16x8xbf16>, vector<16x8xbf16>, vector<16x16xf32> -> vector<16x16xf32>
    %49 = vector.extract_strided_slice %32 {offsets = [0, 24], sizes = [16, 8], strides = [1, 1]} : vector<16x32xf32> to vector<16x8xf32>
    %50 = vector.extract_strided_slice %33 {offsets = [0, 24], sizes = [16, 8], strides = [1, 1]} : vector<16x32xf32> to vector<16x8xf32>
    %51 = arith.truncf %49 : vector<16x8xf32> to vector<16x8xbf16>
    %52 = arith.truncf %50 : vector<16x8xf32> to vector<16x8xbf16>
    %cst_19 = arith.constant dense<0.000000e+00> : vector<16x16xf32>
    %53 = tpu.matmul %51, %52, %cst_19 {dimension_numbers = #tpu.dot_dimension_numbers<[1], [1], [0], [0], [0, 0, 1, 0], [], []>} : vector<16x8xbf16>, vector<16x8xbf16>, vector<16x16xf32> -> vector<16x16xf32>
    %54 = vector.extract_strided_slice %30 {offsets = [16, 0], sizes = [16, 32], strides = [1, 1]} : vector<32x32xf32> to vector<16x32xf32>
    %55 = vector.extract_strided_slice %31 {offsets = [16, 0], sizes = [16, 32], strides = [1, 1]} : vector<32x32xf32> to vector<16x32xf32>
    %56 = vector.extract_strided_slice %54 {offsets = [0, 0], sizes = [16, 8], strides = [1, 1]} : vector<16x32xf32> to vector<16x8xf32>
    %57 = vector.extract_strided_slice %55 {offsets = [0, 0], sizes = [16, 8], strides = [1, 1]} : vector<16x32xf32> to vector<16x8xf32>
    %58 = arith.truncf %56 : vector<16x8xf32> to vector<16x8xbf16>
    %59 = arith.truncf %57 : vector<16x8xf32> to vector<16x8xbf16>
    %cst_20 = arith.constant dense<0.000000e+00> : vector<16x16xf32>
    %60 = tpu.matmul %58, %59, %cst_20 {dimension_numbers = #tpu.dot_dimension_numbers<[1], [1], [0], [0], [0, 0, 1, 0], [], []>} : vector<16x8xbf16>, vector<16x8xbf16>, vector<16x16xf32> -> vector<16x16xf32>
    %61 = vector.extract_strided_slice %54 {offsets = [0, 8], sizes = [16, 8], strides = [1, 1]} : vector<16x32xf32> to vector<16x8xf32>
    %62 = vector.extract_strided_slice %55 {offsets = [0, 8], sizes = [16, 8], strides = [1, 1]} : vector<16x32xf32> to vector<16x8xf32>
    %63 = arith.truncf %61 : vector<16x8xf32> to vector<16x8xbf16>
    %64 = arith.truncf %62 : vector<16x8xf32> to vector<16x8xbf16>
    %cst_21 = arith.constant dense<0.000000e+00> : vector<16x16xf32>
    %65 = tpu.matmul %63, %64, %cst_21 {dimension_numbers = #tpu.dot_dimension_numbers<[1], [1], [0], [0], [0, 0, 1, 0], [], []>} : vector<16x8xbf16>, vector<16x8xbf16>, vector<16x16xf32> -> vector<16x16xf32>
    %66 = vector.extract_strided_slice %54 {offsets = [0, 16], sizes = [16, 8], strides = [1, 1]} : vector<16x32xf32> to vector<16x8xf32>
    %67 = vector.extract_strided_slice %55 {offsets = [0, 16], sizes = [16, 8], strides = [1, 1]} : vector<16x32xf32> to vector<16x8xf32>
    %68 = arith.truncf %66 : vector<16x8xf32> to vector<16x8xbf16>
    %69 = arith.truncf %67 : vector<16x8xf32> to vector<16x8xbf16>
    %cst_22 = arith.constant dense<0.000000e+00> : vector<16x16xf32>
    %70 = tpu.matmul %68, %69, %cst_22 {dimension_numbers = #tpu.dot_dimension_numbers<[1], [1], [0], [0], [0, 0, 1, 0], [], []>} : vector<16x8xbf16>, vector<16x8xbf16>, vector<16x16xf32> -> vector<16x16xf32>
    %71 = vector.extract_strided_slice %54 {offsets = [0, 24], sizes = [16, 8], strides = [1, 1]} : vector<16x32xf32> to vector<16x8xf32>
    %72 = vector.extract_strided_slice %55 {offsets = [0, 24], sizes = [16, 8], strides = [1, 1]} : vector<16x32xf32> to vector<16x8xf32>
    %73 = arith.truncf %71 : vector<16x8xf32> to vector<16x8xbf16>
    %74 = arith.truncf %72 : vector<16x8xf32> to vector<16x8xbf16>
    %cst_23 = arith.constant dense<0.000000e+00> : vector<16x16xf32>
    %75 = tpu.matmul %73, %74, %cst_23 {dimension_numbers = #tpu.dot_dimension_numbers<[1], [1], [0], [0], [0, 0, 1, 0], [], []>} : vector<16x8xbf16>, vector<16x8xbf16>, vector<16x16xf32> -> vector<16x16xf32>
    %76 = tpu.concatenate %38, %43, %48, %53, %60, %65, %70, %75 in 0 : vector<16x16xf32>, vector<16x16xf32>, vector<16x16xf32>, vector<16x16xf32>, vector<16x16xf32>, vector<16x16xf32>, vector<16x16xf32>, vector<16x16xf32> -> vector<128x16xf32>
    %cst_24 = arith.constant 0.353553385 : f32
    %77 = vector.broadcast %cst_24 : f32 to vector<128x16xf32>
    %78 = arith.mulf %76, %77 : vector<128x16xf32>
    %cst_25 = arith.constant dense<0xFF800000> : vector<128xf32>
    %79 = vector.multi_reduction <maximumf>, %78, %cst_25 [1] : vector<128x16xf32> to vector<128xf32>
    %80 = vector.shape_cast %79 : vector<128xf32> to vector<128x1xf32>
    %81 = vector.broadcast %80 : vector<128x1xf32> to vector<128x16xf32>
    %82 = arith.subf %78, %81 : vector<128x16xf32>
    %83 = math.exp %82 : vector<128x16xf32>
    %cst_26 = arith.constant dense<0.000000e+00> : vector<128xf32>
    %84 = vector.multi_reduction <add>, %83, %cst_26 [1] : vector<128x16xf32> to vector<128xf32>
    %85 = vector.shape_cast %84 : vector<128xf32> to vector<128x1xf32>
    %86 = tpu.reciprocal %85 {approx = true} : vector<128x1xf32> -> vector<128x1xf32>
    %87 = vector.broadcast %86 : vector<128x1xf32> to vector<128x16xf32>
    %88 = arith.mulf %83, %87 : vector<128x16xf32>
    %89 = vector.extract_strided_slice %29 {offsets = [0, 0], sizes = [16, 32], strides = [1, 1]} : vector<32x32xf32> to vector<16x32xf32>
    %90 = vector.extract_strided_slice %88 {offsets = [0, 0], sizes = [16, 16], strides = [1, 1]} : vector<128x16xf32> to vector<16x16xf32>
    %91 = vector.extract_strided_slice %89 {offsets = [0, 0], sizes = [16, 8], strides = [1, 1]} : vector<16x32xf32> to vector<16x8xf32>
    %92 = arith.truncf %90 : vector<16x16xf32> to vector<16x16xbf16>
    %93 = arith.truncf %91 : vector<16x8xf32> to vector<16x8xbf16>
    %cst_27 = arith.constant dense<0.000000e+00> : vector<16x8xf32>
    %94 = tpu.matmul %92, %93, %cst_27 {dimension_numbers = #tpu.dot_dimension_numbers<[1], [0], [0], [1], [0, 0, 1, 1], [], []>} : vector<16x16xbf16>, vector<16x8xbf16>, vector<16x8xf32> -> vector<16x8xf32>
    %95 = vector.extract_strided_slice %88 {offsets = [16, 0], sizes = [16, 16], strides = [1, 1]} : vector<128x16xf32> to vector<16x16xf32>
    %96 = vector.extract_strided_slice %89 {offsets = [0, 8], sizes = [16, 8], strides = [1, 1]} : vector<16x32xf32> to vector<16x8xf32>
    %97 = arith.truncf %95 : vector<16x16xf32> to vector<16x16xbf16>
    %98 = arith.truncf %96 : vector<16x8xf32> to vector<16x8xbf16>
    %cst_28 = arith.constant dense<0.000000e+00> : vector<16x8xf32>
    %99 = tpu.matmul %97, %98, %cst_28 {dimension_numbers = #tpu.dot_dimension_numbers<[1], [0], [0], [1], [0, 0, 1, 1], [], []>} : vector<16x16xbf16>, vector<16x8xbf16>, vector<16x8xf32> -> vector<16x8xf32>
    %100 = vector.extract_strided_slice %88 {offsets = [32, 0], sizes = [16, 16], strides = [1, 1]} : vector<128x16xf32> to vector<16x16xf32>
    %101 = vector.extract_strided_slice %89 {offsets = [0, 16], sizes = [16, 8], strides = [1, 1]} : vector<16x32xf32> to vector<16x8xf32>
    %102 = arith.truncf %100 : vector<16x16xf32> to vector<16x16xbf16>
    %103 = arith.truncf %101 : vector<16x8xf32> to vector<16x8xbf16>
    %cst_29 = arith.constant dense<0.000000e+00> : vector<16x8xf32>
    %104 = tpu.matmul %102, %103, %cst_29 {dimension_numbers = #tpu.dot_dimension_numbers<[1], [0], [0], [1], [0, 0, 1, 1], [], []>} : vector<16x16xbf16>, vector<16x8xbf16>, vector<16x8xf32> -> vector<16x8xf32>
    %105 = vector.extract_strided_slice %88 {offsets = [48, 0], sizes = [16, 16], strides = [1, 1]} : vector<128x16xf32> to vector<16x16xf32>
    %106 = vector.extract_strided_slice %89 {offsets = [0, 24], sizes = [16, 8], strides = [1, 1]} : vector<16x32xf32> to vector<16x8xf32>
    %107 = arith.truncf %105 : vector<16x16xf32> to vector<16x16xbf16>
    %108 = arith.truncf %106 : vector<16x8xf32> to vector<16x8xbf16>
    %cst_30 = arith.constant dense<0.000000e+00> : vector<16x8xf32>
    %109 = tpu.matmul %107, %108, %cst_30 {dimension_numbers = #tpu.dot_dimension_numbers<[1], [0], [0], [1], [0, 0, 1, 1], [], []>} : vector<16x16xbf16>, vector<16x8xbf16>, vector<16x8xf32> -> vector<16x8xf32>
    %110 = tpu.concatenate %94, %99, %104, %109 in 1 : vector<16x8xf32>, vector<16x8xf32>, vector<16x8xf32>, vector<16x8xf32> -> vector<16x32xf32>
    %111 = vector.extract_strided_slice %29 {offsets = [16, 0], sizes = [16, 32], strides = [1, 1]} : vector<32x32xf32> to vector<16x32xf32>
    %112 = vector.extract_strided_slice %88 {offsets = [64, 0], sizes = [16, 16], strides = [1, 1]} : vector<128x16xf32> to vector<16x16xf32>
    %113 = vector.extract_strided_slice %111 {offsets = [0, 0], sizes = [16, 8], strides = [1, 1]} : vector<16x32xf32> to vector<16x8xf32>
    %114 = arith.truncf %112 : vector<16x16xf32> to vector<16x16xbf16>
    %115 = arith.truncf %113 : vector<16x8xf32> to vector<16x8xbf16>
    %cst_31 = arith.constant dense<0.000000e+00> : vector<16x8xf32>
    %116 = tpu.matmul %114, %115, %cst_31 {dimension_numbers = #tpu.dot_dimension_numbers<[1], [0], [0], [1], [0, 0, 1, 1], [], []>} : vector<16x16xbf16>, vector<16x8xbf16>, vector<16x8xf32> -> vector<16x8xf32>
    %117 = vector.extract_strided_slice %88 {offsets = [80, 0], sizes = [16, 16], strides = [1, 1]} : vector<128x16xf32> to vector<16x16xf32>
    %118 = vector.extract_strided_slice %111 {offsets = [0, 8], sizes = [16, 8], strides = [1, 1]} : vector<16x32xf32> to vector<16x8xf32>
    %119 = arith.truncf %117 : vector<16x16xf32> to vector<16x16xbf16>
    %120 = arith.truncf %118 : vector<16x8xf32> to vector<16x8xbf16>
    %cst_32 = arith.constant dense<0.000000e+00> : vector<16x8xf32>
    %121 = tpu.matmul %119, %120, %cst_32 {dimension_numbers = #tpu.dot_dimension_numbers<[1], [0], [0], [1], [0, 0, 1, 1], [], []>} : vector<16x16xbf16>, vector<16x8xbf16>, vector<16x8xf32> -> vector<16x8xf32>
    %122 = vector.extract_strided_slice %88 {offsets = [96, 0], sizes = [16, 16], strides = [1, 1]} : vector<128x16xf32> to vector<16x16xf32>
    %123 = vector.extract_strided_slice %111 {offsets = [0, 16], sizes = [16, 8], strides = [1, 1]} : vector<16x32xf32> to vector<16x8xf32>
    %124 = arith.truncf %122 : vector<16x16xf32> to vector<16x16xbf16>
    %125 = arith.truncf %123 : vector<16x8xf32> to vector<16x8xbf16>
    %cst_33 = arith.constant dense<0.000000e+00> : vector<16x8xf32>
    %126 = tpu.matmul %124, %125, %cst_33 {dimension_numbers = #tpu.dot_dimension_numbers<[1], [0], [0], [1], [0, 0, 1, 1], [], []>} : vector<16x16xbf16>, vector<16x8xbf16>, vector<16x8xf32> -> vector<16x8xf32>
    %127 = vector.extract_strided_slice %88 {offsets = [112, 0], sizes = [16, 16], strides = [1, 1]} : vector<128x16xf32> to vector<16x16xf32>
    %128 = vector.extract_strided_slice %111 {offsets = [0, 24], sizes = [16, 8], strides = [1, 1]} : vector<16x32xf32> to vector<16x8xf32>
    %129 = arith.truncf %127 : vector<16x16xf32> to vector<16x16xbf16>
    %130 = arith.truncf %128 : vector<16x8xf32> to vector<16x8xbf16>
    %cst_34 = arith.constant dense<0.000000e+00> : vector<16x8xf32>
    %131 = tpu.matmul %129, %130, %cst_34 {dimension_numbers = #tpu.dot_dimension_numbers<[1], [0], [0], [1], [0, 0, 1, 1], [], []>} : vector<16x16xbf16>, vector<16x8xbf16>, vector<16x8xf32> -> vector<16x8xf32>
    %132 = tpu.concatenate %116, %121, %126, %131 in 1 : vector<16x8xf32>, vector<16x8xf32>, vector<16x8xf32>, vector<16x8xf32> -> vector<16x32xf32>
    %133 = tpu.concatenate %110, %132 in 0 : vector<16x32xf32>, vector<16x32xf32> -> vector<32x32xf32>
    %c304 = arith.constant 304 : index
    %c0_35 = arith.constant 0 : index
    %134 = vector.load %arg2[%c304, %c0_35] : memref<848x128xbf16, #tpu.memory_space<vmem>>, vector<32x32xbf16>
    %135 = arith.truncf %133 : vector<32x32xf32> to vector<32x32xbf16>
    %cst_36 = arith.constant dense<0.000000e+00> : vector<32x32xf32>
    %136 = tpu.matmul %135, %134, %cst_36 {dimension_numbers = #tpu.dot_dimension_numbers<[1], [0], [0], [1], [0, 0, 1, 1], [], []>} : vector<32x32xbf16>, vector<32x32xbf16>, vector<32x32xf32> -> vector<32x32xf32>
    %c56 = arith.constant 56 : index
    %c0_37 = arith.constant 0 : index
    %137 = vector.load %arg3[%c56, %c0_37] : memref<256x128xf32, #tpu.memory_space<vmem>>, vector<1x32xf32>
    %138 = vector.broadcast %137 : vector<1x32xf32> to vector<32x32xf32>
    %139 = arith.addf %136, %138 : vector<32x32xf32>
    %140 = arith.addf %14, %139 : vector<32x32xf32>
    %cst_38 = arith.constant dense<0.000000e+00> : vector<32xf32>
    %141 = vector.multi_reduction <add>, %140, %cst_38 [1] : vector<32x32xf32> to vector<32xf32>
    %142 = vector.shape_cast %141 : vector<32xf32> to vector<32x1xf32>
    %cst_39 = arith.constant 3.200000e+01 : f32
    %143 = vector.broadcast %cst_39 : f32 to vector<32x1xf32>
    %144 = arith.divf %142, %143 : vector<32x1xf32>
    %145 = vector.broadcast %144 : vector<32x1xf32> to vector<32x32xf32>
    %146 = arith.subf %140, %145 : vector<32x32xf32>
    %147 = arith.mulf %146, %146 : vector<32x32xf32>
    %cst_40 = arith.constant dense<0.000000e+00> : vector<32xf32>
    %148 = vector.multi_reduction <add>, %147, %cst_40 [1] : vector<32x32xf32> to vector<32xf32>
    %149 = vector.shape_cast %148 : vector<32xf32> to vector<32x1xf32>
    %cst_41 = arith.constant 3.200000e+01 : f32
    %150 = vector.broadcast %cst_41 : f32 to vector<32x1xf32>
    %151 = arith.divf %149, %150 : vector<32x1xf32>
    %cst_42 = arith.constant 9.99999974E-6 : f32
    %152 = vector.broadcast %cst_42 : f32 to vector<32x1xf32>
    %153 = arith.addf %151, %152 : vector<32x1xf32>
    %154 = math.rsqrt %153 : vector<32x1xf32>
    %155 = vector.broadcast %154 : vector<32x1xf32> to vector<32x32xf32>
    %156 = arith.mulf %146, %155 : vector<32x32xf32>
    %c64 = arith.constant 64 : index
    %c0_43 = arith.constant 0 : index
    %157 = vector.load %arg3[%c64, %c0_43] : memref<256x128xf32, #tpu.memory_space<vmem>>, vector<1x32xf32>
    %158 = vector.broadcast %157 : vector<1x32xf32> to vector<32x32xf32>
    %159 = arith.mulf %156, %158 : vector<32x32xf32>
    %c72 = arith.constant 72 : index
    %c0_44 = arith.constant 0 : index
    %160 = vector.load %arg3[%c72, %c0_44] : memref<256x128xf32, #tpu.memory_space<vmem>>, vector<1x32xf32>
    %161 = vector.broadcast %160 : vector<1x32xf32> to vector<32x32xf32>
    %162 = arith.addf %159, %161 : vector<32x32xf32>
    %c336 = arith.constant 336 : index
    %c0_45 = arith.constant 0 : index
    %163 = vector.load %arg2[%c336, %c0_45] : memref<848x128xbf16, #tpu.memory_space<vmem>>, vector<32x64xbf16>
    %164 = arith.truncf %162 : vector<32x32xf32> to vector<32x32xbf16>
    %cst_46 = arith.constant dense<0.000000e+00> : vector<32x64xf32>
    %165 = tpu.matmul %164, %163, %cst_46 {dimension_numbers = #tpu.dot_dimension_numbers<[1], [0], [0], [1], [0, 0, 1, 1], [], []>} : vector<32x32xbf16>, vector<32x64xbf16>, vector<32x64xf32> -> vector<32x64xf32>
    %c80 = arith.constant 80 : index
    %c0_47 = arith.constant 0 : index
    %166 = vector.load %arg3[%c80, %c0_47] : memref<256x128xf32, #tpu.memory_space<vmem>>, vector<1x64xf32>
    %167 = vector.broadcast %166 : vector<1x64xf32> to vector<32x64xf32>
    %168 = arith.addf %165, %167 : vector<32x64xf32>
    %cst_48 = arith.constant 0.000000e+00 : f32
    %169 = vector.broadcast %cst_48 : f32 to vector<32x64xf32>
    %170 = arith.maximumf %168, %169 : vector<32x64xf32>
    %c368 = arith.constant 368 : index
    %c0_49 = arith.constant 0 : index
    %171 = vector.load %arg2[%c368, %c0_49] : memref<848x128xbf16, #tpu.memory_space<vmem>>, vector<64x32xbf16>
    %172 = arith.truncf %170 : vector<32x64xf32> to vector<32x64xbf16>
    %cst_50 = arith.constant dense<0.000000e+00> : vector<32x32xf32>
    %173 = tpu.matmul %172, %171, %cst_50 {dimension_numbers = #tpu.dot_dimension_numbers<[1], [0], [0], [1], [0, 0, 1, 1], [], []>} : vector<32x64xbf16>, vector<64x32xbf16>, vector<32x32xf32> -> vector<32x32xf32>
    %c88 = arith.constant 88 : index
    %c0_51 = arith.constant 0 : index
    %174 = vector.load %arg3[%c88, %c0_51] : memref<256x128xf32, #tpu.memory_space<vmem>>, vector<1x32xf32>
    %175 = vector.broadcast %174 : vector<1x32xf32> to vector<32x32xf32>
    %176 = arith.addf %173, %175 : vector<32x32xf32>
    %177 = arith.addf %162, %176 : vector<32x32xf32>
    %cst_52 = arith.constant dense<0.000000e+00> : vector<32xf32>
    %178 = vector.multi_reduction <add>, %177, %cst_52 [1] : vector<32x32xf32> to vector<32xf32>
    %179 = vector.shape_cast %178 : vector<32xf32> to vector<32x1xf32>
    %cst_53 = arith.constant 3.200000e+01 : f32
    %180 = vector.broadcast %cst_53 : f32 to vector<32x1xf32>
    %181 = arith.divf %179, %180 : vector<32x1xf32>
    %182 = vector.broadcast %181 : vector<32x1xf32> to vector<32x32xf32>
    %183 = arith.subf %177, %182 : vector<32x32xf32>
    %184 = arith.mulf %183, %183 : vector<32x32xf32>
    %cst_54 = arith.constant dense<0.000000e+00> : vector<32xf32>
    %185 = vector.multi_reduction <add>, %184, %cst_54 [1] : vector<32x32xf32> to vector<32xf32>
    %186 = vector.shape_cast %185 : vector<32xf32> to vector<32x1xf32>
    %cst_55 = arith.constant 3.200000e+01 : f32
    %187 = vector.broadcast %cst_55 : f32 to vector<32x1xf32>
    %188 = arith.divf %186, %187 : vector<32x1xf32>
    %cst_56 = arith.constant 9.99999974E-6 : f32
    %189 = vector.broadcast %cst_56 : f32 to vector<32x1xf32>
    %190 = arith.addf %188, %189 : vector<32x1xf32>
    %191 = math.rsqrt %190 : vector<32x1xf32>
    %192 = vector.broadcast %191 : vector<32x1xf32> to vector<32x32xf32>
    %193 = arith.mulf %183, %192 : vector<32x32xf32>
    %c96 = arith.constant 96 : index
    %c0_57 = arith.constant 0 : index
    %194 = vector.load %arg3[%c96, %c0_57] : memref<256x128xf32, #tpu.memory_space<vmem>>, vector<1x32xf32>
    %195 = vector.broadcast %194 : vector<1x32xf32> to vector<32x32xf32>
    %196 = arith.mulf %193, %195 : vector<32x32xf32>
    %c104 = arith.constant 104 : index
    %c0_58 = arith.constant 0 : index
    %197 = vector.load %arg3[%c104, %c0_58] : memref<256x128xf32, #tpu.memory_space<vmem>>, vector<1x32xf32>
    %198 = vector.broadcast %197 : vector<1x32xf32> to vector<32x32xf32>
    %199 = arith.addf %196, %198 : vector<32x32xf32>
    %c32 = arith.constant 32 : index
    %c0_59 = arith.constant 0 : index
    %200 = vector.load %arg3[%c32, %c0_59] : memref<256x128xf32, #tpu.memory_space<vmem>>, vector<8x32xf32>
    %201 = tpu.concatenate %200, %200 in 0 : vector<8x32xf32>, vector<8x32xf32> -> vector<16x32xf32>
    %cst_60 = arith.constant 0.000000e+00 : f32
    %202 = vector.broadcast %cst_60 : f32 to vector<16x32xf32>
    %203 = arith.addf %202, %201 : vector<16x32xf32>
    %c432 = arith.constant 432 : index
    %c0_61 = arith.constant 0 : index
    %204 = vector.load %arg2[%c432, %c0_61] : memref<848x128xbf16, #tpu.memory_space<vmem>>, vector<32x64xbf16>
    %205 = arith.truncf %203 : vector<16x32xf32> to vector<16x32xbf16>
    %cst_62 = arith.constant dense<0.000000e+00> : vector<16x64xf32>
    %206 = tpu.matmul %205, %204, %cst_62 {dimension_numbers = #tpu.dot_dimension_numbers<[1], [0], [0], [1], [0, 0, 1, 1], [], []>} : vector<16x32xbf16>, vector<32x64xbf16>, vector<16x64xf32> -> vector<16x64xf32>
    %c112 = arith.constant 112 : index
    %c0_63 = arith.constant 0 : index
    %207 = vector.load %arg3[%c112, %c0_63] : memref<256x128xf32, #tpu.memory_space<vmem>>, vector<1x64xf32>
    %208 = vector.broadcast %207 : vector<1x64xf32> to vector<16x64xf32>
    %209 = arith.addf %206, %208 : vector<16x64xf32>
    %c464 = arith.constant 464 : index
    %c0_64 = arith.constant 0 : index
    %210 = vector.load %arg2[%c464, %c0_64] : memref<848x128xbf16, #tpu.memory_space<vmem>>, vector<32x32xbf16>
    %211 = arith.truncf %202 : vector<16x32xf32> to vector<16x32xbf16>
    %cst_65 = arith.constant dense<0.000000e+00> : vector<16x32xf32>
    %212 = tpu.matmul %211, %210, %cst_65 {dimension_numbers = #tpu.dot_dimension_numbers<[1], [0], [0], [1], [0, 0, 1, 1], [], []>} : vector<16x32xbf16>, vector<32x32xbf16>, vector<16x32xf32> -> vector<16x32xf32>
    %c120 = arith.constant 120 : index
    %c0_66 = arith.constant 0 : index
    %213 = vector.load %arg3[%c120, %c0_66] : memref<256x128xf32, #tpu.memory_space<vmem>>, vector<1x32xf32>
    %214 = vector.broadcast %213 : vector<1x32xf32> to vector<16x32xf32>
    %215 = arith.addf %212, %214 : vector<16x32xf32>
    %216 = vector.extract_strided_slice %209 {offsets = [0, 0], sizes = [16, 32], strides = [1, 1]} : vector<16x64xf32> to vector<16x32xf32>
    %217 = vector.extract_strided_slice %209 {offsets = [0, 32], sizes = [16, 32], strides = [1, 1]} : vector<16x64xf32> to vector<16x32xf32>
    %218 = vector.extract_strided_slice %216 {offsets = [0, 0], sizes = [8, 32], strides = [1, 1]} : vector<16x32xf32> to vector<8x32xf32>
    %219 = vector.extract_strided_slice %217 {offsets = [0, 0], sizes = [8, 32], strides = [1, 1]} : vector<16x32xf32> to vector<8x32xf32>
    %220 = vector.extract_strided_slice %218 {offsets = [0, 0], sizes = [8, 8], strides = [1, 1]} : vector<8x32xf32> to vector<8x8xf32>
    %221 = vector.extract_strided_slice %219 {offsets = [0, 0], sizes = [8, 8], strides = [1, 1]} : vector<8x32xf32> to vector<8x8xf32>
    %222 = arith.truncf %220 : vector<8x8xf32> to vector<8x8xbf16>
    %223 = arith.truncf %221 : vector<8x8xf32> to vector<8x8xbf16>
    %cst_67 = arith.constant dense<0.000000e+00> : vector<8x8xf32>
    %224 = tpu.matmul %222, %223, %cst_67 {dimension_numbers = #tpu.dot_dimension_numbers<[1], [1], [0], [0], [0, 0, 1, 0], [], []>} : vector<8x8xbf16>, vector<8x8xbf16>, vector<8x8xf32> -> vector<8x8xf32>
    %225 = vector.extract_strided_slice %218 {offsets = [0, 8], sizes = [8, 8], strides = [1, 1]} : vector<8x32xf32> to vector<8x8xf32>
    %226 = vector.extract_strided_slice %219 {offsets = [0, 8], sizes = [8, 8], strides = [1, 1]} : vector<8x32xf32> to vector<8x8xf32>
    %227 = arith.truncf %225 : vector<8x8xf32> to vector<8x8xbf16>
    %228 = arith.truncf %226 : vector<8x8xf32> to vector<8x8xbf16>
    %cst_68 = arith.constant dense<0.000000e+00> : vector<8x8xf32>
    %229 = tpu.matmul %227, %228, %cst_68 {dimension_numbers = #tpu.dot_dimension_numbers<[1], [1], [0], [0], [0, 0, 1, 0], [], []>} : vector<8x8xbf16>, vector<8x8xbf16>, vector<8x8xf32> -> vector<8x8xf32>
    %230 = vector.extract_strided_slice %218 {offsets = [0, 16], sizes = [8, 8], strides = [1, 1]} : vector<8x32xf32> to vector<8x8xf32>
    %231 = vector.extract_strided_slice %219 {offsets = [0, 16], sizes = [8, 8], strides = [1, 1]} : vector<8x32xf32> to vector<8x8xf32>
    %232 = arith.truncf %230 : vector<8x8xf32> to vector<8x8xbf16>
    %233 = arith.truncf %231 : vector<8x8xf32> to vector<8x8xbf16>
    %cst_69 = arith.constant dense<0.000000e+00> : vector<8x8xf32>
    %234 = tpu.matmul %232, %233, %cst_69 {dimension_numbers = #tpu.dot_dimension_numbers<[1], [1], [0], [0], [0, 0, 1, 0], [], []>} : vector<8x8xbf16>, vector<8x8xbf16>, vector<8x8xf32> -> vector<8x8xf32>
    %235 = vector.extract_strided_slice %218 {offsets = [0, 24], sizes = [8, 8], strides = [1, 1]} : vector<8x32xf32> to vector<8x8xf32>
    %236 = vector.extract_strided_slice %219 {offsets = [0, 24], sizes = [8, 8], strides = [1, 1]} : vector<8x32xf32> to vector<8x8xf32>
    %237 = arith.truncf %235 : vector<8x8xf32> to vector<8x8xbf16>
    %238 = arith.truncf %236 : vector<8x8xf32> to vector<8x8xbf16>
    %cst_70 = arith.constant dense<0.000000e+00> : vector<8x8xf32>
    %239 = tpu.matmul %237, %238, %cst_70 {dimension_numbers = #tpu.dot_dimension_numbers<[1], [1], [0], [0], [0, 0, 1, 0], [], []>} : vector<8x8xbf16>, vector<8x8xbf16>, vector<8x8xf32> -> vector<8x8xf32>
    %240 = vector.extract_strided_slice %216 {offsets = [8, 0], sizes = [8, 32], strides = [1, 1]} : vector<16x32xf32> to vector<8x32xf32>
    %241 = vector.extract_strided_slice %217 {offsets = [8, 0], sizes = [8, 32], strides = [1, 1]} : vector<16x32xf32> to vector<8x32xf32>
    %242 = vector.extract_strided_slice %240 {offsets = [0, 0], sizes = [8, 8], strides = [1, 1]} : vector<8x32xf32> to vector<8x8xf32>
    %243 = vector.extract_strided_slice %241 {offsets = [0, 0], sizes = [8, 8], strides = [1, 1]} : vector<8x32xf32> to vector<8x8xf32>
    %244 = arith.truncf %242 : vector<8x8xf32> to vector<8x8xbf16>
    %245 = arith.truncf %243 : vector<8x8xf32> to vector<8x8xbf16>
    %cst_71 = arith.constant dense<0.000000e+00> : vector<8x8xf32>
    %246 = tpu.matmul %244, %245, %cst_71 {dimension_numbers = #tpu.dot_dimension_numbers<[1], [1], [0], [0], [0, 0, 1, 0], [], []>} : vector<8x8xbf16>, vector<8x8xbf16>, vector<8x8xf32> -> vector<8x8xf32>
    %247 = vector.extract_strided_slice %240 {offsets = [0, 8], sizes = [8, 8], strides = [1, 1]} : vector<8x32xf32> to vector<8x8xf32>
    %248 = vector.extract_strided_slice %241 {offsets = [0, 8], sizes = [8, 8], strides = [1, 1]} : vector<8x32xf32> to vector<8x8xf32>
    %249 = arith.truncf %247 : vector<8x8xf32> to vector<8x8xbf16>
    %250 = arith.truncf %248 : vector<8x8xf32> to vector<8x8xbf16>
    %cst_72 = arith.constant dense<0.000000e+00> : vector<8x8xf32>
    %251 = tpu.matmul %249, %250, %cst_72 {dimension_numbers = #tpu.dot_dimension_numbers<[1], [1], [0], [0], [0, 0, 1, 0], [], []>} : vector<8x8xbf16>, vector<8x8xbf16>, vector<8x8xf32> -> vector<8x8xf32>
    %252 = vector.extract_strided_slice %240 {offsets = [0, 16], sizes = [8, 8], strides = [1, 1]} : vector<8x32xf32> to vector<8x8xf32>
    %253 = vector.extract_strided_slice %241 {offsets = [0, 16], sizes = [8, 8], strides = [1, 1]} : vector<8x32xf32> to vector<8x8xf32>
    %254 = arith.truncf %252 : vector<8x8xf32> to vector<8x8xbf16>
    %255 = arith.truncf %253 : vector<8x8xf32> to vector<8x8xbf16>
    %cst_73 = arith.constant dense<0.000000e+00> : vector<8x8xf32>
    %256 = tpu.matmul %254, %255, %cst_73 {dimension_numbers = #tpu.dot_dimension_numbers<[1], [1], [0], [0], [0, 0, 1, 0], [], []>} : vector<8x8xbf16>, vector<8x8xbf16>, vector<8x8xf32> -> vector<8x8xf32>
    %257 = vector.extract_strided_slice %240 {offsets = [0, 24], sizes = [8, 8], strides = [1, 1]} : vector<8x32xf32> to vector<8x8xf32>
    %258 = vector.extract_strided_slice %241 {offsets = [0, 24], sizes = [8, 8], strides = [1, 1]} : vector<8x32xf32> to vector<8x8xf32>
    %259 = arith.truncf %257 : vector<8x8xf32> to vector<8x8xbf16>
    %260 = arith.truncf %258 : vector<8x8xf32> to vector<8x8xbf16>
    %cst_74 = arith.constant dense<0.000000e+00> : vector<8x8xf32>
    %261 = tpu.matmul %259, %260, %cst_74 {dimension_numbers = #tpu.dot_dimension_numbers<[1], [1], [0], [0], [0, 0, 1, 0], [], []>} : vector<8x8xbf16>, vector<8x8xbf16>, vector<8x8xf32> -> vector<8x8xf32>
    %262 = tpu.concatenate %224, %229, %234, %239, %246, %251, %256, %261 in 0 : vector<8x8xf32>, vector<8x8xf32>, vector<8x8xf32>, vector<8x8xf32>, vector<8x8xf32>, vector<8x8xf32>, vector<8x8xf32>, vector<8x8xf32> -> vector<64x8xf32>
    %cst_75 = arith.constant 0.353553385 : f32
    %263 = vector.broadcast %cst_75 : f32 to vector<64x8xf32>
    %264 = arith.mulf %262, %263 : vector<64x8xf32>
    %cst_76 = arith.constant dense<0xFF800000> : vector<64xf32>
    %265 = vector.multi_reduction <maximumf>, %264, %cst_76 [1] : vector<64x8xf32> to vector<64xf32>
    %266 = vector.shape_cast %265 : vector<64xf32> to vector<64x1xf32>
    %267 = vector.broadcast %266 : vector<64x1xf32> to vector<64x8xf32>
    %268 = arith.subf %264, %267 : vector<64x8xf32>
    %269 = math.exp %268 : vector<64x8xf32>
    %cst_77 = arith.constant dense<0.000000e+00> : vector<64xf32>
    %270 = vector.multi_reduction <add>, %269, %cst_77 [1] : vector<64x8xf32> to vector<64xf32>
    %271 = vector.shape_cast %270 : vector<64xf32> to vector<64x1xf32>
    %272 = tpu.reciprocal %271 {approx = true} : vector<64x1xf32> -> vector<64x1xf32>
    %273 = vector.broadcast %272 : vector<64x1xf32> to vector<64x8xf32>
    %274 = arith.mulf %269, %273 : vector<64x8xf32>
    %275 = vector.extract_strided_slice %215 {offsets = [0, 0], sizes = [8, 32], strides = [1, 1]} : vector<16x32xf32> to vector<8x32xf32>
    %276 = vector.extract_strided_slice %274 {offsets = [0, 0], sizes = [8, 8], strides = [1, 1]} : vector<64x8xf32> to vector<8x8xf32>
    %277 = vector.extract_strided_slice %275 {offsets = [0, 0], sizes = [8, 8], strides = [1, 1]} : vector<8x32xf32> to vector<8x8xf32>
    %278 = arith.truncf %276 : vector<8x8xf32> to vector<8x8xbf16>
    %279 = arith.truncf %277 : vector<8x8xf32> to vector<8x8xbf16>
    %cst_78 = arith.constant dense<0.000000e+00> : vector<8x8xf32>
    %280 = tpu.matmul %278, %279, %cst_78 {dimension_numbers = #tpu.dot_dimension_numbers<[1], [0], [0], [1], [0, 0, 1, 1], [], []>} : vector<8x8xbf16>, vector<8x8xbf16>, vector<8x8xf32> -> vector<8x8xf32>
    %281 = vector.extract_strided_slice %274 {offsets = [8, 0], sizes = [8, 8], strides = [1, 1]} : vector<64x8xf32> to vector<8x8xf32>
    %282 = vector.extract_strided_slice %275 {offsets = [0, 8], sizes = [8, 8], strides = [1, 1]} : vector<8x32xf32> to vector<8x8xf32>
    %283 = arith.truncf %281 : vector<8x8xf32> to vector<8x8xbf16>
    %284 = arith.truncf %282 : vector<8x8xf32> to vector<8x8xbf16>
    %cst_79 = arith.constant dense<0.000000e+00> : vector<8x8xf32>
    %285 = tpu.matmul %283, %284, %cst_79 {dimension_numbers = #tpu.dot_dimension_numbers<[1], [0], [0], [1], [0, 0, 1, 1], [], []>} : vector<8x8xbf16>, vector<8x8xbf16>, vector<8x8xf32> -> vector<8x8xf32>
    %286 = vector.extract_strided_slice %274 {offsets = [16, 0], sizes = [8, 8], strides = [1, 1]} : vector<64x8xf32> to vector<8x8xf32>
    %287 = vector.extract_strided_slice %275 {offsets = [0, 16], sizes = [8, 8], strides = [1, 1]} : vector<8x32xf32> to vector<8x8xf32>
    %288 = arith.truncf %286 : vector<8x8xf32> to vector<8x8xbf16>
    %289 = arith.truncf %287 : vector<8x8xf32> to vector<8x8xbf16>
    %cst_80 = arith.constant dense<0.000000e+00> : vector<8x8xf32>
    %290 = tpu.matmul %288, %289, %cst_80 {dimension_numbers = #tpu.dot_dimension_numbers<[1], [0], [0], [1], [0, 0, 1, 1], [], []>} : vector<8x8xbf16>, vector<8x8xbf16>, vector<8x8xf32> -> vector<8x8xf32>
    %291 = vector.extract_strided_slice %274 {offsets = [24, 0], sizes = [8, 8], strides = [1, 1]} : vector<64x8xf32> to vector<8x8xf32>
    %292 = vector.extract_strided_slice %275 {offsets = [0, 24], sizes = [8, 8], strides = [1, 1]} : vector<8x32xf32> to vector<8x8xf32>
    %293 = arith.truncf %291 : vector<8x8xf32> to vector<8x8xbf16>
    %294 = arith.truncf %292 : vector<8x8xf32> to vector<8x8xbf16>
    %cst_81 = arith.constant dense<0.000000e+00> : vector<8x8xf32>
    %295 = tpu.matmul %293, %294, %cst_81 {dimension_numbers = #tpu.dot_dimension_numbers<[1], [0], [0], [1], [0, 0, 1, 1], [], []>} : vector<8x8xbf16>, vector<8x8xbf16>, vector<8x8xf32> -> vector<8x8xf32>
    %296 = tpu.concatenate %280, %285, %290, %295 in 1 : vector<8x8xf32>, vector<8x8xf32>, vector<8x8xf32>, vector<8x8xf32> -> vector<8x32xf32>
    %297 = vector.extract_strided_slice %215 {offsets = [8, 0], sizes = [8, 32], strides = [1, 1]} : vector<16x32xf32> to vector<8x32xf32>
    %298 = vector.extract_strided_slice %274 {offsets = [32, 0], sizes = [8, 8], strides = [1, 1]} : vector<64x8xf32> to vector<8x8xf32>
    %299 = vector.extract_strided_slice %297 {offsets = [0, 0], sizes = [8, 8], strides = [1, 1]} : vector<8x32xf32> to vector<8x8xf32>
    %300 = arith.truncf %298 : vector<8x8xf32> to vector<8x8xbf16>
    %301 = arith.truncf %299 : vector<8x8xf32> to vector<8x8xbf16>
    %cst_82 = arith.constant dense<0.000000e+00> : vector<8x8xf32>
    %302 = tpu.matmul %300, %301, %cst_82 {dimension_numbers = #tpu.dot_dimension_numbers<[1], [0], [0], [1], [0, 0, 1, 1], [], []>} : vector<8x8xbf16>, vector<8x8xbf16>, vector<8x8xf32> -> vector<8x8xf32>
    %303 = vector.extract_strided_slice %274 {offsets = [40, 0], sizes = [8, 8], strides = [1, 1]} : vector<64x8xf32> to vector<8x8xf32>
    %304 = vector.extract_strided_slice %297 {offsets = [0, 8], sizes = [8, 8], strides = [1, 1]} : vector<8x32xf32> to vector<8x8xf32>
    %305 = arith.truncf %303 : vector<8x8xf32> to vector<8x8xbf16>
    %306 = arith.truncf %304 : vector<8x8xf32> to vector<8x8xbf16>
    %cst_83 = arith.constant dense<0.000000e+00> : vector<8x8xf32>
    %307 = tpu.matmul %305, %306, %cst_83 {dimension_numbers = #tpu.dot_dimension_numbers<[1], [0], [0], [1], [0, 0, 1, 1], [], []>} : vector<8x8xbf16>, vector<8x8xbf16>, vector<8x8xf32> -> vector<8x8xf32>
    %308 = vector.extract_strided_slice %274 {offsets = [48, 0], sizes = [8, 8], strides = [1, 1]} : vector<64x8xf32> to vector<8x8xf32>
    %309 = vector.extract_strided_slice %297 {offsets = [0, 16], sizes = [8, 8], strides = [1, 1]} : vector<8x32xf32> to vector<8x8xf32>
    %310 = arith.truncf %308 : vector<8x8xf32> to vector<8x8xbf16>
    %311 = arith.truncf %309 : vector<8x8xf32> to vector<8x8xbf16>
    %cst_84 = arith.constant dense<0.000000e+00> : vector<8x8xf32>
    %312 = tpu.matmul %310, %311, %cst_84 {dimension_numbers = #tpu.dot_dimension_numbers<[1], [0], [0], [1], [0, 0, 1, 1], [], []>} : vector<8x8xbf16>, vector<8x8xbf16>, vector<8x8xf32> -> vector<8x8xf32>
    %313 = vector.extract_strided_slice %274 {offsets = [56, 0], sizes = [8, 8], strides = [1, 1]} : vector<64x8xf32> to vector<8x8xf32>
    %314 = vector.extract_strided_slice %297 {offsets = [0, 24], sizes = [8, 8], strides = [1, 1]} : vector<8x32xf32> to vector<8x8xf32>
    %315 = arith.truncf %313 : vector<8x8xf32> to vector<8x8xbf16>
    %316 = arith.truncf %314 : vector<8x8xf32> to vector<8x8xbf16>
    %cst_85 = arith.constant dense<0.000000e+00> : vector<8x8xf32>
    %317 = tpu.matmul %315, %316, %cst_85 {dimension_numbers = #tpu.dot_dimension_numbers<[1], [0], [0], [1], [0, 0, 1, 1], [], []>} : vector<8x8xbf16>, vector<8x8xbf16>, vector<8x8xf32> -> vector<8x8xf32>
    %318 = tpu.concatenate %302, %307, %312, %317 in 1 : vector<8x8xf32>, vector<8x8xf32>, vector<8x8xf32>, vector<8x8xf32> -> vector<8x32xf32>
    %319 = tpu.concatenate %296, %318 in 0 : vector<8x32xf32>, vector<8x32xf32> -> vector<16x32xf32>
    %c496 = arith.constant 496 : index
    %c0_86 = arith.constant 0 : index
    %320 = vector.load %arg2[%c496, %c0_86] : memref<848x128xbf16, #tpu.memory_space<vmem>>, vector<32x32xbf16>
    %321 = arith.truncf %319 : vector<16x32xf32> to vector<16x32xbf16>
    %cst_87 = arith.constant dense<0.000000e+00> : vector<16x32xf32>
    %322 = tpu.matmul %321, %320, %cst_87 {dimension_numbers = #tpu.dot_dimension_numbers<[1], [0], [0], [1], [0, 0, 1, 1], [], []>} : vector<16x32xbf16>, vector<32x32xbf16>, vector<16x32xf32> -> vector<16x32xf32>
    %c128 = arith.constant 128 : index
    %c0_88 = arith.constant 0 : index
    %323 = vector.load %arg3[%c128, %c0_88] : memref<256x128xf32, #tpu.memory_space<vmem>>, vector<1x32xf32>
    %324 = vector.broadcast %323 : vector<1x32xf32> to vector<16x32xf32>
    %325 = arith.addf %322, %324 : vector<16x32xf32>
    %326 = arith.addf %202, %325 : vector<16x32xf32>
    %cst_89 = arith.constant dense<0.000000e+00> : vector<16xf32>
    %327 = vector.multi_reduction <add>, %326, %cst_89 [1] : vector<16x32xf32> to vector<16xf32>
    %328 = vector.shape_cast %327 : vector<16xf32> to vector<16x1xf32>
    %cst_90 = arith.constant 3.200000e+01 : f32
    %329 = vector.broadcast %cst_90 : f32 to vector<16x1xf32>
    %330 = arith.divf %328, %329 : vector<16x1xf32>
    %331 = vector.broadcast %330 : vector<16x1xf32> to vector<16x32xf32>
    %332 = arith.subf %326, %331 : vector<16x32xf32>
    %333 = arith.mulf %332, %332 : vector<16x32xf32>
    %cst_91 = arith.constant dense<0.000000e+00> : vector<16xf32>
    %334 = vector.multi_reduction <add>, %333, %cst_91 [1] : vector<16x32xf32> to vector<16xf32>
    %335 = vector.shape_cast %334 : vector<16xf32> to vector<16x1xf32>
    %cst_92 = arith.constant 3.200000e+01 : f32
    %336 = vector.broadcast %cst_92 : f32 to vector<16x1xf32>
    %337 = arith.divf %335, %336 : vector<16x1xf32>
    %cst_93 = arith.constant 9.99999974E-6 : f32
    %338 = vector.broadcast %cst_93 : f32 to vector<16x1xf32>
    %339 = arith.addf %337, %338 : vector<16x1xf32>
    %340 = math.rsqrt %339 : vector<16x1xf32>
    %341 = vector.broadcast %340 : vector<16x1xf32> to vector<16x32xf32>
    %342 = arith.mulf %332, %341 : vector<16x32xf32>
    %c168 = arith.constant 168 : index
    %c0_94 = arith.constant 0 : index
    %343 = vector.load %arg3[%c168, %c0_94] : memref<256x128xf32, #tpu.memory_space<vmem>>, vector<1x32xf32>
    %344 = vector.broadcast %343 : vector<1x32xf32> to vector<16x32xf32>
    %345 = arith.mulf %342, %344 : vector<16x32xf32>
    %c176 = arith.constant 176 : index
    %c0_95 = arith.constant 0 : index
    %346 = vector.load %arg3[%c176, %c0_95] : memref<256x128xf32, #tpu.memory_space<vmem>>, vector<1x32xf32>
    %347 = vector.broadcast %346 : vector<1x32xf32> to vector<16x32xf32>
    %348 = arith.addf %345, %347 : vector<16x32xf32>
    %349 = arith.addf %348, %201 : vector<16x32xf32>
    %c528 = arith.constant 528 : index
    %c0_96 = arith.constant 0 : index
    %350 = vector.load %arg2[%c528, %c0_96] : memref<848x128xbf16, #tpu.memory_space<vmem>>, vector<32x32xbf16>
    %351 = arith.truncf %349 : vector<16x32xf32> to vector<16x32xbf16>
    %cst_97 = arith.constant dense<0.000000e+00> : vector<16x32xf32>
    %352 = tpu.matmul %351, %350, %cst_97 {dimension_numbers = #tpu.dot_dimension_numbers<[1], [0], [0], [1], [0, 0, 1, 1], [], []>} : vector<16x32xbf16>, vector<32x32xbf16>, vector<16x32xf32> -> vector<16x32xf32>
    %c136 = arith.constant 136 : index
    %c0_98 = arith.constant 0 : index
    %353 = vector.load %arg3[%c136, %c0_98] : memref<256x128xf32, #tpu.memory_space<vmem>>, vector<1x32xf32>
    %354 = vector.broadcast %353 : vector<1x32xf32> to vector<16x32xf32>
    %355 = arith.addf %352, %354 : vector<16x32xf32>
    %356 = arith.addf %199, %16 : vector<32x32xf32>
    %c560 = arith.constant 560 : index
    %c0_99 = arith.constant 0 : index
    %357 = vector.load %arg2[%c560, %c0_99] : memref<848x128xbf16, #tpu.memory_space<vmem>>, vector<32x32xbf16>
    %358 = arith.truncf %356 : vector<32x32xf32> to vector<32x32xbf16>
    %cst_100 = arith.constant dense<0.000000e+00> : vector<32x32xf32>
    %359 = tpu.matmul %358, %357, %cst_100 {dimension_numbers = #tpu.dot_dimension_numbers<[1], [0], [0], [1], [0, 0, 1, 1], [], []>} : vector<32x32xbf16>, vector<32x32xbf16>, vector<32x32xf32> -> vector<32x32xf32>
    %c144 = arith.constant 144 : index
    %c0_101 = arith.constant 0 : index
    %360 = vector.load %arg3[%c144, %c0_101] : memref<256x128xf32, #tpu.memory_space<vmem>>, vector<1x32xf32>
    %361 = vector.broadcast %360 : vector<1x32xf32> to vector<32x32xf32>
    %362 = arith.addf %359, %361 : vector<32x32xf32>
    %c592 = arith.constant 592 : index
    %c0_102 = arith.constant 0 : index
    %363 = vector.load %arg2[%c592, %c0_102] : memref<848x128xbf16, #tpu.memory_space<vmem>>, vector<32x32xbf16>
    %364 = arith.truncf %199 : vector<32x32xf32> to vector<32x32xbf16>
    %cst_103 = arith.constant dense<0.000000e+00> : vector<32x32xf32>
    %365 = tpu.matmul %364, %363, %cst_103 {dimension_numbers = #tpu.dot_dimension_numbers<[1], [0], [0], [1], [0, 0, 1, 1], [], []>} : vector<32x32xbf16>, vector<32x32xbf16>, vector<32x32xf32> -> vector<32x32xf32>
    %c152 = arith.constant 152 : index
    %c0_104 = arith.constant 0 : index
    %366 = vector.load %arg3[%c152, %c0_104] : memref<256x128xf32, #tpu.memory_space<vmem>>, vector<1x32xf32>
    %367 = vector.broadcast %366 : vector<1x32xf32> to vector<32x32xf32>
    %368 = arith.addf %365, %367 : vector<32x32xf32>
    %369 = vector.extract_strided_slice %355 {offsets = [0, 0], sizes = [8, 32], strides = [1, 1]} : vector<16x32xf32> to vector<8x32xf32>
    %370 = vector.extract_strided_slice %362 {offsets = [0, 0], sizes = [16, 32], strides = [1, 1]} : vector<32x32xf32> to vector<16x32xf32>
    %371 = vector.extract_strided_slice %369 {offsets = [0, 0], sizes = [8, 8], strides = [1, 1]} : vector<8x32xf32> to vector<8x8xf32>
    %372 = vector.extract_strided_slice %370 {offsets = [0, 0], sizes = [16, 8], strides = [1, 1]} : vector<16x32xf32> to vector<16x8xf32>
    %373 = arith.truncf %371 : vector<8x8xf32> to vector<8x8xbf16>
    %374 = arith.truncf %372 : vector<16x8xf32> to vector<16x8xbf16>
    %cst_105 = arith.constant dense<0.000000e+00> : vector<8x16xf32>
    %375 = tpu.matmul %373, %374, %cst_105 {dimension_numbers = #tpu.dot_dimension_numbers<[1], [1], [0], [0], [0, 0, 1, 0], [], []>} : vector<8x8xbf16>, vector<16x8xbf16>, vector<8x16xf32> -> vector<8x16xf32>
    %376 = vector.extract_strided_slice %369 {offsets = [0, 8], sizes = [8, 8], strides = [1, 1]} : vector<8x32xf32> to vector<8x8xf32>
    %377 = vector.extract_strided_slice %370 {offsets = [0, 8], sizes = [16, 8], strides = [1, 1]} : vector<16x32xf32> to vector<16x8xf32>
    %378 = arith.truncf %376 : vector<8x8xf32> to vector<8x8xbf16>
    %379 = arith.truncf %377 : vector<16x8xf32> to vector<16x8xbf16>
    %cst_106 = arith.constant dense<0.000000e+00> : vector<8x16xf32>
    %380 = tpu.matmul %378, %379, %cst_106 {dimension_numbers = #tpu.dot_dimension_numbers<[1], [1], [0], [0], [0, 0, 1, 0], [], []>} : vector<8x8xbf16>, vector<16x8xbf16>, vector<8x16xf32> -> vector<8x16xf32>
    %381 = vector.extract_strided_slice %369 {offsets = [0, 16], sizes = [8, 8], strides = [1, 1]} : vector<8x32xf32> to vector<8x8xf32>
    %382 = vector.extract_strided_slice %370 {offsets = [0, 16], sizes = [16, 8], strides = [1, 1]} : vector<16x32xf32> to vector<16x8xf32>
    %383 = arith.truncf %381 : vector<8x8xf32> to vector<8x8xbf16>
    %384 = arith.truncf %382 : vector<16x8xf32> to vector<16x8xbf16>
    %cst_107 = arith.constant dense<0.000000e+00> : vector<8x16xf32>
    %385 = tpu.matmul %383, %384, %cst_107 {dimension_numbers = #tpu.dot_dimension_numbers<[1], [1], [0], [0], [0, 0, 1, 0], [], []>} : vector<8x8xbf16>, vector<16x8xbf16>, vector<8x16xf32> -> vector<8x16xf32>
    %386 = vector.extract_strided_slice %369 {offsets = [0, 24], sizes = [8, 8], strides = [1, 1]} : vector<8x32xf32> to vector<8x8xf32>
    %387 = vector.extract_strided_slice %370 {offsets = [0, 24], sizes = [16, 8], strides = [1, 1]} : vector<16x32xf32> to vector<16x8xf32>
    %388 = arith.truncf %386 : vector<8x8xf32> to vector<8x8xbf16>
    %389 = arith.truncf %387 : vector<16x8xf32> to vector<16x8xbf16>
    %cst_108 = arith.constant dense<0.000000e+00> : vector<8x16xf32>
    %390 = tpu.matmul %388, %389, %cst_108 {dimension_numbers = #tpu.dot_dimension_numbers<[1], [1], [0], [0], [0, 0, 1, 0], [], []>} : vector<8x8xbf16>, vector<16x8xbf16>, vector<8x16xf32> -> vector<8x16xf32>
    %391 = vector.extract_strided_slice %355 {offsets = [8, 0], sizes = [8, 32], strides = [1, 1]} : vector<16x32xf32> to vector<8x32xf32>
    %392 = vector.extract_strided_slice %362 {offsets = [16, 0], sizes = [16, 32], strides = [1, 1]} : vector<32x32xf32> to vector<16x32xf32>
    %393 = vector.extract_strided_slice %391 {offsets = [0, 0], sizes = [8, 8], strides = [1, 1]} : vector<8x32xf32> to vector<8x8xf32>
    %394 = vector.extract_strided_slice %392 {offsets = [0, 0], sizes = [16, 8], strides = [1, 1]} : vector<16x32xf32> to vector<16x8xf32>
    %395 = arith.truncf %393 : vector<8x8xf32> to vector<8x8xbf16>
    %396 = arith.truncf %394 : vector<16x8xf32> to vector<16x8xbf16>
    %cst_109 = arith.constant dense<0.000000e+00> : vector<8x16xf32>
    %397 = tpu.matmul %395, %396, %cst_109 {dimension_numbers = #tpu.dot_dimension_numbers<[1], [1], [0], [0], [0, 0, 1, 0], [], []>} : vector<8x8xbf16>, vector<16x8xbf16>, vector<8x16xf32> -> vector<8x16xf32>
    %398 = vector.extract_strided_slice %391 {offsets = [0, 8], sizes = [8, 8], strides = [1, 1]} : vector<8x32xf32> to vector<8x8xf32>
    %399 = vector.extract_strided_slice %392 {offsets = [0, 8], sizes = [16, 8], strides = [1, 1]} : vector<16x32xf32> to vector<16x8xf32>
    %400 = arith.truncf %398 : vector<8x8xf32> to vector<8x8xbf16>
    %401 = arith.truncf %399 : vector<16x8xf32> to vector<16x8xbf16>
    %cst_110 = arith.constant dense<0.000000e+00> : vector<8x16xf32>
    %402 = tpu.matmul %400, %401, %cst_110 {dimension_numbers = #tpu.dot_dimension_numbers<[1], [1], [0], [0], [0, 0, 1, 0], [], []>} : vector<8x8xbf16>, vector<16x8xbf16>, vector<8x16xf32> -> vector<8x16xf32>
    %403 = vector.extract_strided_slice %391 {offsets = [0, 16], sizes = [8, 8], strides = [1, 1]} : vector<8x32xf32> to vector<8x8xf32>
    %404 = vector.extract_strided_slice %392 {offsets = [0, 16], sizes = [16, 8], strides = [1, 1]} : vector<16x32xf32> to vector<16x8xf32>
    %405 = arith.truncf %403 : vector<8x8xf32> to vector<8x8xbf16>
    %406 = arith.truncf %404 : vector<16x8xf32> to vector<16x8xbf16>
    %cst_111 = arith.constant dense<0.000000e+00> : vector<8x16xf32>
    %407 = tpu.matmul %405, %406, %cst_111 {dimension_numbers = #tpu.dot_dimension_numbers<[1], [1], [0], [0], [0, 0, 1, 0], [], []>} : vector<8x8xbf16>, vector<16x8xbf16>, vector<8x16xf32> -> vector<8x16xf32>
    %408 = vector.extract_strided_slice %391 {offsets = [0, 24], sizes = [8, 8], strides = [1, 1]} : vector<8x32xf32> to vector<8x8xf32>
    %409 = vector.extract_strided_slice %392 {offsets = [0, 24], sizes = [16, 8], strides = [1, 1]} : vector<16x32xf32> to vector<16x8xf32>
    %410 = arith.truncf %408 : vector<8x8xf32> to vector<8x8xbf16>
    %411 = arith.truncf %409 : vector<16x8xf32> to vector<16x8xbf16>
    %cst_112 = arith.constant dense<0.000000e+00> : vector<8x16xf32>
    %412 = tpu.matmul %410, %411, %cst_112 {dimension_numbers = #tpu.dot_dimension_numbers<[1], [1], [0], [0], [0, 0, 1, 0], [], []>} : vector<8x8xbf16>, vector<16x8xbf16>, vector<8x16xf32> -> vector<8x16xf32>
    %413 = tpu.concatenate %375, %380, %385, %390, %397, %402, %407, %412 in 0 : vector<8x16xf32>, vector<8x16xf32>, vector<8x16xf32>, vector<8x16xf32>, vector<8x16xf32>, vector<8x16xf32>, vector<8x16xf32>, vector<8x16xf32> -> vector<64x16xf32>
    %cst_113 = arith.constant 0.353553385 : f32
    %414 = vector.broadcast %cst_113 : f32 to vector<64x16xf32>
    %415 = arith.mulf %413, %414 : vector<64x16xf32>
    %cst_114 = arith.constant dense<0xFF800000> : vector<64xf32>
    %416 = vector.multi_reduction <maximumf>, %415, %cst_114 [1] : vector<64x16xf32> to vector<64xf32>
    %417 = vector.shape_cast %416 : vector<64xf32> to vector<64x1xf32>
    %418 = vector.broadcast %417 : vector<64x1xf32> to vector<64x16xf32>
    %419 = arith.subf %415, %418 : vector<64x16xf32>
    %420 = math.exp %419 : vector<64x16xf32>
    %cst_115 = arith.constant dense<0.000000e+00> : vector<64xf32>
    %421 = vector.multi_reduction <add>, %420, %cst_115 [1] : vector<64x16xf32> to vector<64xf32>
    %422 = vector.shape_cast %421 : vector<64xf32> to vector<64x1xf32>
    %423 = tpu.reciprocal %422 {approx = true} : vector<64x1xf32> -> vector<64x1xf32>
    %424 = vector.broadcast %423 : vector<64x1xf32> to vector<64x16xf32>
    %425 = arith.mulf %420, %424 : vector<64x16xf32>
    %426 = vector.extract_strided_slice %368 {offsets = [0, 0], sizes = [16, 32], strides = [1, 1]} : vector<32x32xf32> to vector<16x32xf32>
    %427 = vector.extract_strided_slice %425 {offsets = [0, 0], sizes = [8, 16], strides = [1, 1]} : vector<64x16xf32> to vector<8x16xf32>
    %428 = vector.extract_strided_slice %426 {offsets = [0, 0], sizes = [16, 8], strides = [1, 1]} : vector<16x32xf32> to vector<16x8xf32>
    %429 = arith.truncf %427 : vector<8x16xf32> to vector<8x16xbf16>
    %430 = arith.truncf %428 : vector<16x8xf32> to vector<16x8xbf16>
    %cst_116 = arith.constant dense<0.000000e+00> : vector<8x8xf32>
    %431 = tpu.matmul %429, %430, %cst_116 {dimension_numbers = #tpu.dot_dimension_numbers<[1], [0], [0], [1], [0, 0, 1, 1], [], []>} : vector<8x16xbf16>, vector<16x8xbf16>, vector<8x8xf32> -> vector<8x8xf32>
    %432 = vector.extract_strided_slice %425 {offsets = [8, 0], sizes = [8, 16], strides = [1, 1]} : vector<64x16xf32> to vector<8x16xf32>
    %433 = vector.extract_strided_slice %426 {offsets = [0, 8], sizes = [16, 8], strides = [1, 1]} : vector<16x32xf32> to vector<16x8xf32>
    %434 = arith.truncf %432 : vector<8x16xf32> to vector<8x16xbf16>
    %435 = arith.truncf %433 : vector<16x8xf32> to vector<16x8xbf16>
    %cst_117 = arith.constant dense<0.000000e+00> : vector<8x8xf32>
    %436 = tpu.matmul %434, %435, %cst_117 {dimension_numbers = #tpu.dot_dimension_numbers<[1], [0], [0], [1], [0, 0, 1, 1], [], []>} : vector<8x16xbf16>, vector<16x8xbf16>, vector<8x8xf32> -> vector<8x8xf32>
    %437 = vector.extract_strided_slice %425 {offsets = [16, 0], sizes = [8, 16], strides = [1, 1]} : vector<64x16xf32> to vector<8x16xf32>
    %438 = vector.extract_strided_slice %426 {offsets = [0, 16], sizes = [16, 8], strides = [1, 1]} : vector<16x32xf32> to vector<16x8xf32>
    %439 = arith.truncf %437 : vector<8x16xf32> to vector<8x16xbf16>
    %440 = arith.truncf %438 : vector<16x8xf32> to vector<16x8xbf16>
    %cst_118 = arith.constant dense<0.000000e+00> : vector<8x8xf32>
    %441 = tpu.matmul %439, %440, %cst_118 {dimension_numbers = #tpu.dot_dimension_numbers<[1], [0], [0], [1], [0, 0, 1, 1], [], []>} : vector<8x16xbf16>, vector<16x8xbf16>, vector<8x8xf32> -> vector<8x8xf32>
    %442 = vector.extract_strided_slice %425 {offsets = [24, 0], sizes = [8, 16], strides = [1, 1]} : vector<64x16xf32> to vector<8x16xf32>
    %443 = vector.extract_strided_slice %426 {offsets = [0, 24], sizes = [16, 8], strides = [1, 1]} : vector<16x32xf32> to vector<16x8xf32>
    %444 = arith.truncf %442 : vector<8x16xf32> to vector<8x16xbf16>
    %445 = arith.truncf %443 : vector<16x8xf32> to vector<16x8xbf16>
    %cst_119 = arith.constant dense<0.000000e+00> : vector<8x8xf32>
    %446 = tpu.matmul %444, %445, %cst_119 {dimension_numbers = #tpu.dot_dimension_numbers<[1], [0], [0], [1], [0, 0, 1, 1], [], []>} : vector<8x16xbf16>, vector<16x8xbf16>, vector<8x8xf32> -> vector<8x8xf32>
    %447 = tpu.concatenate %431, %436, %441, %446 in 1 : vector<8x8xf32>, vector<8x8xf32>, vector<8x8xf32>, vector<8x8xf32> -> vector<8x32xf32>
    %448 = vector.extract_strided_slice %368 {offsets = [16, 0], sizes = [16, 32], strides = [1, 1]} : vector<32x32xf32> to vector<16x32xf32>
    %449 = vector.extract_strided_slice %425 {offsets = [32, 0], sizes = [8, 16], strides = [1, 1]} : vector<64x16xf32> to vector<8x16xf32>
    %450 = vector.extract_strided_slice %448 {offsets = [0, 0], sizes = [16, 8], strides = [1, 1]} : vector<16x32xf32> to vector<16x8xf32>
    %451 = arith.truncf %449 : vector<8x16xf32> to vector<8x16xbf16>
    %452 = arith.truncf %450 : vector<16x8xf32> to vector<16x8xbf16>
    %cst_120 = arith.constant dense<0.000000e+00> : vector<8x8xf32>
    %453 = tpu.matmul %451, %452, %cst_120 {dimension_numbers = #tpu.dot_dimension_numbers<[1], [0], [0], [1], [0, 0, 1, 1], [], []>} : vector<8x16xbf16>, vector<16x8xbf16>, vector<8x8xf32> -> vector<8x8xf32>
    %454 = vector.extract_strided_slice %425 {offsets = [40, 0], sizes = [8, 16], strides = [1, 1]} : vector<64x16xf32> to vector<8x16xf32>
    %455 = vector.extract_strided_slice %448 {offsets = [0, 8], sizes = [16, 8], strides = [1, 1]} : vector<16x32xf32> to vector<16x8xf32>
    %456 = arith.truncf %454 : vector<8x16xf32> to vector<8x16xbf16>
    %457 = arith.truncf %455 : vector<16x8xf32> to vector<16x8xbf16>
    %cst_121 = arith.constant dense<0.000000e+00> : vector<8x8xf32>
    %458 = tpu.matmul %456, %457, %cst_121 {dimension_numbers = #tpu.dot_dimension_numbers<[1], [0], [0], [1], [0, 0, 1, 1], [], []>} : vector<8x16xbf16>, vector<16x8xbf16>, vector<8x8xf32> -> vector<8x8xf32>
    %459 = vector.extract_strided_slice %425 {offsets = [48, 0], sizes = [8, 16], strides = [1, 1]} : vector<64x16xf32> to vector<8x16xf32>
    %460 = vector.extract_strided_slice %448 {offsets = [0, 16], sizes = [16, 8], strides = [1, 1]} : vector<16x32xf32> to vector<16x8xf32>
    %461 = arith.truncf %459 : vector<8x16xf32> to vector<8x16xbf16>
    %462 = arith.truncf %460 : vector<16x8xf32> to vector<16x8xbf16>
    %cst_122 = arith.constant dense<0.000000e+00> : vector<8x8xf32>
    %463 = tpu.matmul %461, %462, %cst_122 {dimension_numbers = #tpu.dot_dimension_numbers<[1], [0], [0], [1], [0, 0, 1, 1], [], []>} : vector<8x16xbf16>, vector<16x8xbf16>, vector<8x8xf32> -> vector<8x8xf32>
    %464 = vector.extract_strided_slice %425 {offsets = [56, 0], sizes = [8, 16], strides = [1, 1]} : vector<64x16xf32> to vector<8x16xf32>
    %465 = vector.extract_strided_slice %448 {offsets = [0, 24], sizes = [16, 8], strides = [1, 1]} : vector<16x32xf32> to vector<16x8xf32>
    %466 = arith.truncf %464 : vector<8x16xf32> to vector<8x16xbf16>
    %467 = arith.truncf %465 : vector<16x8xf32> to vector<16x8xbf16>
    %cst_123 = arith.constant dense<0.000000e+00> : vector<8x8xf32>
    %468 = tpu.matmul %466, %467, %cst_123 {dimension_numbers = #tpu.dot_dimension_numbers<[1], [0], [0], [1], [0, 0, 1, 1], [], []>} : vector<8x16xbf16>, vector<16x8xbf16>, vector<8x8xf32> -> vector<8x8xf32>
    %469 = tpu.concatenate %453, %458, %463, %468 in 1 : vector<8x8xf32>, vector<8x8xf32>, vector<8x8xf32>, vector<8x8xf32> -> vector<8x32xf32>
    %470 = tpu.concatenate %447, %469 in 0 : vector<8x32xf32>, vector<8x32xf32> -> vector<16x32xf32>
    %c624 = arith.constant 624 : index
    %c0_124 = arith.constant 0 : index
    %471 = vector.load %arg2[%c624, %c0_124] : memref<848x128xbf16, #tpu.memory_space<vmem>>, vector<32x32xbf16>
    %472 = arith.truncf %470 : vector<16x32xf32> to vector<16x32xbf16>
    %cst_125 = arith.constant dense<0.000000e+00> : vector<16x32xf32>
    %473 = tpu.matmul %472, %471, %cst_125 {dimension_numbers = #tpu.dot_dimension_numbers<[1], [0], [0], [1], [0, 0, 1, 1], [], []>} : vector<16x32xbf16>, vector<32x32xbf16>, vector<16x32xf32> -> vector<16x32xf32>
    %c160 = arith.constant 160 : index
    %c0_126 = arith.constant 0 : index
    %474 = vector.load %arg3[%c160, %c0_126] : memref<256x128xf32, #tpu.memory_space<vmem>>, vector<1x32xf32>
    %475 = vector.broadcast %474 : vector<1x32xf32> to vector<16x32xf32>
    %476 = arith.addf %473, %475 : vector<16x32xf32>
    %477 = arith.addf %348, %476 : vector<16x32xf32>
    %cst_127 = arith.constant dense<0.000000e+00> : vector<16xf32>
    %478 = vector.multi_reduction <add>, %477, %cst_127 [1] : vector<16x32xf32> to vector<16xf32>
    %479 = vector.shape_cast %478 : vector<16xf32> to vector<16x1xf32>
    %cst_128 = arith.constant 3.200000e+01 : f32
    %480 = vector.broadcast %cst_128 : f32 to vector<16x1xf32>
    %481 = arith.divf %479, %480 : vector<16x1xf32>
    %482 = vector.broadcast %481 : vector<16x1xf32> to vector<16x32xf32>
    %483 = arith.subf %477, %482 : vector<16x32xf32>
    %484 = arith.mulf %483, %483 : vector<16x32xf32>
    %cst_129 = arith.constant dense<0.000000e+00> : vector<16xf32>
    %485 = vector.multi_reduction <add>, %484, %cst_129 [1] : vector<16x32xf32> to vector<16xf32>
    %486 = vector.shape_cast %485 : vector<16xf32> to vector<16x1xf32>
    %cst_130 = arith.constant 3.200000e+01 : f32
    %487 = vector.broadcast %cst_130 : f32 to vector<16x1xf32>
    %488 = arith.divf %486, %487 : vector<16x1xf32>
    %cst_131 = arith.constant 9.99999974E-6 : f32
    %489 = vector.broadcast %cst_131 : f32 to vector<16x1xf32>
    %490 = arith.addf %488, %489 : vector<16x1xf32>
    %491 = math.rsqrt %490 : vector<16x1xf32>
    %492 = vector.broadcast %491 : vector<16x1xf32> to vector<16x32xf32>
    %493 = arith.mulf %483, %492 : vector<16x32xf32>
    %c184 = arith.constant 184 : index
    %c0_132 = arith.constant 0 : index
    %494 = vector.load %arg3[%c184, %c0_132] : memref<256x128xf32, #tpu.memory_space<vmem>>, vector<1x32xf32>
    %495 = vector.broadcast %494 : vector<1x32xf32> to vector<16x32xf32>
    %496 = arith.mulf %493, %495 : vector<16x32xf32>
    %c192_133 = arith.constant 192 : index
    %c0_134 = arith.constant 0 : index
    %497 = vector.load %arg3[%c192_133, %c0_134] : memref<256x128xf32, #tpu.memory_space<vmem>>, vector<1x32xf32>
    %498 = vector.broadcast %497 : vector<1x32xf32> to vector<16x32xf32>
    %499 = arith.addf %496, %498 : vector<16x32xf32>
    %c656 = arith.constant 656 : index
    %c0_135 = arith.constant 0 : index
    %500 = vector.load %arg2[%c656, %c0_135] : memref<848x128xbf16, #tpu.memory_space<vmem>>, vector<32x64xbf16>
    %501 = arith.truncf %499 : vector<16x32xf32> to vector<16x32xbf16>
    %cst_136 = arith.constant dense<0.000000e+00> : vector<16x64xf32>
    %502 = tpu.matmul %501, %500, %cst_136 {dimension_numbers = #tpu.dot_dimension_numbers<[1], [0], [0], [1], [0, 0, 1, 1], [], []>} : vector<16x32xbf16>, vector<32x64xbf16>, vector<16x64xf32> -> vector<16x64xf32>
    %c216 = arith.constant 216 : index
    %c0_137 = arith.constant 0 : index
    %503 = vector.load %arg3[%c216, %c0_137] : memref<256x128xf32, #tpu.memory_space<vmem>>, vector<1x64xf32>
    %504 = vector.broadcast %503 : vector<1x64xf32> to vector<16x64xf32>
    %505 = arith.addf %502, %504 : vector<16x64xf32>
    %cst_138 = arith.constant 0.000000e+00 : f32
    %506 = vector.broadcast %cst_138 : f32 to vector<16x64xf32>
    %507 = arith.maximumf %505, %506 : vector<16x64xf32>
    %c688 = arith.constant 688 : index
    %c0_139 = arith.constant 0 : index
    %508 = vector.load %arg2[%c688, %c0_139] : memref<848x128xbf16, #tpu.memory_space<vmem>>, vector<64x32xbf16>
    %509 = arith.truncf %507 : vector<16x64xf32> to vector<16x64xbf16>
    %cst_140 = arith.constant dense<0.000000e+00> : vector<16x32xf32>
    %510 = tpu.matmul %509, %508, %cst_140 {dimension_numbers = #tpu.dot_dimension_numbers<[1], [0], [0], [1], [0, 0, 1, 1], [], []>} : vector<16x64xbf16>, vector<64x32xbf16>, vector<16x32xf32> -> vector<16x32xf32>
    %c224 = arith.constant 224 : index
    %c0_141 = arith.constant 0 : index
    %511 = vector.load %arg3[%c224, %c0_141] : memref<256x128xf32, #tpu.memory_space<vmem>>, vector<1x32xf32>
    %512 = vector.broadcast %511 : vector<1x32xf32> to vector<16x32xf32>
    %513 = arith.addf %510, %512 : vector<16x32xf32>
    %514 = arith.addf %499, %513 : vector<16x32xf32>
    %cst_142 = arith.constant dense<0.000000e+00> : vector<16xf32>
    %515 = vector.multi_reduction <add>, %514, %cst_142 [1] : vector<16x32xf32> to vector<16xf32>
    %516 = vector.shape_cast %515 : vector<16xf32> to vector<16x1xf32>
    %cst_143 = arith.constant 3.200000e+01 : f32
    %517 = vector.broadcast %cst_143 : f32 to vector<16x1xf32>
    %518 = arith.divf %516, %517 : vector<16x1xf32>
    %519 = vector.broadcast %518 : vector<16x1xf32> to vector<16x32xf32>
    %520 = arith.subf %514, %519 : vector<16x32xf32>
    %521 = arith.mulf %520, %520 : vector<16x32xf32>
    %cst_144 = arith.constant dense<0.000000e+00> : vector<16xf32>
    %522 = vector.multi_reduction <add>, %521, %cst_144 [1] : vector<16x32xf32> to vector<16xf32>
    %523 = vector.shape_cast %522 : vector<16xf32> to vector<16x1xf32>
    %cst_145 = arith.constant 3.200000e+01 : f32
    %524 = vector.broadcast %cst_145 : f32 to vector<16x1xf32>
    %525 = arith.divf %523, %524 : vector<16x1xf32>
    %cst_146 = arith.constant 9.99999974E-6 : f32
    %526 = vector.broadcast %cst_146 : f32 to vector<16x1xf32>
    %527 = arith.addf %525, %526 : vector<16x1xf32>
    %528 = math.rsqrt %527 : vector<16x1xf32>
    %529 = vector.broadcast %528 : vector<16x1xf32> to vector<16x32xf32>
    %530 = arith.mulf %520, %529 : vector<16x32xf32>
    %c200 = arith.constant 200 : index
    %c0_147 = arith.constant 0 : index
    %531 = vector.load %arg3[%c200, %c0_147] : memref<256x128xf32, #tpu.memory_space<vmem>>, vector<1x32xf32>
    %532 = vector.broadcast %531 : vector<1x32xf32> to vector<16x32xf32>
    %533 = arith.mulf %530, %532 : vector<16x32xf32>
    %c208 = arith.constant 208 : index
    %c0_148 = arith.constant 0 : index
    %534 = vector.load %arg3[%c208, %c0_148] : memref<256x128xf32, #tpu.memory_space<vmem>>, vector<1x32xf32>
    %535 = vector.broadcast %534 : vector<1x32xf32> to vector<16x32xf32>
    %536 = arith.addf %533, %535 : vector<16x32xf32>
    %c752 = arith.constant 752 : index
    %c0_149 = arith.constant 0 : index
    %537 = vector.load %arg2[%c752, %c0_149] : memref<848x128xbf16, #tpu.memory_space<vmem>>, vector<32x36xbf16>
    %538 = arith.truncf %536 : vector<16x32xf32> to vector<16x32xbf16>
    %cst_150 = arith.constant dense<0.000000e+00> : vector<16x36xf32>
    %539 = tpu.matmul %538, %537, %cst_150 {dimension_numbers = #tpu.dot_dimension_numbers<[1], [0], [0], [1], [0, 0, 1, 1], [], []>} : vector<16x32xbf16>, vector<32x36xbf16>, vector<16x36xf32> -> vector<16x36xf32>
    %c232 = arith.constant 232 : index
    %c0_151 = arith.constant 0 : index
    %540 = vector.load %arg3[%c232, %c0_151] : memref<256x128xf32, #tpu.memory_space<vmem>>, vector<1x36xf32>
    %541 = vector.broadcast %540 : vector<1x36xf32> to vector<16x36xf32>
    %542 = arith.addf %539, %541 : vector<16x36xf32>
    %543 = vector.extract_strided_slice %542 {offsets = [0, 32], sizes = [16, 4], strides = [1, 1]} : vector<16x36xf32> to vector<16x4xf32>
    %544 = vector.extract_strided_slice %542 {offsets = [0, 0], sizes = [16, 32], strides = [1, 1]} : vector<16x36xf32> to vector<16x32xf32>
    %cst_152 = arith.constant 0.000000e+00 : f32
    %545 = vector.broadcast %cst_152 : f32 to vector<16x32xf32>
    %546 = arith.maximumf %544, %545 : vector<16x32xf32>
    %c784 = arith.constant 784 : index
    %c0_153 = arith.constant 0 : index
    %547 = vector.load %arg2[%c784, %c0_153] : memref<848x128xbf16, #tpu.memory_space<vmem>>, vector<32x32xbf16>
    %548 = arith.truncf %546 : vector<16x32xf32> to vector<16x32xbf16>
    %cst_154 = arith.constant dense<0.000000e+00> : vector<16x32xf32>
    %549 = tpu.matmul %548, %547, %cst_154 {dimension_numbers = #tpu.dot_dimension_numbers<[1], [0], [0], [1], [0, 0, 1, 1], [], []>} : vector<16x32xbf16>, vector<32x32xbf16>, vector<16x32xf32> -> vector<16x32xf32>
    %c240_155 = arith.constant 240 : index
    %c0_156 = arith.constant 0 : index
    %550 = vector.load %arg3[%c240_155, %c0_156] : memref<256x128xf32, #tpu.memory_space<vmem>>, vector<1x32xf32>
    %551 = vector.broadcast %550 : vector<1x32xf32> to vector<16x32xf32>
    %552 = arith.addf %549, %551 : vector<16x32xf32>
    %cst_157 = arith.constant 0.000000e+00 : f32
    %553 = vector.broadcast %cst_157 : f32 to vector<16x32xf32>
    %554 = arith.maximumf %552, %553 : vector<16x32xf32>
    %c816 = arith.constant 816 : index
    %c0_158 = arith.constant 0 : index
    %555 = vector.load %arg2[%c816, %c0_158] : memref<848x128xbf16, #tpu.memory_space<vmem>>, vector<32x4xbf16>
    %556 = arith.truncf %554 : vector<16x32xf32> to vector<16x32xbf16>
    %cst_159 = arith.constant dense<0.000000e+00> : vector<16x4xf32>
    %557 = tpu.matmul %556, %555, %cst_159 {dimension_numbers = #tpu.dot_dimension_numbers<[1], [0], [0], [1], [0, 0, 1, 1], [], []>} : vector<16x32xbf16>, vector<32x4xbf16>, vector<16x4xf32> -> vector<16x4xf32>
    %c248 = arith.constant 248 : index
    %c0_160 = arith.constant 0 : index
    %558 = vector.load %arg3[%c248, %c0_160] : memref<256x128xf32, #tpu.memory_space<vmem>>, vector<1x4xf32>
    %559 = vector.broadcast %558 : vector<1x4xf32> to vector<16x4xf32>
    %560 = arith.addf %557, %559 : vector<16x4xf32>
    %561 = arith.negf %560 : vector<16x4xf32>
    %562 = math.exp %561 : vector<16x4xf32>
    %cst_161 = arith.constant 1.000000e+00 : f32
    %563 = vector.broadcast %cst_161 : f32 to vector<16x4xf32>
    %564 = arith.addf %563, %562 : vector<16x4xf32>
    %565 = arith.divf %563, %564 : vector<16x4xf32>
    %cst_162 = arith.constant 0.000000e+00 : f32
    %566 = vector.broadcast %cst_162 : f32 to vector<16x120xf32>
    %567 = tpu.concatenate %565, %543, %566 in 1 : vector<16x4xf32>, vector<16x4xf32>, vector<16x120xf32> -> vector<16x128xf32>
    %c0_163 = arith.constant 0 : index
    %c0_164 = arith.constant 0 : index
    %568 = vector.load %arg4[%c0_163, %c0_164] : memref<16x128xf32, #tpu.memory_space<vmem>>, vector<16x128xf32>
    tpu.vector_store %arg4[%c0_163, %c0_164], %567 {strides = array<i32>} : memref<16x128xf32, #tpu.memory_space<vmem>>, vector<16x128xf32>,
    return
  }
  func.func @transform_0(%arg0: i32) -> (i32, i32) {
    %c0_i32 = arith.constant 0 : i32
    %c0_i32_0 = arith.constant 0 : i32
    return %arg0, %c0_i32 : i32, i32
  }
  func.func @transform_1(%arg0: i32) -> (i32, i32) {
    %c0_i32 = arith.constant 0 : i32
    %c0_i32_0 = arith.constant 0 : i32
    %c0_i32_1 = arith.constant 0 : i32
    return %c0_i32, %c0_i32_0 : i32, i32
  }
  func.func @transform_2(%arg0: i32) -> (i32, i32) {
    %c0_i32 = arith.constant 0 : i32
    %c0_i32_0 = arith.constant 0 : i32
    %c0_i32_1 = arith.constant 0 : i32
    return %c0_i32, %c0_i32_0 : i32, i32
  }
  func.func @transform_3(%arg0: i32) -> (i32, i32) {
    %c0_i32 = arith.constant 0 : i32
    %c0_i32_0 = arith.constant 0 : i32
    return %arg0, %c0_i32 : i32, i32
  }
}

</mosaic_0001>

<bundles_post_ra>
// kernel: sub.9
= control target key start
LH: loop header
LB: loop body
LE: loop exit
PB: predicated region body
PF: predicated region fallthrough
CT: control target
= control target key end

     0   :  { %vm7_vm0 = vcmask 64512   ;;  %s39_s0 = inlined_call_operand.vmem [shape: f32[16], index: 0, kind: input, shape index: {}]   ;;  %s40_s1 = inlined_call_operand.vmem [shape: f32[2,8], index: 1, kind: output, shape index: {}]  }
   0x1   :  { %v4_v0 = vld [vmem:[%s39_s0] sm:$0x1]  ;;  %s22_s0 = smov 120  }
   0x2   :  { %5 = vst [vmem:[#allocation1] sm:$0x1] %v4_v0 }
   0x9   :  { %v9_v1 = vld [vmem:[#allocation1] sm:$0x1]  }
   0xa   :  { %v6_v2 = vld [vmem:[#allocation1] sm:$0x1]   ;;  %10 = vrot.lane.b32.xlu0 %v9_v1, %s22_s0 }
   0xb   :  { %8 = vst.msk [vmem:[#allocation0] sm:$0x1] %vm7_vm0, %v6_v2  }
  0x7c   :  { %v11_v3 = vpop.permute.xlu0 %10  }
  0x7d   :  { %14 = vst.msk [vmem:[#allocation0 + $0x1] sm:$0x1] %vm7_vm0, %v11_v3  }
  0x84   :  { %v17_v4 = vld [vmem:[#allocation0] sm:$0x3] }
  0x85   :  { %20 = vst [vmem:[%s40_s1] sm:$0x3] %v17_v4 }

// kernel: detr_forward.1
= control target key start
LH: loop header
LB: loop body
LE: loop exit
PB: predicated region body
PF: predicated region fallthrough
CT: control target
= control target key end

     0   :  { %vm125_vm0 = vcmask 523264   ;;  %vm202_vm1 = vcmask 392192   ;;  %vm254_vm2 = vcmask 261120   ;;  %s3574_s21 = smov 120   ;;  %s3575_s22 = smov 88   ;;  %vm329_vm3 = vcmask 64512   ;;  %s4606_s1 = inlined_call_operand.vmem [shape: bf16[848,128], index: 1, kind: input, shape index: {}]   ;;  %s4607_s0 = inlined_call_operand.vmem [shape: f32[32,192], index: 0, kind: input, shape index: {}]   ;;  %s4608_s2 = inlined_call_operand.vmem [shape: f32[256,128], index: 2, kind: input, shape index: {}]   ;;  %s4609_s3 = inlined_call_operand.vmem [shape: f32[16,128], index: 3, kind: output, shape index: {}]  }
   0x1   :  { %v3257_v0 = vld [vmem:[%s4606_s1 + $0x38] sm:$0xff]  ;;  %v3256_v2 = vld [vmem:[%s4606_s1 + $0x30] sm:$0xff]  ;;  %v3255_v4 = vld [vmem:[%s4606_s1 + $0x28] sm:$0xff]  ;;  %s3576_s23 = smov 96   ;;  %s3577_s24 = smov 72   ;;  %vm534_vm4 = vcmask 130048  }
   0x2   :  { %v3261_v1 = vld [vmem:[%s4606_s1 + $0x58] sm:$0xff]  ;;  %132 = vmatpush.bf16.msra.mxu0 %v3257_v0  ;;  %v3260_v3 = vld [vmem:[%s4606_s1 + $0x50] sm:$0xff]  ;;  %v3259_v5 = vld [vmem:[%s4606_s1 + $0x48] sm:$0xff]  ;;  %s3578_s25 = smov 112   ;;  %s3579_s26 = smov 80   ;;  %vm822_vm5 = vcmask 195584  }
   0x3   :  { %155 = vmatpush.bf16.msra.mxu1 %v3261_v1  ;;  %v3254_v6 = vld [vmem:[%s4606_s1 + $0x20] sm:$0xff]  ;;  %v16_v8 = vld [vmem:[%s4607_s0 + $0x8] sm:$0xff]  ;;  %v18_v9 = vld [vmem:[%s4607_s0 + $0x18] sm:$0xff]  ;;  %s3580_s27 = smov 104   ;;  %s3581_s30 = smov 8  }
   0x4   :  { %v3258_v7 = vld [vmem:[%s4606_s1 + $0x40] sm:$0xff]  ;;  %v3253_v10 = vld [vmem:[%s4606_s1 + $0x18] sm:$0xff]  ;;  %v48_v11 = vpack.c.bf16 %v18_v9, %v16_v8  ;;  %v3252_v12 = vld [vmem:[%s4606_s1 + $0x10] sm:$0xff]  ;;  %s3583_s4 = smov 16   ;;  %s3586_s29 = smov 100  }
   0x5   :  { %v3251_v13 = vld [vmem:[%s4606_s1 + $0x8] sm:$0xff]  ;;  %v3250_v14 = vld [vmem:[%s4606_s1] sm:$0xff]  ;;  %v17_v16 = vld [vmem:[%s4607_s0 + $0x10] sm:$0xff] }
   0x6   :  { %133 = vmatpush.bf16.msra.mxu0 %v3256_v2  ;;  %v15_v15 = vld [vmem:[%s4607_s0] sm:$0xff]  ;;  %v20_v17 = vld [vmem:[%s4607_s0 + $0x28] sm:$0xff]  ;;  %v22_v18 = vld [vmem:[%s4607_s0 + $0x38] sm:$0xff] }
   0x7   :  { %156 = vmatpush.bf16.msra.mxu1 %v3260_v3  ;;  %v47_v19 = vpack.c.bf16 %v17_v16, %v15_v15  ;;  %v50_v20 = vpack.c.bf16 %v22_v18, %v20_v17  ;;  %v19_v21 = vld [vmem:[%s4607_s0 + $0x20] sm:$0xff]  ;;  %v21_v22 = vld [vmem:[%s4607_s0 + $0x30] sm:$0xff]  ;;  %v3263_v25 = vld [vmem:[%s4606_s1 + $0x68] sm:$0xff]  ;;  %s3582_s0 = smov 24  }
   0x8   :  { %v49_v23 = vpack.c.bf16 %v21_v22, %v19_v21  ;;  %v3264_v24 = vld [vmem:[%s4606_s1 + $0x70] sm:$0xff]  ;;  %v3262_v26 = vld [vmem:[%s4606_s1 + $0x60] sm:$0xff]  ;;  %v3265_v51 = vld [vmem:[%s4606_s1 + $0x78] sm:$0xff] }
   0x9   :  { %214 = vmatpush.bf16.msra.mxu2 %v3264_v24  ;;  %v3376_v29 = vld [vmem:[%s4608_s2] ss:$0 sm:$0xff]  ;;  %v3268_v52 = vld [vmem:[%s4606_s1 + $0x90] sm:$0xff]  ;;  %v3267_v54 = vld [vmem:[%s4606_s1 + $0x88] sm:$0xff] }
   0xa   :  { %134 = vmatpush.bf16.msra.mxu0 %v3255_v4  ;;  %v3266_v50 = vld [vmem:[%s4606_s1 + $0x80] sm:$0xff]  ;;  %v3377_v55 = vld [vmem:[%s4608_s2 + $0x8] ss:$0 sm:$0xff]  ;;  %v228_v57 = vld [vmem:[%s4608_s2 + $0x10] sm:$0xff] }
   0xb   :  { %157 = vmatpush.bf16.msra.mxu1 %v3259_v5  ;;  %267 = vmatpush.bf16.msra.mxu3 %v3266_v50  ;;  %v229_v59 = vld [vmem:[%s4608_s2 + $0x18] sm:$0xff]  ;;  %v3379_v21 = vld [vmem:[%s4608_s2 + $0x30] ss:$0 sm:$0xff] }
   0xd   :  { %215 = vmatpush.bf16.msra.mxu2 %v3263_v25 }
   0xe   :  { %135 = vmatpush.bf16.msra.mxu0 %v3254_v6 }
   0xf   :  { %158 = vmatpush.bf16.msra.mxu1 %v3258_v7  ;;  %268 = vmatpush.bf16.msra.mxu3 %v3265_v51 }
  0x11   :  { %216 = vmatpush.bf16.msra.mxu2 %v3262_v26 }
  0x12   :  { %136 = vmatpush.bf16.msra.mxu0 %v3253_v10  ;;  %3009 = vmatmul.msk.bf16.vlgmr.msra.gmra.mxu1 %vm125_vm0, %v48_v11  ;;  %v3378_v10 = vld [vmem:[%s4608_s2 + $0x28] ss:$0 sm:$0xff] }
  0x13   :  { %312 = vmatpush.bf16.msrb.mxu3 %v3268_v52 }
  0x16   :  { %137 = vmatpush.bf16.msra.mxu0 %v3252_v12 }
  0x17   :  { %313 = vmatpush.bf16.msrb.mxu3 %v3267_v54 }
  0x1a   :  { %138 = vmatpush.bf16.msra.mxu0 %v3251_v13 }
  0x1e   :  { %139 = vmatpush.bf16.msra.mxu0 %v3250_v14 }
  0x21   :  { %140 = vmatmul.bf16.vlgmr.msra.gmra.mxu0 %v47_v19 }
  0x22   :  { %3010 = vmatmul.msk.bf16.gmra.mxu1 %vm125_vm0, %v50_v20 }
  0x31   :  { %145 = vmatmul.bf16.gmra.mxu0 %v49_v23 }
  0x8f   :  { %v160_v27 = vpop.f32.mrf.mxu1 }
  0x97   :  { %v162_v31 = vpop.f32.mrf.mxu1 }
  0x9e   :  { %v141_v28 = vpop.f32.mrf.mxu0 }
  0x9f   :  { %v142_v30 = vadd.f32 %v3376_v29, %v141_v28  ;;  %v165_v39 = vpop.f32.mrf.mxu1 }
  0xa1   :  { %v161_v33 = vadd.f32 %v160_v27, %v142_v30 }
  0xa3   :  { %v170_v36 = vmax.f32 %v161_v33, 0.0 }
  0xa6   :  { %v143_v32 = vpop.f32.mrf.mxu0 }
  0xa7   :  { %v144_v34 = vadd.f32 %v3376_v29, %v143_v32  ;;  %v167_v45 = vpop.f32.mrf.mxu1 }
  0xa9   :  { %v163_v35 = vadd.f32 %v162_v31, %v144_v34 }
  0xab   :  { %v171_v37 = vmax.f32 %v163_v35, 0.0 }
  0xad   :  { %v180_v38 = vpack.c.bf16 %v171_v37, %v170_v36 }
  0xae   :  { %v146_v40 = vpop.f32.mrf.mxu0 }
  0xaf   :  { %3023 = vmatmul.msk.bf16.vlgmr.msra.gmra.mxu2 %vm202_vm1, %v180_v38  ;;  %v147_v41 = vadd.f32 %v3376_v29, %v146_v40 }
  0xb1   :  { %v166_v43 = vadd.f32 %v165_v39, %v147_v41 }
  0xb3   :  { %v172_v47 = vmax.f32 %v166_v43, 0.0 }
  0xb6   :  { %v148_v42 = vpop.f32.mrf.mxu0 }
  0xb7   :  { %v149_v44 = vadd.f32 %v3376_v29, %v148_v42 }
  0xb9   :  { %v168_v46 = vadd.f32 %v167_v45, %v149_v44 }
  0xbb   :  { %v173_v48 = vmax.f32 %v168_v46, 0.0 }
  0xbd   :  { %v181_v49 = vpack.c.bf16 %v173_v48, %v172_v47 }
  0xbf   :  { %3024 = vmatmul.msk.bf16.gmra.mxu2 %vm202_vm1, %v181_v49 }
 0x132   :  { %v218_v53 = vpop.f32.mrf.mxu2 }
 0x133   :  { %v3696_v56 = vadd.f32 %v3377_v55, %v218_v53 }
 0x135   :  { %v230_v61 = vadd.f32 %v228_v57, %v3696_v56 }
 0x13a   :  { %v220_v58 = vpop.f32.mrf.mxu2 }
 0x13b   :  { %v3704_v60 = vadd.f32 %v3377_v55, %v220_v58 }
 0x13d   :  { %v231_v62 = vadd.f32 %v229_v59, %v3704_v60  ;;  %v284_v7 = vpack.c.bf16 %v3704_v60, %v3696_v56 }
 0x13f   :  { %v238_v63 = vpack.c.bf16 %v231_v62, %v230_v61 }
 0x141   :  { %3033 = vmatmul.msk.bf16.vlgmr.msra.gmra.mxu3 %vm254_vm2, %v238_v63 }
 0x142   :  { %v223_v0 = vpop.f32.mrf.mxu2 }
 0x143   :  { %v3709_v1 = vadd.f32 %v3377_v55, %v223_v0 }
 0x145   :  { %v232_v4 = vadd.f32 %v228_v57, %v3709_v1 }
 0x14a   :  { %v225_v2 = vpop.f32.mrf.mxu2 }
 0x14b   :  { %v3711_v3 = vadd.f32 %v3377_v55, %v225_v2 }
 0x14d   :  { %v233_v5 = vadd.f32 %v229_v59, %v3711_v3  ;;  %v285_v8 = vpack.c.bf16 %v3711_v3, %v3709_v1 }
 0x14f   :  { %v239_v6 = vpack.c.bf16 %v233_v5, %v232_v4 }
 0x151   :  { %3034 = vmatmul.msk.bf16.gmra.mxu3 %vm254_vm2, %v239_v6 }
 0x161   :  { %3043 = vmatmul.msk.bf16.vlgmr.msrb.gmra.mxu3 %vm254_vm2, %v284_v7 }
 0x171   :  { %3044 = vmatmul.msk.bf16.gmra.mxu3 %vm254_vm2, %v285_v8 }
 0x1c4   :  { %v270_v9 = vpop.f32.mrf.mxu3 }
 0x1c5   :  { %v271_v12 = vadd.f32 %v3378_v10, %v270_v9 }
 0x1cc   :  { %v272_v11 = vpop.f32.mrf.mxu3 }
 0x1cd   :  { %v273_v13 = vadd.f32 %v3378_v10, %v272_v11 }
 0x1cf   :  { %v325_v14 = vpack.c.bf16 %v273_v13, %v271_v12 }
 0x1d1   :  { %350 = vrot.lane.b32.xlu2 %v325_v14, %s3574_s21  ;;  %352 = vrot.lane.b32.xlu1 %v325_v14, %s3575_s22 }
 0x1d2   :  { %327 = vrot.lane.b32.xlu0 %v325_v14, %s3576_s23 }
 0x1d4   :  { %v275_v15 = vpop.f32.mrf.mxu3 }
 0x1d5   :  { %v276_v17 = vadd.f32 %v3378_v10, %v275_v15 }
 0x1d9   :  { %400 = vrot.lane.b32.xlu2 %v325_v14, %s3577_s24  ;;  %374 = vrot.lane.b32.xlu1 %v325_v14, %s3578_s25 }
 0x1da   :  { %376 = vrot.lane.b32.xlu0 %v325_v14, %s3579_s26 }
 0x1dc   :  { %v277_v16 = vpop.f32.mrf.mxu3 }
 0x1dd   :  { %v278_v18 = vadd.f32 %v3378_v10, %v277_v16 }
 0x1df   :  { %v422_v19 = vpack.c.bf16 %v278_v18, %v276_v17 }
 0x1e1   :  { %398 = vrot.lane.b32.xlu2 %v325_v14, %s3580_s27  ;;  %472 = vrot.lane.b32.xlu1 %v422_v19, %s3579_s26 }
 0x1e2   :  { %448 = vrot.lane.b32.xlu0 %v422_v19, %s3575_s22 }
 0x1e4   :  { %v315_v20 = vpop.f32.mrf.mxu3 }
 0x1e5   :  { %v316_v23 = vadd.f32 %v3379_v21, %v315_v20 }
 0x1e9   :  { %496 = vrot.lane.b32.xlu2 %v422_v19, %s3577_s24  ;;  %470 = vrot.lane.b32.xlu1 %v422_v19, %s3578_s25 }
 0x1ea   :  { %446 = vrot.lane.b32.xlu0 %v422_v19, %s3574_s21 }
 0x1ec   :  { %v317_v22 = vpop.f32.mrf.mxu3 }
 0x1ed   :  { %v318_v24 = vadd.f32 %v3379_v21, %v317_v22 }
 0x1ef   :  { %v3740_v25 = vpack.c.bf16 %v318_v24, %v316_v23 }
 0x1f1   :  { %732 = vrot.lane.b32.xlu2 %v3740_v25, %s3574_s21  ;;  %424 = vrot.lane.b32.xlu1 %v422_v19, %s3576_s23 }
 0x1f2   :  { %494 = vrot.lane.b32.xlu0 %v422_v19, %s3580_s27 }
 0x1f4   :  { %v320_v44 = vpop.f32.mrf.mxu3 }
 0x1f5   :  { %v321_v52 = vadd.f32 %v3379_v21, %v320_v44 }
 0x1fc   :  { %v322_v48 = vpop.f32.mrf.mxu3 }
 0x1fd   :  { %v323_v51 = vadd.f32 %v3379_v21, %v322_v48 }
 0x1ff   :  { %v3761_v53 = vpack.c.bf16 %v323_v51, %v321_v52 }
 0x22b   :  { %v351_v26 = vpop.permute.xlu2 %350 }
 0x233   :  { %v401_v27 = vpop.permute.xlu2 %400 }
 0x234   :  { %v406_v28 = vsel %vm329_vm3, %v401_v27, 0 }
 0x235   :  { %415 = vmatpush.bf16.xpose.msrb.mxu0 %v406_v28 }
 0x23b   :  { %v399_v29 = vpop.permute.xlu2 %398 }
 0x23c   :  { %3048 = vmatmul.msk.bf16.vlgmr.msrb.gmra.mxu0 %vm329_vm3, %v399_v29 }
 0x243   :  { %v497_v30 = vpop.permute.xlu2 %496  ;;  %v353_v31 = vpop.permute.xlu1 %352 }
 0x244   :  { %v502_v32 = vsel %vm329_vm3, %v497_v30, 0  ;;  %v328_v33 = vpop.permute.xlu0 %327  ;;  %v358_v34 = vsel %vm329_vm3, %v353_v31, 0 }
 0x245   :  { %v334_v35 = vsel %vm329_vm3, %v328_v33, 0  ;;  %367 = vmatpush.bf16.xpose.msrb.mxu1 %v358_v34  ;;  %511 = vmatpush.bf16.xpose.msra.mxu0 %v502_v32 }
 0x246   :  { %343 = vmatpush.bf16.xpose.msrb.mxu2 %v334_v35 }
 0x24b   :  { %v375_v36 = vpop.permute.xlu1 %374  ;;  %v733_v43 = vpop.permute.xlu2 %732 }
 0x24c   :  { %v377_v37 = vpop.permute.xlu0 %376  ;;  %3046 = vmatmul.msk.bf16.vlgmr.msrb.gmra.mxu1 %vm329_vm3, %v351_v26 }
 0x24d   :  { %v382_v38 = vsel %vm329_vm3, %v377_v37, 0  ;;  %3045 = vmatmul.msk.bf16.vlgmr.msrb.gmra.mxu2 %vm329_vm3, %v325_v14 }
 0x24e   :  { %391 = vmatpush.bf16.xpose.msra.mxu2 %v382_v38 }
 0x253   :  { %v473_v39 = vpop.permute.xlu1 %472 }
 0x254   :  { %v478_v40 = vsel %vm329_vm3, %v473_v39, 0  ;;  %v449_v41 = vpop.permute.xlu0 %448 }
 0x255   :  { %v454_v42 = vsel %vm329_vm3, %v449_v41, 0 }
 0x256   :  { %487 = vmatpush.bf16.xpose.msrb.mxu2 %v478_v40  ;;  %463 = vmatpush.bf16.xpose.msra.mxu3 %v454_v42 }
 0x25b   :  { %v471_v45 = vpop.permute.xlu1 %470 }
 0x25c   :  { %v447_v46 = vpop.permute.xlu0 %446 }
 0x25d   :  { %3047 = vmatmul.msk.bf16.vlgmr.msra.gmra.mxu2 %vm329_vm3, %v375_v36  ;;  %3050 = vmatmul.msk.bf16.vlgmr.msra.gmra.mxu3 %vm329_vm3, %v447_v46 }
 0x25e   :  { %745 = vmatpush.bf16.msrb.mxu3 %v733_v43 }
 0x263   :  { %v425_v47 = vpop.permute.xlu1 %424 }
 0x264   :  { %v430_v49 = vsel %vm329_vm3, %v425_v47, 0  ;;  %v495_v50 = vpop.permute.xlu0 %494 }
 0x265   :  { %3052 = vmatmul.msk.bf16.vlgmr.msra.gmra.mxu0 %vm329_vm3, %v495_v50  ;;  %439 = vmatpush.bf16.xpose.msra.mxu1 %v430_v49 }
 0x26c   :  { %3049 = vmatmul.msk.bf16.vlgmr.msra.gmra.mxu1 %vm329_vm3, %v422_v19 }
 0x26d   :  { %723 = vmatpush.bf16.msrb.mxu1 %v3740_v25  ;;  %3051 = vmatmul.msk.bf16.vlgmr.msrb.gmra.mxu2 %vm329_vm3, %v471_v45 }
 0x271   :  { %837 = vmatpush.bf16.msra.mxu1 %v3761_v53 }
 0x2b9   :  { %v417_v57 = vpop.f32.mrf.mxu0 }
 0x2ba   :  { %v3770_v59 = vmul.f32 0.35355338, %v417_v57 }
 0x2bc   :  { %v553_v4 = vsel %vm534_vm4, %v3770_v59, -inf }
 0x2c1   :  { %v419_v6 = vpop.f32.mrf.mxu0 }
 0x2c2   :  { %v3782_v7 = vmul.f32 0.35355338, %v419_v6 }
 0x2c4   :  { %v556_v10 = vsel %vm534_vm4, %v3782_v7, -inf }
 0x2c9   :  { %v369_v54 = vpop.f32.mrf.mxu1 }
 0x2ca   :  { %v3766_v55 = vmul.f32 0.35355338, %v369_v54 }
 0x2cc   :  { %v541_v58 = vsel %vm534_vm4, %v3766_v55, -inf }
 0x2cd   :  { %542 = vmax.xlane.f32.xlu2 %v541_v58 }
 0x2d0   :  { %v345_v61 = vpop.f32.mrf.mxu2 }
 0x2d1   :  { %v3772_v62 = vmul.f32 0.35355338, %v345_v61  ;;  %v371_v63 = vpop.f32.mrf.mxu1 }
 0x2d2   :  { %v3774_v0 = vmul.f32 0.35355338, %v371_v63 }
 0x2d3   :  { %v535_v2 = vsel %vm534_vm4, %v3772_v62, -inf }
 0x2d4   :  { %536 = vmax.xlane.f32.xlu1 %v535_v2  ;;  %v544_v5 = vsel %vm534_vm4, %v3774_v0, -inf }
 0x2d5   :  { %554 = vmax.xlane.f32.xlu2 %v553_v4  ;;  %545 = vmax.xlane.f32.xlu0 %v544_v5 }
 0x2d8   :  { %v347_v8 = vpop.f32.mrf.mxu2 }
 0x2d9   :  { %v3784_v9 = vmul.f32 0.35355338, %v347_v8 }
 0x2db   :  { %v538_v11 = vsel %vm534_vm4, %v3784_v9, -inf }
 0x2dd   :  { %557 = vmax.xlane.f32.xlu0 %v556_v10  ;;  %539 = vmax.xlane.f32.xlu2 %v538_v11 }
 0x2e0   :  { %v393_v12 = vpop.f32.mrf.mxu2  ;;  %v465_v17 = vpop.f32.mrf.mxu3 }
 0x2e1   :  { %v3790_v13 = vmul.f32 0.35355338, %v393_v12  ;;  %v3798_v19 = vmul.f32 0.35355338, %v465_v17 }
 0x2e2   :  { %v513_v14 = vpop.f32.mrf.mxu0 }
 0x2e3   :  { %v3792_v15 = vmul.f32 0.35355338, %v513_v14  ;;  %v547_v16 = vsel %vm534_vm4, %v3790_v13, -inf  ;;  %v565_v24 = vsel %vm534_vm4, %v3798_v19, -inf }
 0x2e4   :  { %548 = vmax.xlane.f32.xlu1 %v547_v16 }
 0x2e5   :  { %v577_v18 = vsel %vm534_vm4, %v3792_v15, -inf }
 0x2e6   :  { %578 = vmax.xlane.f32.xlu2 %v577_v18 }
 0x2e8   :  { %v395_v20 = vpop.f32.mrf.mxu2  ;;  %v467_v29 = vpop.f32.mrf.mxu3 }
 0x2e9   :  { %v3800_v21 = vmul.f32 0.35355338, %v395_v20  ;;  %v441_v22 = vpop.f32.mrf.mxu1  ;;  %v3812_v32 = vmul.f32 0.35355338, %v467_v29 }
 0x2ea   :  { %v3802_v23 = vmul.f32 0.35355338, %v441_v22  ;;  %v515_v27 = vpop.f32.mrf.mxu0 }
 0x2eb   :  { %v550_v28 = vsel %vm534_vm4, %v3800_v21, -inf  ;;  %v3810_v30 = vmul.f32 0.35355338, %v515_v27  ;;  %v568_v37 = vsel %vm534_vm4, %v3812_v32, -inf }
 0x2ec   :  { %566 = vmax.xlane.f32.xlu1 %v565_v24  ;;  %v559_v26 = vsel %vm534_vm4, %v3802_v23, -inf }
 0x2ed   :  { %560 = vmax.xlane.f32.xlu0 %v559_v26  ;;  %v580_v36 = vsel %vm534_vm4, %v3810_v30, -inf }
 0x2ee   :  { %551 = vmax.xlane.f32.xlu2 %v550_v28 }
 0x2f0   :  { %v489_v31 = vpop.f32.mrf.mxu2 }
 0x2f1   :  { %v443_v33 = vpop.f32.mrf.mxu1  ;;  %v3822_v38 = vmul.f32 0.35355338, %v489_v31 }
 0x2f2   :  { %v3814_v34 = vmul.f32 0.35355338, %v443_v33 }
 0x2f3   :  { %v571_v42 = vsel %vm534_vm4, %v3822_v38, -inf }
 0x2f4   :  { %v562_v35 = vsel %vm534_vm4, %v3814_v34, -inf }
 0x2f5   :  { %563 = vmax.xlane.f32.xlu1 %v562_v35  ;;  %581 = vmax.xlane.f32.xlu0 %v580_v36 }
 0x2f6   :  { %569 = vmax.xlane.f32.xlu2 %v568_v37 }
 0x2f8   :  { %v491_v39 = vpop.f32.mrf.mxu2 }
 0x2f9   :  { %v3824_v40 = vmul.f32 0.35355338, %v491_v39 }
 0x2fb   :  { %v574_v41 = vsel %vm534_vm4, %v3824_v40, -inf }
 0x2fd   :  { %575 = vmax.xlane.f32.xlu1 %v574_v41  ;;  %572 = vmax.xlane.f32.xlu0 %v571_v42 }
 0x311   :  { %753 = vrot.lane.b32.xlu0 %v3740_v25, %s3578_s25 }
 0x340   :  { %v543_v43 = vpop.xlane.xlu2 %542 }
 0x341   :  { %v585_v44 = vsub.f32 %v3766_v55, %v543_v43 }
 0x343   :  { %v603_v45 = vmul.f32 1.442695, %v585_v44 }
 0x345   :  { %3405 = vpow2.f32 %v603_v45 }
 0x347   :  { %v3839_v54 = vpop.xlane.xlu1 %536 }
 0x348   :  { %v555_v46 = vpop.xlane.xlu2 %554  ;;  %v546_v47 = vpop.xlane.xlu0 %545 }
 0x349   :  { %v589_v48 = vsub.f32 %v3770_v59, %v555_v46  ;;  %v586_v51 = vsub.f32 %v3774_v0, %v546_v47 }
 0x34b   :  { %v3834_v49 = vpop.eup %3405  ;;  %v611_v50 = vmul.f32 1.442695, %v589_v48  ;;  %v605_v57 = vmul.f32 1.442695, %v586_v51 }
 0x34c   :  { %v637_v52 = vsel %vm534_vm4, %v3834_v49, 0.0 }
 0x34d   :  { %3407 = vpow2.f32 %v611_v50  ;;  %638 = vadd.xlane.f32.xlu0 %v637_v52 }
 0x34e   :  { %3409 = vpow2.f32 %v605_v57 }
 0x350   :  { %v3841_v55 = vpop.xlane.xlu2 %539  ;;  %v558_v58 = vpop.xlane.xlu0 %557 }
 0x351   :  { %v590_v61 = vsub.f32 %v3782_v7, %v558_v58  ;;  %v584_v47 = vsub.f32 %v3784_v9, %v3841_v55 }
 0x353   :  { %v3844_v63 = vpop.eup %3407  ;;  %v613_v59 = vmul.f32 1.442695, %v590_v61  ;;  %v601_v50 = vmul.f32 1.442695, %v584_v47 }
 0x354   :  { %v649_v0 = vsel %vm534_vm4, %v3844_v63, 0.0  ;;  %v3849_v5 = vpop.eup %3409 }
 0x355   :  { %650 = vadd.xlane.f32.xlu1 %v649_v0  ;;  %3411 = vpow2.f32 %v613_v59  ;;  %v640_v12 = vsel %vm534_vm4, %v3849_v5, 0.0 }
 0x357   :  { %v549_v2 = vpop.xlane.xlu1 %548 }
 0x358   :  { %v587_v4 = vsub.f32 %v3790_v13, %v549_v2 }
 0x359   :  { %v579_v6 = vpop.xlane.xlu2 %578 }
 0x35a   :  { %v607_v8 = vmul.f32 1.442695, %v587_v4  ;;  %v597_v10 = vsub.f32 %v3792_v15, %v579_v6 }
 0x35b   :  { %v3852_v11 = vpop.eup %3411 }
 0x35c   :  { %3413 = vpow2.f32 %v607_v8  ;;  %v627_v7 = vmul.f32 1.442695, %v597_v10  ;;  %v652_v14 = vsel %vm534_vm4, %v3852_v11, 0.0 }
 0x35d   :  { %641 = vadd.xlane.f32.xlu1 %v640_v12  ;;  %653 = vadd.xlane.f32.xlu2 %v652_v14 }
 0x35e   :  { %3415 = vpow2.f32 %v627_v7 }
 0x35f   :  { %v567_v13 = vpop.xlane.xlu1 %566 }
 0x360   :  { %v593_v16 = vsub.f32 %v3798_v19, %v567_v13  ;;  %v561_v19 = vpop.xlane.xlu0 %560 }
 0x361   :  { %v552_v17 = vpop.xlane.xlu2 %551  ;;  %v591_v52 = vsub.f32 %v3802_v23, %v561_v19 }
 0x362   :  { %v3859_v18 = vpop.eup %3413  ;;  %v619_v15 = vmul.f32 1.442695, %v593_v16  ;;  %v588_v20 = vsub.f32 %v3800_v21, %v552_v17 }
 0x363   :  { %v643_v27 = vsel %vm534_vm4, %v3859_v18, 0.0  ;;  %v615_v58 = vmul.f32 1.442695, %v591_v52 }
 0x364   :  { %v3862_v22 = vpop.eup %3415  ;;  %3417 = vpow2.f32 %v619_v15  ;;  %v609_v24 = vmul.f32 1.442695, %v588_v20 }
 0x365   :  { %v673_v26 = vsel %vm534_vm4, %v3862_v22, 0.0  ;;  %644 = vadd.xlane.f32.xlu2 %v643_v27 }
 0x366   :  { %3419 = vpow2.f32 %v609_v24  ;;  %674 = vadd.xlane.f32.xlu1 %v673_v26 }
 0x368   :  { %v564_v28 = vpop.xlane.xlu1 %563  ;;  %v582_v36 = vpop.xlane.xlu0 %581 }
 0x369   :  { %v570_v46 = vpop.xlane.xlu2 %569  ;;  %v592_v9 = vsub.f32 %v3814_v34, %v564_v28 }
 0x36a   :  { %v3868_v29 = vpop.eup %3417  ;;  %v594_v48 = vsub.f32 %v3812_v32, %v570_v46 }
 0x36b   :  { %v661_v33 = vsel %vm534_vm4, %v3868_v29, 0.0  ;;  %v617_v59 = vmul.f32 1.442695, %v592_v9 }
 0x36c   :  { %v3870_v31 = vpop.eup %3419  ;;  %v621_v51 = vmul.f32 1.442695, %v594_v48 }
 0x36d   :  { %v646_v21 = vsel %vm534_vm4, %v3870_v31, 0.0 }
 0x36e   :  { %647 = vadd.xlane.f32.xlu0 %v646_v21  ;;  %662 = vadd.xlane.f32.xlu1 %v661_v33 }
 0x370   :  { %v576_v35 = vpop.xlane.xlu1 %575  ;;  %v573_v42 = vpop.xlane.xlu0 %572 }
 0x371   :  { %v596_v37 = vsub.f32 %v3824_v40, %v576_v35  ;;  %v598_v40 = vsub.f32 %v3810_v30, %v582_v36  ;;  %v595_v30 = vsub.f32 %v3822_v38, %v573_v42  ;;  %v583_v36 = vsub.f32 %v3772_v62, %v3839_v54 }
 0x373   :  { %v625_v39 = vmul.f32 1.442695, %v596_v37  ;;  %v629_v45 = vmul.f32 1.442695, %v598_v40  ;;  %v623_v32 = vmul.f32 1.442695, %v595_v30 }
 0x375   :  { %3421 = vpow2.f32 %v625_v39 }
 0x376   :  { %3423 = vpow2.f32 %v629_v45 }
 0x377   :  { %3425 = vpow2.f32 %v601_v50 }
 0x378   :  { %3427 = vpow2.f32 %v621_v51 }
 0x379   :  { %3429 = vpow2.f32 %v615_v58 }
 0x37a   :  { %3431 = vpow2.f32 %v623_v32 }
 0x37b   :  { %v3877_v41 = vpop.eup %3421  ;;  %3433 = vpow2.f32 %v617_v59 }
 0x37c   :  { %v670_v43 = vsel %vm534_vm4, %v3877_v41, 0.0 }
 0x37d   :  { %671 = vadd.xlane.f32.xlu0 %v670_v43  ;;  %774 = vrot.lane.b32.xlu2 %v3740_v25, %s3580_s27  ;;  %v3891_v25 = vpop.eup %3423 }
 0x37e   :  { %v676_v57 = vsel %vm534_vm4, %v3891_v25, 0.0  ;;  %v3898_v55 = vpop.eup %3425 }
 0x37f   :  { %v3900_v61 = vpop.eup %3427  ;;  %v634_v23 = vsel %vm534_vm4, %v3898_v55, 0.0 }
 0x380   :  { %v664_v0 = vsel %vm534_vm4, %v3900_v61, 0.0  ;;  %v3906_v38 = vpop.eup %3429 }
 0x381   :  { %v3908_v34 = vpop.eup %3431  ;;  %v655_v2 = vsel %vm534_vm4, %v3906_v38, 0.0 }
 0x382   :  { %v3912_v4 = vpop.eup %3433  ;;  %v667_v6 = vsel %vm534_vm4, %v3908_v34, 0.0 }
 0x383   :  { %v754_v44 = vpop.permute.xlu0 %753  ;;  %v658_v8 = vsel %vm534_vm4, %v3912_v4, 0.0 }
 0x384   :  { %766 = vmatpush.bf16.msra.mxu2 %v754_v44 }
 0x387   :  { %846 = vrot.lane.b32.xlu1 %v3761_v53, %s3574_s21 }
 0x391   :  { %888 = vrot.lane.b32.xlu0 %v3761_v53, %s3580_s27 }
 0x3a6   :  { %677 = vadd.xlane.f32.xlu2 %v676_v57 }
 0x3ae   :  { %635 = vadd.xlane.f32.xlu2 %v634_v23 }
 0x3b1   :  { %665 = vadd.xlane.f32.xlu1 %v664_v0 }
 0x3b6   :  { %656 = vadd.xlane.f32.xlu2 %v655_v2 }
 0x3b9   :  { %668 = vadd.xlane.f32.xlu1 %v667_v6 }
 0x3bb   :  { %659 = vadd.xlane.f32.xlu0 %v658_v8 }
 0x3c0   :  { %v639_v7 = vpop.xlane.xlu0 %638 }
 0x3c1   :  { %3435 = vrcp.f32 %v639_v7 }
 0x3c7   :  { %v3436_v13 = vpop.eup %3435 }
 0x3c8   :  { %v651_v10 = vpop.xlane.xlu1 %650  ;;  %v697_v17 = vmul.f32 %v3436_v13, %v3834_v49 }
 0x3d0   :  { %v642_v12 = vpop.xlane.xlu1 %641  ;;  %v654_v14 = vpop.xlane.xlu2 %653 }
 0x3d1   :  { %3437 = vrcp.f32 %v642_v12 }
 0x3d2   :  { %867 = vrot.lane.b32.xlu1 %v3761_v53, %s3578_s25  ;;  %3439 = vrcp.f32 %v654_v14 }
 0x3d3   :  { %3441 = vrcp.f32 %v651_v10 }
 0x3d7   :  { %v3438_v16 = vpop.eup %3437 }
 0x3d8   :  { %v698_v15 = vmul.f32 %v3438_v16, %v3849_v5  ;;  %v645_v20 = vpop.xlane.xlu2 %644  ;;  %v3440_v26 = vpop.eup %3439 }
 0x3d9   :  { %v3442_v27 = vpop.eup %3441  ;;  %v702_v19 = vmul.f32 %v3440_v26, %v3852_v11  ;;  %3443 = vrcp.f32 %v645_v20  ;;  %v675_v5 = vpop.xlane.xlu1 %674 }
 0x3da   :  { %v730_v24 = vpack.c.bf16 %v698_v15, %v697_v17  ;;  %v701_v28 = vmul.f32 %v3442_v27, %v3844_v63  ;;  %v599_v63 = vmul.f32 1.442695, %v583_v36 }
 0x3dc   :  { %3054 = vmatmul.msk.bf16.vlgmr.msrb.gmra.mxu3 %vm534_vm4, %v730_v24  ;;  %v773_v33 = vpack.c.bf16 %v702_v19, %v701_v28 }
 0x3df   :  { %v3444_v49 = vpop.eup %3443 }
 0x3e0   :  { %v775_v53 = vpop.permute.xlu2 %774  ;;  %v699_v37 = vmul.f32 %v3444_v49, %v3859_v18 }
 0x3e1   :  { %v648_v21 = vpop.xlane.xlu0 %647  ;;  %787 = vmatpush.bf16.msrb.mxu0 %v775_v53  ;;  %v663_v42 = vpop.xlane.xlu1 %662 }
 0x3e2   :  { %3445 = vrcp.f32 %v648_v21 }
 0x3e3   :  { %3447 = vpow2.f32 %v599_v63 }
 0x3e4   :  { %3056 = vmatmul.msk.bf16.vlgmr.msrb.gmra.mxu0 %vm534_vm4, %v773_v33  ;;  %3449 = vrcp.f32 %v675_v5 }
 0x3e8   :  { %v3446_v35 = vpop.eup %3445 }
 0x3e9   :  { %v700_v11 = vmul.f32 %v3446_v35, %v3870_v31  ;;  %v3448_v43 = vpop.eup %3447 }
 0x3ea   :  { %v631_v45 = vsel %vm534_vm4, %v3448_v43, 0.0  ;;  %v3450_v54 = vpop.eup %3449 }
 0x3eb   :  { %v752_v39 = vpack.c.bf16 %v700_v11, %v699_v37  ;;  %v709_v31 = vmul.f32 %v3450_v54, %v3862_v22 }
 0x3ed   :  { %3055 = vmatmul.msk.bf16.vlgmr.msra.gmra.mxu2 %vm534_vm4, %v752_v39 }
 0x3f0   :  { %v672_v40 = vpop.xlane.xlu0 %671 }
 0x3f9   :  { %v847_v44 = vpop.permute.xlu1 %846 }
 0x3fa   :  { %859 = vmatpush.bf16.msra.mxu3 %v847_v44 }
 0x3fc   :  { %632 = vadd.xlane.f32.xlu1 %v631_v45 }
 0x403   :  { %v889_v46 = vpop.permute.xlu0 %888 }
 0x404   :  { %901 = vmatpush.bf16.msra.mxu0 %v889_v46 }
 0x419   :  { %v678_v62 = vpop.xlane.xlu2 %677 }
 0x41a   :  { %3451 = vrcp.f32 %v678_v62 }
 0x41b   :  { %3453 = vrcp.f32 %v663_v42 }
 0x420   :  { %v3452_v18 = vpop.eup %3451 }
 0x421   :  { %v710_v47 = vmul.f32 %v3452_v18, %v3891_v25  ;;  %v3454_v51 = vpop.eup %3453  ;;  %v636_v8 = vpop.xlane.xlu2 %635 }
 0x422   :  { %v705_v57 = vmul.f32 %v3454_v51, %v3868_v29 }
 0x423   :  { %v887_v48 = vpack.c.bf16 %v710_v47, %v709_v31 }
 0x424   :  { %v666_v50 = vpop.xlane.xlu1 %665 }
 0x425   :  { %3455 = vrcp.f32 %v666_v50  ;;  %3060 = vmatmul.msk.bf16.vlgmr.msra.gmra.mxu0 %vm534_vm4, %v887_v48 }
 0x429   :  { %v657_v26 = vpop.xlane.xlu2 %656 }
 0x42b   :  { %v3456_v52 = vpop.eup %3455 }
 0x42c   :  { %v706_v30 = vmul.f32 %v3456_v52, %v3900_v61  ;;  %v669_v9 = vpop.xlane.xlu1 %668 }
 0x42d   :  { %3457 = vrcp.f32 %v669_v9 }
 0x42e   :  { %v844_v58 = vpack.c.bf16 %v706_v30, %v705_v57  ;;  %3459 = vrcp.f32 %v672_v40  ;;  %v660_v17 = vpop.xlane.xlu0 %659 }
 0x42f   :  { %3461 = vrcp.f32 %v636_v8 }
 0x430   :  { %3058 = vmatmul.msk.bf16.vlgmr.msra.gmra.mxu3 %vm534_vm4, %v844_v58 }
 0x433   :  { %v3458_v22 = vpop.eup %3457 }
 0x434   :  { %v3460_v25 = vpop.eup %3459  ;;  %v707_v32 = vmul.f32 %v3458_v22, %v3908_v34 }
 0x435   :  { %v708_v59 = vmul.f32 %v3460_v25, %v3877_v41  ;;  %v3462_v41 = vpop.eup %3461 }
 0x436   :  { %v696_v13 = vmul.f32 %v3462_v41, %v3898_v55 }
 0x437   :  { %v866_v0 = vpack.c.bf16 %v708_v59, %v707_v32 }
 0x444   :  { %v868_v23 = vpop.permute.xlu1 %867 }
 0x445   :  { %880 = vmatpush.bf16.msrb.mxu2 %v868_v23 }
 0x448   :  { %3059 = vmatmul.msk.bf16.vlgmr.msrb.gmra.mxu2 %vm534_vm4, %v866_v0 }
 0x45f   :  { %v747_v29 = vpop.f32.mrf.mxu3 }
 0x461   :  { %v789_v2 = vpop.f32.mrf.mxu0 }
 0x467   :  { %v749_v61 = vpop.f32.mrf.mxu3 }
 0x468   :  { %v3316_v6 = vpack.i.bf16 %v749_v61, %v747_v29 }
 0x469   :  { %v791_v10 = vpop.f32.mrf.mxu0 }
 0x46a   :  { %3317 = vrot.lane.b32.xlu2 %v3316_v6, %s3581_s30  ;;  %v3326_v12 = vpack.i.bf16 %v791_v10, %v789_v2 }
 0x46f   :  { %v633_v7 = vpop.xlane.xlu1 %632 }
 0x470   :  { %3463 = vrcp.f32 %v633_v7  ;;  %v768_v34 = vpop.f32.mrf.mxu2 }
 0x471   :  { %3465 = vrcp.f32 %v660_v17 }
 0x472   :  { %3327 = vrot.lane.b32.xlu2 %v3326_v12, %s3582_s0  ;;  %3467 = vrcp.f32 %v657_v26 }
 0x476   :  { %v3464_v14 = vpop.eup %3463 }
 0x477   :  { %v695_v16 = vmul.f32 %v3464_v14, %v3448_v43  ;;  %v3466_v27 = vpop.eup %3465  ;;  %v3278_v14 = vld [vmem:[%s4606_s1 + $0xe0] sm:$0xff] }
 0x478   :  { %v770_v20 = vpop.f32.mrf.mxu2  ;;  %v3468_v19 = vpop.eup %3467  ;;  %v704_v28 = vmul.f32 %v3466_v27, %v3912_v4  ;;  %v3269_v4 = vld [vmem:[%s4606_s1 + $0x98] sm:$0xff]  ;;  %1338 = vmatpush.bf16.msrb.mxu0 %v3278_v14 }
 0x479   :  { %v711_v15 = vpack.c.bf16 %v696_v13, %v695_v16  ;;  %v3321_v24 = vpack.i.bf16 %v770_v20, %v768_v34  ;;  %v703_v53 = vmul.f32 %v3468_v19, %v3906_v38  ;;  %v3270_v38 = vld [vmem:[%s4606_s1 + $0xa0] sm:$0xff]  ;;  %v3277_v13 = vld [vmem:[%s4606_s1 + $0xd8] sm:$0xff] }
 0x47a   :  { %v1308_v16 = vld [vmem:[%s4608_s2 + $0x20] sm:$0xff] }
 0x47b   :  { %3053 = vmatmul.msk.bf16.vlgmr.msrb.gmra.mxu1 %vm534_vm4, %v711_v15  ;;  %3322 = vrot.lane.b32.xlu1 %v3321_v24, %s3583_s4  ;;  %v825_v55 = vpack.c.bf16 %v704_v28, %v703_v53  ;;  %v1314_v17 = vpack.c.bf16 %v1308_v16, %v1308_v16  ;;  %v3380_v15 = vld [vmem:[%s4608_s2 + $0x38] ss:$0 sm:$0xff] }
 0x47c   :  { %970 = vmatpush.bf16.msrb.mxu1 %v3270_v38  ;;  %1339 = vmatpush.bf16.msrb.mxu0 %v3277_v13 }
 0x47f   :  { %3107 = vmatmul.msk.bf16.vlgmr.msrb.gmra.mxu0 %vm254_vm2, %v1314_v17 }
 0x480   :  { %971 = vmatpush.bf16.msrb.mxu1 %v3269_v4 }
 0x48b   :  { %3057 = vmatmul.msk.bf16.vlgmr.msra.gmra.mxu1 %vm534_vm4, %v825_v55 }
 0x4a2   :  { %v903_v33 = vpop.f32.mrf.mxu0 }
 0x4aa   :  { %v905_v35 = vpop.f32.mrf.mxu0 }
 0x4ab   :  { %v3341_v36 = vpack.i.bf16 %v905_v35, %v903_v33 }
 0x4b3   :  { %v861_v21 = vpop.f32.mrf.mxu3 }
 0x4bb   :  { %v863_v49 = vpop.f32.mrf.mxu3 }
 0x4bc   :  { %v3331_v5 = vpack.i.bf16 %v863_v49, %v861_v21 }
 0x4be   :  { %3332 = vrot.lane.b32.xlu2 %v3331_v5, %s3581_s30 }
 0x4c4   :  { %v3318_v63 = vpop.permute.xlu2 %3317 }
 0x4c5   :  { %v3319_v43 = vunpack.i.l.bf16 %v3318_v63  ;;  %v3320_v62 = vunpack.i.h.bf16 %v3318_v63 }
 0x4c6   :  { %3342 = vrot.lane.b32.xlu2 %v3341_v36, %s3582_s0 }
 0x4cb   :  { %v882_v37 = vpop.f32.mrf.mxu2 }
 0x4cc   :  { %v3328_v45 = vpop.permute.xlu2 %3327 }
 0x4cd   :  { %v3330_v47 = vunpack.i.h.bf16 %v3328_v45  ;;  %v3329_v48 = vunpack.i.l.bf16 %v3328_v45 }
 0x4d3   :  { %v884_v11 = vpop.f32.mrf.mxu2 }
 0x4d4   :  { %v3336_v39 = vpack.i.bf16 %v884_v11, %v882_v37  ;;  %v3584_v11 = vmov 32.0  }
 0x4d5   :  { %3469 = vrcp.f32 %v3584_v11 }
 0x4d6   :  { %3337 = vrot.lane.b32.xlu0 %v3336_v39, %s3583_s4 }
 0x4ed   :  { %v3323_v44 = vpop.permute.xlu1 %3322 }
 0x4ee   :  { %v3324_v46 = vunpack.i.l.bf16 %v3323_v44  ;;  %v3325_v54 = vunpack.i.h.bf16 %v3323_v44 }
 0x4f8   :  { %v725_v42 = vpop.f32.mrf.mxu1 }
 0x4f9   :  { %v818_v40 = vsel %vm329_vm3, %v725_v42, %v3319_v43 }
 0x4fa   :  { %v820_v18 = vsel %vm534_vm4, %v818_v40, %v3324_v46 }
 0x4fb   :  { %v823_v52 = vsel %vm822_vm5, %v820_v18, %v3329_v48 }
 0x500   :  { %v727_v31 = vpop.f32.mrf.mxu1 }
 0x501   :  { %v819_v50 = vsel %vm329_vm3, %v727_v31, %v3320_v62  ;;  %v3381_v31 = vld [vmem:[%s4608_s2 + $0x70] ss:$0 sm:$0xff] }
 0x502   :  { %v821_v51 = vsel %vm534_vm4, %v819_v50, %v3325_v54 }
 0x503   :  { %v824_v57 = vsel %vm822_vm5, %v821_v51, %v3330_v47  ;;  %v1341_v47 = vpop.f32.mrf.mxu0 }
 0x504   :  { %v942_v30 = vpack.c.bf16 %v824_v57, %v823_v52  ;;  %v1342_v48 = vadd.f32 %v3381_v31, %v1341_v47 }
 0x506   :  { %3069 = vmatmul.msk.bf16.vlgmr.msrb.gmra.mxu1 %vm254_vm2, %v942_v30  ;;  %v4010_v50 = vpack.c.bf16 %v1342_v48, %v1342_v48 }
 0x508   :  { %v839_v9 = vpop.f32.mrf.mxu1 }
 0x50b   :  { %v1343_v51 = vpop.f32.mrf.mxu0 }
 0x50c   :  { %v1344_v52 = vadd.f32 %v3381_v31, %v1343_v51 }
 0x50e   :  { %v4018_v57 = vpack.c.bf16 %v1344_v52, %v1344_v52 }
 0x510   :  { %v841_v23 = vpop.f32.mrf.mxu1 }
 0x518   :  { %v3333_v58 = vpop.permute.xlu2 %3332 }
 0x519   :  { %v3335_v22 = vunpack.i.h.bf16 %v3333_v58  ;;  %v3334_v25 = vunpack.i.l.bf16 %v3333_v58 }
 0x51b   :  { %v932_v2 = vsel %vm329_vm3, %v839_v9, %v3334_v25  ;;  %v933_v61 = vsel %vm329_vm3, %v841_v23, %v3335_v22 }
 0x520   :  { %v3343_v32 = vpop.permute.xlu2 %3342 }
 0x521   :  { %v3345_v6 = vunpack.i.h.bf16 %v3343_v32  ;;  %v3344_v8 = vunpack.i.l.bf16 %v3343_v32 }
 0x548   :  { %v3338_v59 = vpop.permute.xlu0 %3337 }
 0x549   :  { %v3340_v0 = vunpack.i.h.bf16 %v3338_v59  ;;  %v3339_v29 = vunpack.i.l.bf16 %v3338_v59 }
 0x54b   :  { %v935_v10 = vsel %vm534_vm4, %v933_v61, %v3340_v0  ;;  %v934_v7 = vsel %vm534_vm4, %v932_v2, %v3339_v29  ;;  %v3280_v2 = vld [vmem:[%s4606_s1 + $0xf0] sm:$0xff]  ;;  %v3279_v61 = vld [vmem:[%s4606_s1 + $0xe8] sm:$0xff] }
 0x54c   :  { %v936_v12 = vsel %vm822_vm5, %v934_v7, %v3344_v8  ;;  %v937_v34 = vsel %vm822_vm5, %v935_v10, %v3345_v6  ;;  %1373 = vmatpush.bf16.msra.mxu0 %v3280_v2  ;;  %v3272_v6 = vld [vmem:[%s4606_s1 + $0xb0] sm:$0xff]  ;;  %v3585_v7 = vmov 0  }
 0x54d   :  { %v943_v41 = vpack.c.bf16 %v937_v34, %v936_v12  ;;  %1126 = vmatpush.bf16.msrb.mxu3 %v3272_v6  ;;  %v3271_v34 = vld [vmem:[%s4606_s1 + $0xa8] sm:$0xff] }
 0x54f   :  { %3070 = vmatmul.msk.bf16.gmra.mxu1 %vm254_vm2, %v943_v41 }
 0x550   :  { %1374 = vmatpush.bf16.msra.mxu0 %v3279_v61 }
 0x551   :  { %1127 = vmatpush.bf16.msrb.mxu3 %v3271_v34 }
 0x553   :  { %1375 = vmatmul.bf16.vlgmr.msra.gmra.mxu0 %v3585_v7 }
 0x583   :  { %v973_v20 = vpop.f32.mrf.mxu1 }
 0x584   :  { %v974_v24 = vadd.f32 %v3380_v15, %v973_v20 }
 0x586   :  { %v983_v26 = vadd.f32 %v974_v24, %v3696_v56 }
 0x588   :  { %v987_v27 = vsel %vm254_vm2, %v983_v26, 0.0 }
 0x589   :  { %988 = vadd.xlane.f32.xlu1 %v987_v27 }
 0x58b   :  { %v975_v19 = vpop.f32.mrf.mxu1 }
 0x58c   :  { %v976_v28 = vadd.f32 %v3380_v15, %v975_v19 }
 0x58e   :  { %v984_v53 = vadd.f32 %v976_v28, %v3704_v60  ;;  %v3470_v60 = vpop.eup %3469 }
 0x58f   :  { %v1000_v39 = vmul.f32 32.0, %v3470_v60  ;;  %vm1004_vm6 = vweird.f32 %v3470_v60 }
 0x590   :  { %v990_v55 = vsel %vm254_vm2, %v984_v53, 0.0 }
 0x591   :  { %991 = vadd.xlane.f32.xlu2 %v990_v55  ;;  %v1001_v38 = vsub.f32 1.0, %v1000_v39 }
 0x593   :  { %v1002_v4 = vmul.f32 %v3470_v60, %v1001_v38 }
 0x595   :  { %v1003_v63 = vadd.f32 %v3470_v60, %v1002_v4 }
 0x597   :  { %v3993_v42 = vsel %vm1004_vm6, %v3470_v60, %v1003_v63 }
 0x5cc   :  { %v978_v21 = vpop.f32.mrf.mxu1 }
 0x5cd   :  { %v979_v33 = vadd.f32 %v3380_v15, %v978_v21  ;;  %v3276_v21 = vld [vmem:[%s4606_s1 + $0xd0] sm:$0xff] }
 0x5ce   :  { %1189 = vmatpush.bf16.msra.mxu2 %v3276_v21 }
 0x5cf   :  { %v985_v49 = vadd.f32 %v979_v33, %v3709_v1 }
 0x5d1   :  { %v993_v5 = vsel %vm254_vm2, %v985_v49, 0.0 }
 0x5d2   :  { %994 = vadd.xlane.f32.xlu0 %v993_v5 }
 0x5d4   :  { %v980_v35 = vpop.f32.mrf.mxu1 }
 0x5d5   :  { %v981_v36 = vadd.f32 %v3380_v15, %v980_v35 }
 0x5d7   :  { %v986_v56 = vadd.f32 %v981_v36, %v3711_v3 }
 0x5d9   :  { %v996_v37 = vsel %vm254_vm2, %v986_v56, 0.0 }
 0x5da   :  { %997 = vadd.xlane.f32.xlu1 %v996_v37 }
 0x5fc   :  { %v989_v1 = vpop.xlane.xlu1 %988 }
 0x5fd   :  { %v1006_v43 = vmul.f32 %v3993_v42, %v989_v1 }
 0x5ff   :  { %v3996_v44 = vsub.f32 %v983_v26, %v1006_v43 }
 0x601   :  { %v1014_v3 = vmul.f32 %v3996_v44, %v3996_v44 }
 0x603   :  { %v1018_v40 = vsel %vm254_vm2, %v1014_v3, 0.0  ;;  %v3275_v3 = vld [vmem:[%s4606_s1 + $0xc8] sm:$0xff] }
 0x604   :  { %v992_v45 = vpop.xlane.xlu2 %991  ;;  %1019 = vadd.xlane.f32.xlu2 %v1018_v40  ;;  %1190 = vmatpush.bf16.msra.mxu2 %v3275_v3  ;;  %v3274_v40 = vld [vmem:[%s4606_s1 + $0xc0] sm:$0xff] }
 0x605   :  { %v1007_v46 = vmul.f32 %v3993_v42, %v992_v45 }
 0x607   :  { %v4002_v62 = vsub.f32 %v984_v53, %v1007_v46  ;;  %v3273_v46 = vld [vmem:[%s4606_s1 + $0xb8] sm:$0xff] }
 0x608   :  { %1191 = vmatpush.bf16.msra.mxu2 %v3274_v40 }
 0x609   :  { %v1015_v54 = vmul.f32 %v4002_v62, %v4002_v62 }
 0x60b   :  { %v1021_v18 = vsel %vm254_vm2, %v1015_v54, 0.0 }
 0x60c   :  { %1022 = vadd.xlane.f32.xlu1 %v1021_v18  ;;  %1192 = vmatpush.bf16.msra.mxu2 %v3273_v46 }
 0x625   :  { %1406 = vrot.lane.b32.xlu1 %v4010_v50, %s3575_s22 }
 0x62d   :  { %1452 = vrot.lane.b32.xlu1 %v4010_v50, %s3577_s24 }
 0x635   :  { %1450 = vrot.lane.b32.xlu1 %v4010_v50, %s3580_s27 }
 0x63d   :  { %1544 = vrot.lane.b32.xlu1 %v4018_v57, %s3577_s24 }
 0x645   :  { %v995_v30 = vpop.xlane.xlu0 %994  ;;  %1475 = vrot.lane.b32.xlu1 %v4018_v57, %s3576_s23 }
 0x646   :  { %v1008_v58 = vmul.f32 %v3993_v42, %v995_v30 }
 0x648   :  { %v4025_v9 = vsub.f32 %v985_v49, %v1008_v58  ;;  %v4074_v49 = vld [vmem:[%s4608_s2 + $0x40] ss:$0 sm:$0xff] }
 0x64a   :  { %v1016_v22 = vmul.f32 %v4025_v9, %v4025_v9 }
 0x64c   :  { %v1024_v25 = vsel %vm254_vm2, %v1016_v22, 0.0 }
 0x64d   :  { %v998_v32 = vpop.xlane.xlu1 %997  ;;  %1025 = vadd.xlane.f32.xlu2 %v1024_v25 }
 0x64e   :  { %v1009_v59 = vmul.f32 %v3993_v42, %v998_v32 }
 0x650   :  { %v4031_v23 = vsub.f32 %v986_v56, %v1009_v59  ;;  %v4080_v56 = vld [vmem:[%s4608_s2 + $0x48] ss:$0 sm:$0xff] }
 0x652   :  { %v1017_v0 = vmul.f32 %v4031_v23, %v4031_v23 }
 0x654   :  { %v1027_v29 = vsel %vm254_vm2, %v1017_v0, 0.0 }
 0x655   :  { %1028 = vadd.xlane.f32.xlu0 %v1027_v29 }
 0x665   :  { %1429 = vrot.lane.b32.xlu2 %v4010_v50, %s3579_s26 }
 0x669   :  { %1404 = vrot.lane.b32.xlu0 %v4010_v50, %s3574_s21 }
 0x66d   :  { %1498 = vrot.lane.b32.xlu2 %v4018_v57, %s3575_s22 }
 0x671   :  { %1427 = vrot.lane.b32.xlu0 %v4010_v50, %s3578_s25 }
 0x675   :  { %1496 = vrot.lane.b32.xlu2 %v4018_v57, %s3574_s21 }
 0x677   :  { %v1020_v8 = vpop.xlane.xlu2 %1019 }
 0x678   :  { %v1030_v10 = vmul.f32 %v1020_v8, %v3993_v42 }
 0x679   :  { %1521 = vrot.lane.b32.xlu0 %v4018_v57, %s3579_s26 }
 0x67a   :  { %v1034_v12 = vadd.f32 1e-05, %v1030_v10 }
 0x67c   :  { %3471 = vrsqrt.f32 %v1034_v12  ;;  %vm1044_vm8 = vweird.f32 %v1034_v12 }
 0x67d   :  { %1542 = vrot.lane.b32.xlu2 %v4018_v57, %s3580_s27 }
 0x67f   :  { %v1023_v41 = vpop.xlane.xlu1 %1022 }
 0x680   :  { %v1031_v14 = vmul.f32 %v1023_v41, %v3993_v42 }
 0x681   :  { %1519 = vrot.lane.b32.xlu0 %v4018_v57, %s3578_s25 }
 0x682   :  { %v3472_v13 = vpop.eup %3471  ;;  %v1035_v16 = vadd.f32 1e-05, %v1031_v14 }
 0x683   :  { %v1039_v17 = vmul.f32 %v3472_v13, %v1034_v12  ;;  %vm1045_vm7 = vweird.f32 %v3472_v13 }
 0x684   :  { %3473 = vrsqrt.f32 %v1035_v16  ;;  %vm1046_vm9 = vmor %vm1044_vm8, %vm1045_vm7  ;;  %vm1054_vm11 = vweird.f32 %v1035_v16  ;;  %vm1666_vm8 = vcmask 1043456  }
 0x685   :  { %v1040_v15 = vmul.f32 %v3472_v13, %v1039_v17 }
 0x687   :  { %v1041_v20 = vmul.f32 0.5, %v1040_v15 }
 0x689   :  { %v1042_v24 = vsub.f32 1.5, %v1041_v20  ;;  %1383 = vrot.lane.b32.xlu0 %v4010_v50, %s3576_s23 }
 0x68a   :  { %v3474_v26 = vpop.eup %3473 }
 0x68b   :  { %v1043_v27 = vmul.f32 %v3472_v13, %v1042_v24  ;;  %v1049_v19 = vmul.f32 %v3474_v26, %v1035_v16  ;;  %vm1055_vm10 = vweird.f32 %v3474_v26 }
 0x68c   :  { %vm1056_vm12 = vmor %vm1054_vm11, %vm1055_vm10 }
 0x68d   :  { %v1050_v28 = vmul.f32 %v3474_v26, %v1049_v19  ;;  %v1047_v53 = vsel %vm1046_vm9, %v3472_v13, %v1043_v27 }
 0x68e   :  { %v1078_v5 = vmul.f32 %v1047_v53, %v3996_v44 }
 0x68f   :  { %v1051_v55 = vmul.f32 0.5, %v1050_v28 }
 0x690   :  { %v1084_v37 = vmul.f32 %v4074_v49, %v1078_v5  ;;  %v1376_v5 = vpop.f32.mrf.mxu0 }
 0x691   :  { %v1052_v33 = vsub.f32 1.5, %v1051_v55 }
 0x692   :  { %v4087_v4 = vadd.f32 %v4080_v56, %v1084_v37 }
 0x693   :  { %v1053_v35 = vmul.f32 %v3474_v26, %v1052_v33 }
 0x695   :  { %v1057_v36 = vsel %vm1056_vm12, %v3474_v26, %v1053_v35  ;;  %v3384_v35 = vld [vmem:[%s4608_s2 + $0x78] ss:$0 sm:$0xff] }
 0x696   :  { %v1079_v11 = vmul.f32 %v1057_v36, %v4002_v62 }
 0x697   :  { %v1407_v60 = vpop.permute.xlu1 %1406 }
 0x698   :  { %v1085_v39 = vmul.f32 %v4074_v49, %v1079_v11  ;;  %v1412_v38 = vsel %vm329_vm3, %v1407_v60, 0  ;;  %v1378_v36 = vpop.f32.mrf.mxu0 }
 0x699   :  { %1421 = vmatpush.bf16.xpose.msra.mxu3 %v1412_v38  ;;  %v1379_v37 = vadd.f32 %v3384_v35, %v1378_v36 }
 0x69a   :  { %v4090_v63 = vadd.f32 %v4080_v56, %v1085_v39 }
 0x69b   :  { %v4140_v60 = vpack.c.bf16 %v1379_v37, %v1379_v37 }
 0x69c   :  { %v1098_v1 = vpack.c.bf16 %v4090_v63, %v4087_v4 }
 0x69e   :  { %3079 = vmatmul.msk.bf16.vlgmr.msrb.gmra.mxu3 %vm254_vm2, %v1098_v1  ;;  %v3385_v1 = vld [vmem:[%s4608_s2 + $0x50] ss:$0 sm:$0xff] }
 0x69f   :  { %v1453_v43 = vpop.permute.xlu1 %1452 }
 0x6a0   :  { %v1458_v44 = vsel %vm329_vm3, %v1453_v43, 0 }
 0x6a1   :  { %1467 = vmatpush.bf16.xpose.msrb.mxu0 %v1458_v44 }
 0x6a7   :  { %v1451_v45 = vpop.permute.xlu1 %1450 }
 0x6a8   :  { %3119 = vmatmul.msk.bf16.vlgmr.msrb.gmra.mxu0 %vm329_vm3, %v1451_v45 }
 0x6af   :  { %v1545_v62 = vpop.permute.xlu1 %1544 }
 0x6b0   :  { %v1550_v54 = vsel %vm329_vm3, %v1545_v62, 0 }
 0x6b1   :  { %1559 = vmatpush.bf16.xpose.msra.mxu0 %v1550_v54 }
 0x6b7   :  { %v1476_v55 = vpop.permute.xlu1 %1475 }
 0x6c0   :  { %v1026_v18 = vpop.xlane.xlu2 %1025 }
 0x6c1   :  { %v1032_v31 = vmul.f32 %v1026_v18, %v3993_v42 }
 0x6c3   :  { %v1036_v47 = vadd.f32 1e-05, %v1032_v31 }
 0x6c5   :  { %3475 = vrsqrt.f32 %v1036_v47  ;;  %vm1064_vm14 = vweird.f32 %v1036_v47 }
 0x6c8   :  { %v1430_v48 = vpop.permute.xlu2 %1429  ;;  %v1029_v51 = vpop.xlane.xlu0 %1028 }
 0x6c9   :  { %v1435_v52 = vsel %vm329_vm3, %v1430_v48, 0  ;;  %v1033_v30 = vmul.f32 %v1029_v51, %v3993_v42 }
 0x6ca   :  { %1444 = vmatpush.bf16.xpose.msrb.mxu2 %v1435_v52 }
 0x6cb   :  { %v3476_v58 = vpop.eup %3475  ;;  %v1037_v22 = vadd.f32 1e-05, %v1033_v30 }
 0x6cc   :  { %v1059_v25 = vmul.f32 %v3476_v58, %v1036_v47  ;;  %vm1065_vm13 = vweird.f32 %v3476_v58 }
 0x6cd   :  { %3477 = vrsqrt.f32 %v1037_v22  ;;  %vm1066_vm15 = vmor %vm1064_vm14, %vm1065_vm13  ;;  %vm1074_vm6 = vweird.f32 %v1037_v22 }
 0x6ce   :  { %v1060_v32 = vmul.f32 %v3476_v58, %v1059_v25 }
 0x6d0   :  { %v1061_v59 = vmul.f32 0.5, %v1060_v32  ;;  %v1499_v0 = vpop.permute.xlu2 %1498 }
 0x6d1   :  { %v1504_v29 = vsel %vm329_vm3, %v1499_v0, 0 }
 0x6d2   :  { %v1062_v2 = vsub.f32 1.5, %v1061_v59  ;;  %1513 = vmatpush.bf16.xpose.msrb.mxu3 %v1504_v29 }
 0x6d3   :  { %v3478_v61 = vpop.eup %3477 }
 0x6d4   :  { %v1063_v6 = vmul.f32 %v3476_v58, %v1062_v2  ;;  %v1069_v8 = vmul.f32 %v3478_v61, %v1037_v22  ;;  %vm1075_vm1 = vweird.f32 %v3478_v61 }
 0x6d5   :  { %vm1076_vm7 = vmor %vm1074_vm6, %vm1075_vm1 }
 0x6d6   :  { %v1070_v10 = vmul.f32 %v3478_v61, %v1069_v8  ;;  %v1067_v7 = vsel %vm1066_vm15, %v3476_v58, %v1063_v6 }
 0x6d7   :  { %v1080_v14 = vmul.f32 %v1067_v7, %v4025_v9 }
 0x6d8   :  { %v1071_v12 = vmul.f32 0.5, %v1070_v10  ;;  %v1497_v34 = vpop.permute.xlu2 %1496 }
 0x6d9   :  { %v1086_v20 = vmul.f32 %v4074_v49, %v1080_v14 }
 0x6da   :  { %v1072_v41 = vsub.f32 1.5, %v1071_v12 }
 0x6db   :  { %v1405_v13 = vpop.permute.xlu0 %1404  ;;  %v4119_v19 = vadd.f32 %v4080_v56, %v1086_v20 }
 0x6dc   :  { %v1073_v16 = vmul.f32 %v3478_v61, %v1072_v41 }
 0x6de   :  { %v1077_v17 = vsel %vm1076_vm7, %v3478_v61, %v1073_v16 }
 0x6df   :  { %v1081_v15 = vmul.f32 %v1077_v17, %v4031_v23 }
 0x6e0   :  { %v1543_v24 = vpop.permute.xlu2 %1542 }
 0x6e1   :  { %3123 = vmatmul.msk.bf16.vlgmr.msra.gmra.mxu0 %vm329_vm3, %v1543_v24  ;;  %v1087_v26 = vmul.f32 %v4074_v49, %v1081_v15  ;;  %v1481_v49 = vsel %vm329_vm3, %v1476_v55, 0 }
 0x6e3   :  { %v4116_v27 = vpop.permute.xlu0 %1427  ;;  %v4122_v9 = vadd.f32 %v4080_v56, %v1087_v26  ;;  %v1377_v56 = vadd.f32 %v3384_v35, %v1376_v5 }
 0x6e5   :  { %v1099_v28 = vpack.c.bf16 %v4122_v9, %v4119_v19  ;;  %v4138_v11 = vpack.c.bf16 %v1377_v56, %v1377_v56 }
 0x6e7   :  { %3080 = vmatmul.msk.bf16.gmra.mxu3 %vm254_vm2, %v1099_v28  ;;  %v1668_v39 = vsel %vm1666_vm8, %v4138_v11, 0 }
 0x6eb   :  { %v1522_v23 = vpop.permute.xlu0 %1521 }
 0x6f3   :  { %v4127_v53 = vpop.permute.xlu0 %1519 }
 0x6f7   :  { %3117 = vmatmul.msk.bf16.vlgmr.msra.gmra.mxu3 %vm329_vm3, %v1405_v13 }
 0x6fb   :  { %v1384_v21 = vpop.permute.xlu0 %1383 }
 0x6fc   :  { %v1389_v33 = vsel %vm329_vm3, %v1384_v21, 0 }
 0x6fd   :  { %1398 = vmatpush.bf16.xpose.msra.mxu1 %v1389_v33 }
 0x704   :  { %3116 = vmatmul.msk.bf16.vlgmr.msra.gmra.mxu1 %vm329_vm3, %v4010_v50  ;;  %v1771_v50 = vsel %vm1666_vm8, %v4140_v60, 0 }
 0x705   :  { %1490 = vmatpush.bf16.xpose.msrb.mxu1 %v1481_v49 }
 0x707   :  { %3121 = vmatmul.msk.bf16.vlgmr.msrb.gmra.mxu3 %vm329_vm3, %v1497_v34 }
 0x70d   :  { %1677 = vmatpush.bf16.msra.mxu1 %v1668_v39 }
 0x714   :  { %3120 = vmatmul.msk.bf16.vlgmr.msrb.gmra.mxu1 %vm329_vm3, %v4018_v57  ;;  %v1527_v57 = vsel %vm329_vm3, %v1522_v23, 0 }
 0x715   :  { %1780 = vmatpush.bf16.msrb.mxu1 %v1771_v50 }
 0x721   :  { %v1129_v38 = vpop.f32.mrf.mxu3 }
 0x722   :  { %v1130_v3 = vadd.f32 %v3385_v1, %v1129_v38 }
 0x724   :  { %v1139_v62 = vmax.f32 %v1130_v3, 0.0 }
 0x725   :  { %v1469_v43 = vpop.f32.mrf.mxu0 }
 0x726   :  { %v1568_v44 = vmul.f32 0.35355338, %v1469_v43 }
 0x728   :  { %v1582_v40 = vsel %vm329_vm3, %v1568_v44, -inf }
 0x729   :  { %v1131_v45 = vpop.f32.mrf.mxu3  ;;  %1583 = vmax.xlane.f32.xlu1 %v1582_v40 }
 0x72a   :  { %v1132_v46 = vadd.f32 %v3385_v1, %v1131_v45 }
 0x72c   :  { %v1140_v54 = vmax.f32 %v1132_v46, 0.0 }
 0x72d   :  { %v1471_v18 = vpop.f32.mrf.mxu0 }
 0x72e   :  { %v1151_v31 = vpack.c.bf16 %v1140_v54, %v1139_v62 }
 0x730   :  { %3097 = vmatmul.msk.bf16.vlgmr.msra.gmra.mxu2 %vm125_vm0, %v1151_v31 }
 0x731   :  { %1536 = vmatpush.bf16.xpose.msra.mxu2 %v1527_v57 }
 0x75e   :  { %v1561_v47 = vpop.f32.mrf.mxu0 }
 0x75f   :  { %v1572_v48 = vmul.f32 0.35355338, %v1561_v47 }
 0x761   :  { %v1594_v51 = vsel %vm329_vm3, %v1572_v48, -inf }
 0x762   :  { %1595 = vmax.xlane.f32.xlu1 %v1594_v51 }
 0x766   :  { %v1563_v52 = vpop.f32.mrf.mxu0 }
 0x76a   :  { %v1134_v30 = vpop.f32.mrf.mxu3 }
 0x76b   :  { %v1135_v58 = vadd.f32 %v3385_v1, %v1134_v30 }
 0x76d   :  { %v1141_v32 = vmax.f32 %v1135_v58, 0.0 }
 0x772   :  { %v1136_v22 = vpop.f32.mrf.mxu3 }
 0x773   :  { %v1137_v25 = vadd.f32 %v3385_v1, %v1136_v22 }
 0x775   :  { %v1142_v59 = vmax.f32 %v1137_v25, 0.0 }
 0x777   :  { %v1152_v0 = vpack.c.bf16 %v1142_v59, %v1141_v32 }
 0x779   :  { %3098 = vmatmul.msk.bf16.gmra.mxu2 %vm125_vm0, %v1152_v0 }
 0x77a   :  { %v1423_v29 = vpop.f32.mrf.mxu3 }
 0x77b   :  { %v1566_v10 = vmul.f32 0.35355338, %v1423_v29 }
 0x77d   :  { %v1576_v34 = vsel %vm329_vm3, %v1566_v10, -inf }
 0x781   :  { %v1400_v2 = vpop.f32.mrf.mxu1 }
 0x782   :  { %v4156_v61 = vmul.f32 0.35355338, %v1400_v2  ;;  %v1425_v6 = vpop.f32.mrf.mxu3 }
 0x784   :  { %v1573_v8 = vsel %vm329_vm3, %v4156_v61, -inf }
 0x785   :  { %1574 = vmax.xlane.f32.xlu2 %v1573_v8 }
 0x789   :  { %v1402_v7 = vpop.f32.mrf.mxu1  ;;  %3118 = vmatmul.msk.bf16.vlgmr.msrb.gmra.mxu2 %vm329_vm3, %v4116_v27 }
 0x78a   :  { %v1515_v12 = vpop.f32.mrf.mxu3 }
 0x78b   :  { %v1570_v28 = vmul.f32 0.35355338, %v1515_v12 }
 0x78d   :  { %1577 = vmax.xlane.f32.xlu2 %v1576_v34  ;;  %v1588_v23 = vsel %vm329_vm3, %v1570_v28, -inf }
 0x791   :  { %v1492_v41 = vpop.f32.mrf.mxu1 }
 0x792   :  { %v4163_v14 = vmul.f32 0.35355338, %v1492_v41  ;;  %v1517_v13 = vpop.f32.mrf.mxu3 }
 0x794   :  { %v1585_v16 = vsel %vm329_vm3, %v4163_v14, -inf }
 0x795   :  { %1586 = vmax.xlane.f32.xlu1 %v1585_v16 }
 0x799   :  { %v1494_v17 = vpop.f32.mrf.mxu1  ;;  %3122 = vmatmul.msk.bf16.vlgmr.msra.gmra.mxu2 %vm329_vm3, %v4127_v53 }
 0x79c   :  { %v1584_v15 = vpop.xlane.xlu1 %1583 }
 0x79d   :  { %v1600_v20 = vsub.f32 %v1568_v44, %v1584_v15 }
 0x79f   :  { %v1611_v24 = vmul.f32 1.442695, %v1600_v20 }
 0x7a1   :  { %3479 = vpow2.f32 %v1611_v24 }
 0x7a7   :  { %v4169_v26 = vpop.eup %3479 }
 0x7a8   :  { %v1630_v27 = vsel %vm329_vm3, %v4169_v26, 0.0 }
 0x7a9   :  { %1631 = vadd.xlane.f32.xlu2 %v1630_v27 }
 0x7b1   :  { %1589 = vmax.xlane.f32.xlu2 %v1588_v23 }
 0x7b3   :  { %v4176_v33 = vpop.f32.mrf.mxu2 }
 0x7bb   :  { %v4182_v35 = vpop.f32.mrf.mxu2 }
 0x7c9   :  { %1707 = vrot.lane.b32.xlu2 %v4138_v11, %s3578_s25 }
 0x7d5   :  { %v1596_v55 = vpop.xlane.xlu1 %1595 }
 0x7d6   :  { %v1604_v21 = vsub.f32 %v1572_v48, %v1596_v55 }
 0x7d8   :  { %v1619_v53 = vmul.f32 1.442695, %v1604_v21 }
 0x7da   :  { %3481 = vpow2.f32 %v1619_v53 }
 0x7e0   :  { %v4178_v49 = vpop.eup %3481 }
 0x7e1   :  { %v1642_v5 = vsel %vm329_vm3, %v4178_v49, 0.0 }
 0x7f2   :  { %1643 = vadd.xlane.f32.xlu2 %v1642_v5 }
 0x7f8   :  { %v1575_v36 = vpop.xlane.xlu2 %1574 }
 0x7f9   :  { %v1597_v8 = vsub.f32 %v4156_v61, %v1575_v36 }
 0x7fb   :  { %v1605_v7 = vmul.f32 1.442695, %v1597_v8 }
 0x7fc   :  { %v4184_v56 = vpop.f32.mrf.mxu2 }
 0x800   :  { %v1578_v37 = vpop.xlane.xlu2 %1577 }
 0x801   :  { %v1598_v39 = vsub.f32 %v1566_v10, %v1578_v37 }
 0x803   :  { %v1607_v50 = vmul.f32 1.442695, %v1598_v39 }
 0x804   :  { %v4186_v38 = vpop.f32.mrf.mxu2 }
 0x805   :  { %3483 = vpow2.f32 %v1607_v50 }
 0x808   :  { %v1587_v20 = vpop.xlane.xlu1 %1586 }
 0x809   :  { %v1601_v53 = vsub.f32 %v4163_v14, %v1587_v20 }
 0x80b   :  { %v3484_v1 = vpop.eup %3483  ;;  %v1613_v5 = vmul.f32 1.442695, %v1601_v53 }
 0x80c   :  { %v1446_v43 = vpop.f32.mrf.mxu2  ;;  %v1624_v44 = vsel %vm329_vm3, %v3484_v1, 0.0 }
 0x80d   :  { %1625 = vadd.xlane.f32.xlu0 %v1624_v44  ;;  %v1567_v3 = vmul.f32 0.35355338, %v1446_v43 }
 0x80f   :  { %v1579_v45 = vsel %vm329_vm3, %v1567_v3, -inf }
 0x814   :  { %v1448_v40 = vpop.f32.mrf.mxu2 }
 0x815   :  { %1580 = vmax.xlane.f32.xlu0 %v1579_v45 }
 0x81c   :  { %v1538_v46 = vpop.f32.mrf.mxu2  ;;  %v1632_v62 = vpop.xlane.xlu2 %1631 }
 0x81d   :  { %v1571_v54 = vmul.f32 0.35355338, %v1538_v46 }
 0x81f   :  { %v1591_v18 = vsel %vm329_vm3, %v1571_v54, -inf }
 0x820   :  { %1592 = vmax.xlane.f32.xlu0 %v1591_v18 }
 0x824   :  { %v1540_v31 = vpop.f32.mrf.mxu2  ;;  %v1590_v57 = vpop.xlane.xlu2 %1589 }
 0x825   :  { %v1602_v47 = vsub.f32 %v1570_v28, %v1590_v57 }
 0x827   :  { %v1615_v48 = vmul.f32 1.442695, %v1602_v47 }
 0x829   :  { %3485 = vpow2.f32 %v1615_v48 }
 0x82c   :  { %v1708_v51 = vpop.permute.xlu2 %1707 }
 0x82d   :  { %v1713_v52 = vsel %vm1666_vm8, %v1708_v51, 0 }
 0x82e   :  { %1722 = vmatpush.bf16.msrb.mxu2 %v1713_v52 }
 0x82f   :  { %v4192_v30 = vpop.eup %3485 }
 0x830   :  { %v1636_v58 = vsel %vm329_vm3, %v4192_v30, 0.0 }
 0x831   :  { %1637 = vadd.xlane.f32.xlu1 %v1636_v58 }
 0x834   :  { %1685 = vrot.lane.b32.xlu0 %v4138_v11, %s3574_s21 }
 0x84a   :  { %1729 = vrot.lane.b32.xlu1 %v4138_v11, %s3580_s27 }
 0x865   :  { %v1644_v46 = vpop.xlane.xlu2 %1643 }
 0x880   :  { %v1626_v22 = vpop.xlane.xlu0 %1625 }
 0x888   :  { %v1581_v25 = vpop.xlane.xlu0 %1580 }
 0x889   :  { %v1599_v32 = vsub.f32 %v1567_v3, %v1581_v25 }
 0x88b   :  { %v1609_v59 = vmul.f32 1.442695, %v1599_v32 }
 0x88d   :  { %3487 = vpow2.f32 %v1609_v59 }
 0x893   :  { %v3488_v0 = vpop.eup %3487  ;;  %v1593_v29 = vpop.xlane.xlu0 %1592 }
 0x894   :  { %v1603_v2 = vsub.f32 %v1571_v54, %v1593_v29  ;;  %v1627_v6 = vsel %vm329_vm3, %v3488_v0, 0.0 }
 0x895   :  { %1628 = vadd.xlane.f32.xlu1 %v1627_v6 }
 0x896   :  { %v1617_v10 = vmul.f32 1.442695, %v1603_v2 }
 0x898   :  { %3489 = vpow2.f32 %v1617_v10 }
 0x899   :  { %3491 = vrcp.f32 %v1626_v22 }
 0x89a   :  { %3493 = vpow2.f32 %v1605_v7 }
 0x89b   :  { %3495 = vrcp.f32 %v1632_v62 }
 0x89c   :  { %3497 = vpow2.f32 %v1613_v5 }
 0x89e   :  { %v3490_v12 = vpop.eup %3489 }
 0x89f   :  { %v1639_v11 = vsel %vm329_vm3, %v3490_v12, 0.0  ;;  %v3492_v34 = vpop.eup %3491 }
 0x8a0   :  { %1640 = vadd.xlane.f32.xlu0 %v1639_v11  ;;  %v3494_v41 = vpop.eup %3493  ;;  %v1654_v13 = vmul.f32 %v3492_v34, %v3484_v1 }
 0x8a1   :  { %v1621_v15 = vsel %vm329_vm3, %v3494_v41, 0.0  ;;  %v3496_v27 = vpop.eup %3495 }
 0x8a2   :  { %v1683_v61 = vpack.c.bf16 %v1654_v13, %v1654_v13  ;;  %v1656_v28 = vmul.f32 %v3496_v27, %v4169_v26  ;;  %v3498_v36 = vpop.eup %3497  ;;  %v3386_v27 = vld [vmem:[%s4608_s2 + $0x58] ss:$0 sm:$0xff] }
 0x8a3   :  { %v1633_v37 = vsel %vm329_vm3, %v3498_v36, 0.0 }
 0x8a4   :  { %v1638_v24 = vpop.xlane.xlu1 %1637  ;;  %v1728_v21 = vpack.c.bf16 %v1656_v28, %v1656_v28  ;;  %v1195_v28 = vadd.f32 %v3386_v27, %v4176_v33 }
 0x8a6   :  { %v1686_v16 = vpop.permute.xlu0 %1685 }
 0x8a7   :  { %v1691_v17 = vsel %vm1666_vm8, %v1686_v16, 0 }
 0x8a8   :  { %1622 = vadd.xlane.f32.xlu0 %v1621_v15  ;;  %1700 = vmatpush.bf16.msra.mxu3 %v1691_v17 }
 0x8ab   :  { %3125 = vmatmul.msk.bf16.vlgmr.msra.gmra.mxu3 %vm329_vm3, %v1683_v61 }
 0x8ae   :  { %1788 = vrot.lane.b32.xlu1 %v4140_v60, %s3574_s21 }
 0x8b6   :  { %1810 = vrot.lane.b32.xlu1 %v4140_v60, %s3578_s25 }
 0x8bc   :  { %v1730_v23 = vpop.permute.xlu1 %1729 }
 0x8bd   :  { %v1735_v55 = vsel %vm1666_vm8, %v1730_v23, 0  ;;  %v1204_v23 = vadd.f32 %v1195_v28, %v4087_v4  ;;  %v3281_v4 = vld [vmem:[%s4606_s1 + $0xf8] sm:$0xff] }
 0x8be   :  { %1832 = vrot.lane.b32.xlu1 %v4140_v60, %s3580_s27  ;;  %1744 = vmatpush.bf16.msrb.mxu0 %v1735_v55 }
 0x8bf   :  { %v1208_v55 = vsel %vm254_vm2, %v1204_v23, 0.0 }
 0x8c1   :  { %3127 = vmatmul.msk.bf16.vlgmr.msrb.gmra.mxu0 %vm329_vm3, %v1728_v21  ;;  %v1197_v21 = vadd.f32 %v3386_v27, %v4182_v35 }
 0x8c3   :  { %v1205_v53 = vadd.f32 %v1197_v21, %v4090_v63 }
 0x8e8   :  { %1634 = vadd.xlane.f32.xlu1 %v1633_v37 }
 0x908   :  { %v1629_v39 = vpop.xlane.xlu1 %1628 }
 0x909   :  { %3499 = vrcp.f32 %v1629_v39  ;;  %v3282_v39 = vld [vmem:[%s4606_s1 + $0x100] sm:$0xff] }
 0x90a   :  { %3501 = vrcp.f32 %v1638_v24 }
 0x90f   :  { %v3500_v26 = vpop.eup %3499 }
 0x910   :  { %v1655_v50 = vmul.f32 %v3500_v26, %v3488_v0  ;;  %v3502_v44 = vpop.eup %3501 }
 0x911   :  { %v1658_v14 = vmul.f32 %v3502_v44, %v4192_v30 }
 0x912   :  { %v1706_v1 = vpack.c.bf16 %v1655_v50, %v1655_v50 }
 0x913   :  { %v1641_v43 = vpop.xlane.xlu0 %1640  ;;  %v1786_v62 = vpack.c.bf16 %v1658_v14, %v1658_v14 }
 0x914   :  { %3126 = vmatmul.msk.bf16.vlgmr.msrb.gmra.mxu2 %vm329_vm3, %v1706_v1 }
 0x91b   :  { %v1623_v60 = vpop.xlane.xlu0 %1622 }
 0x91c   :  { %3503 = vrcp.f32 %v1623_v60 }
 0x91d   :  { %3505 = vrcp.f32 %v1641_v43 }
 0x91e   :  { %3507 = vrcp.f32 %v1644_v46 }
 0x920   :  { %v1789_v3 = vpop.permute.xlu1 %1788 }
 0x921   :  { %v1794_v40 = vsel %vm1666_vm8, %v1789_v3, 0 }
 0x922   :  { %v3504_v45 = vpop.eup %3503  ;;  %1803 = vmatpush.bf16.msrb.mxu3 %v1794_v40 }
 0x923   :  { %v1653_v54 = vmul.f32 %v3504_v45, %v3494_v41  ;;  %v3506_v18 = vpop.eup %3505 }
 0x924   :  { %v1659_v57 = vmul.f32 %v3506_v18, %v3490_v12  ;;  %v3508_v52 = vpop.eup %3507 }
 0x925   :  { %v1661_v31 = vpack.c.bf16 %v1653_v54, %v1653_v54  ;;  %3129 = vmatmul.msk.bf16.vlgmr.msrb.gmra.mxu3 %vm329_vm3, %v1786_v62  ;;  %v1660_v58 = vmul.f32 %v3508_v52, %v4178_v49 }
 0x926   :  { %v1809_v51 = vpack.c.bf16 %v1659_v57, %v1659_v57 }
 0x927   :  { %3124 = vmatmul.msk.bf16.vlgmr.msra.gmra.mxu1 %vm329_vm3, %v1661_v31  ;;  %v1831_v32 = vpack.c.bf16 %v1660_v58, %v1660_v58 }
 0x928   :  { %v1811_v47 = vpop.permute.xlu1 %1810  ;;  %1896 = vmatpush.bf16.msra.mxu1 %v3282_v39 }
 0x929   :  { %v1816_v48 = vsel %vm1666_vm8, %v1811_v47, 0 }
 0x92a   :  { %1825 = vmatpush.bf16.msra.mxu2 %v1816_v48 }
 0x92c   :  { %1897 = vmatpush.bf16.msra.mxu1 %v3281_v4 }
 0x92d   :  { %3130 = vmatmul.msk.bf16.vlgmr.msra.gmra.mxu2 %vm329_vm3, %v1809_v51 }
 0x92e   :  { %v1702_v30 = vpop.f32.mrf.mxu3 }
 0x930   :  { %v1833_v22 = vpop.permute.xlu1 %1832 }
 0x931   :  { %v1838_v25 = vsel %vm1666_vm8, %v1833_v22, 0 }
 0x932   :  { %1847 = vmatpush.bf16.msra.mxu0 %v1838_v25  ;;  %v3387_v25 = vld [vmem:[%s4608_s2 + $0x80] ss:$0 sm:$0xff] }
 0x935   :  { %3131 = vmatmul.msk.bf16.vlgmr.msra.gmra.mxu0 %vm329_vm3, %v1831_v32 }
 0x936   :  { %v1704_v59 = vpop.f32.mrf.mxu3 }
 0x93e   :  { %v1746_v0 = vpop.f32.mrf.mxu0 }
 0x946   :  { %v1748_v29 = vpop.f32.mrf.mxu0 }
 0x95b   :  { %v1635_v2 = vpop.xlane.xlu1 %1634 }
 0x95c   :  { %3509 = vrcp.f32 %v1635_v2 }
 0x962   :  { %v3510_v6 = vpop.eup %3509 }
 0x963   :  { %v1657_v8 = vmul.f32 %v3510_v6, %v3498_v36  ;;  %v1211_v36 = vsel %vm254_vm2, %v1205_v53, 0.0  ;;  %v1200_v6 = vadd.f32 %v3386_v27, %v4184_v56 }
 0x965   :  { %v1765_v10 = vpack.c.bf16 %v1657_v8, %v1657_v8 }
 0x967   :  { %3128 = vmatmul.msk.bf16.vlgmr.msrb.gmra.mxu1 %vm329_vm3, %v1765_v10  ;;  %v4270_v10 = vadd.f32 %v1200_v6, %v4119_v19 }
 0x997   :  { %v1724_v7 = vpop.f32.mrf.mxu2 }
 0x99f   :  { %v1726_v12 = vpop.f32.mrf.mxu2 }
 0x9a0   :  { %v1202_v12 = vadd.f32 %v3386_v27, %v4186_v38  ;;  %v3286_v38 = vld [vmem:[%s4606_s1 + $0x120] sm:$0xff] }
 0x9a1   :  { %2032 = vmatpush.bf16.msrb.mxu2 %v3286_v38  ;;  %v3284_v38 = vld [vmem:[%s4606_s1 + $0x110] sm:$0xff] }
 0x9a2   :  { %v4277_v56 = vadd.f32 %v1202_v12, %v4122_v9  ;;  %v3287_v9 = vld [vmem:[%s4606_s1 + $0x128] sm:$0xff]  ;;  %1988 = vmatpush.bf16.msra.mxu3 %v3284_v38 }
 0x9a4   :  { %v1679_v49 = vpop.f32.mrf.mxu1  ;;  %v1217_v19 = vsel %vm254_vm2, %v4277_v56, 0.0 }
 0x9a8   :  { %v1805_v11 = vpop.f32.mrf.mxu3 }
 0x9a9   :  { %v3346_v34 = vpack.i.bf16 %v1805_v11, %v1702_v30  ;;  %v1214_v11 = vsel %vm254_vm2, %v4270_v10, 0.0 }
 0x9ab   :  { %3347 = vrot.lane.b32.xlu2 %v3346_v34, %s3581_s30 }
 0x9ac   :  { %v1681_v41 = vpop.f32.mrf.mxu1 }
 0x9ad   :  { %v3288_v41 = vld [vmem:[%s4606_s1 + $0x130] sm:$0xff] }
 0x9ae   :  { %2077 = vmatpush.bf16.msrb.mxu0 %v3288_v41 }
 0x9b0   :  { %v1807_v13 = vpop.f32.mrf.mxu3  ;;  %v1827_v16 = vpop.f32.mrf.mxu2 }
 0x9b1   :  { %v3351_v17 = vpack.i.bf16 %v1827_v16, %v1724_v7 }
 0x9b2   :  { %v1849_v15 = vpop.f32.mrf.mxu0  ;;  %2078 = vmatpush.bf16.msrb.mxu0 %v3287_v9 }
 0x9b3   :  { %3352 = vrot.lane.b32.xlu0 %v3351_v17, %s3583_s4  ;;  %v3356_v20 = vpack.i.bf16 %v1849_v15, %v1746_v0  ;;  %v3285_v17 = vld [vmem:[%s4606_s1 + $0x118] sm:$0xff] }
 0x9b4   :  { %2033 = vmatpush.bf16.msrb.mxu2 %v3285_v17 }
 0x9b8   :  { %v1829_v61 = vpop.f32.mrf.mxu2 }
 0x9ba   :  { %v1851_v24 = vpop.f32.mrf.mxu0 }
 0x9bb   :  { %3357 = vrot.lane.b32.xlu0 %v3356_v20, %s3582_s0 }
 0x9d4   :  { %1209 = vadd.xlane.f32.xlu2 %v1208_v55 }
 0x9e4   :  { %v1782_v5 = vpop.f32.mrf.mxu1 }
 0x9e5   :  { %1212 = vadd.xlane.f32.xlu0 %v1211_v36 }
 0x9ec   :  { %v1784_v37 = vpop.f32.mrf.mxu1 }
 0x9ed   :  { %v4297_v37 = vld [vmem:[%s4608_s2 + $0x60] ss:$0 sm:$0xff] }
 0xa05   :  { %v3348_v26 = vpop.permute.xlu2 %3347 }
 0xa06   :  { %v3350_v35 = vunpack.i.h.bf16 %v3348_v26  ;;  %v3349_v50 = vunpack.i.l.bf16 %v3348_v26  ;;  %v4302_v26 = vld [vmem:[%s4608_s2 + $0x68] ss:$0 sm:$0xff] }
 0xa08   :  { %v1762_v60 = vsel %vm329_vm3, %v1679_v49, %v3349_v50  ;;  %v1865_v44 = vsel %vm329_vm3, %v1782_v5, %v3350_v35 }
 0xa25   :  { %v3353_v33 = vpop.permute.xlu0 %3352 }
 0xa26   :  { %v3355_v63 = vunpack.i.h.bf16 %v3353_v33  ;;  %v3354_v1 = vunpack.i.l.bf16 %v3353_v33 }
 0xa28   :  { %v1763_v40 = vsel %vm534_vm4, %v1762_v60, %v3354_v1  ;;  %v1866_v45 = vsel %vm534_vm4, %v1865_v44, %v3355_v63  ;;  %v4311_v44 = vld [vmem:[%s4608_s2 + $0x10] sm:$0xff] }
 0xa2d   :  { %v3358_v43 = vpop.permute.xlu0 %3357 }
 0xa2e   :  { %v3360_v14 = vunpack.i.h.bf16 %v3358_v43  ;;  %v3359_v3 = vunpack.i.l.bf16 %v3358_v43 }
 0xa30   :  { %v1764_v46 = vsel %vm822_vm5, %v1763_v40, %v3359_v3  ;;  %v1867_v62 = vsel %vm822_vm5, %v1866_v45, %v3360_v14  ;;  %v4317_v3 = vld [vmem:[%s4608_s2 + $0x18] sm:$0xff] }
 0xa31   :  { %v1872_v54 = vpack.c.bf16 %v1867_v62, %v1764_v46 }
 0xa33   :  { %3140 = vmatmul.msk.bf16.vlgmr.msra.gmra.mxu1 %vm254_vm2, %v1872_v54 }
 0xa47   :  { %v1210_v18 = vpop.xlane.xlu2 %1209 }
 0xa48   :  { %v1220_v31 = vmul.f32 %v1210_v18, %v3993_v42 }
 0xa4a   :  { %v1224_v57 = vsub.f32 %v1204_v23, %v1220_v31 }
 0xa4c   :  { %v1228_v47 = vmul.f32 %v1224_v57, %v1224_v57 }
 0xa4e   :  { %v1232_v48 = vsel %vm254_vm2, %v1228_v47, 0.0 }
 0xa4f   :  { %1233 = vadd.xlane.f32.xlu2 %v1232_v48 }
 0xa58   :  { %v1213_v51 = vpop.xlane.xlu0 %1212 }
 0xa59   :  { %v1221_v52 = vmul.f32 %v1213_v51, %v3993_v42 }
 0xa5b   :  { %v1225_v30 = vsub.f32 %v1205_v53, %v1221_v52 }
 0xa5d   :  { %v1229_v58 = vmul.f32 %v1225_v30, %v1225_v30 }
 0xa5f   :  { %v1235_v22 = vsel %vm254_vm2, %v1229_v58, 0.0 }
 0xa60   :  { %1236 = vadd.xlane.f32.xlu0 %v1235_v22 }
 0xab0   :  { %v1899_v32 = vpop.f32.mrf.mxu1 }
 0xab1   :  { %v4260_v59 = vadd.f32 %v3387_v25, %v1899_v32 }
 0xab3   :  { %v1906_v0 = vsel %vm254_vm2, %v4260_v59, 0.0 }
 0xab4   :  { %1907 = vadd.xlane.f32.xlu1 %v1906_v0 }
 0xab8   :  { %v1901_v29 = vpop.f32.mrf.mxu1 }
 0xab9   :  { %v4264_v2 = vadd.f32 %v3387_v25, %v1901_v29 }
 0xabb   :  { %v1909_v8 = vsel %vm254_vm2, %v4264_v2, 0.0 }
 0xabc   :  { %1910 = vadd.xlane.f32.xlu1 %v1909_v8 }
 0xac2   :  { %v1234_v7 = vpop.xlane.xlu2 %1233 }
 0xac3   :  { %v1244_v49 = vmul.f32 %v1234_v7, %v3993_v42  ;;  %v4353_v7 = vld [vmem:[%s4608_s2 + $0x90] ss:$0 sm:$0xff] }
 0xac4   :  { %1215 = vadd.xlane.f32.xlu1 %v1214_v11 }
 0xac5   :  { %v1248_v34 = vadd.f32 1e-05, %v1244_v49 }
 0xac7   :  { %3511 = vrsqrt.f32 %v1248_v34  ;;  %vm1258_vm10 = vweird.f32 %v1248_v34 }
 0xacc   :  { %1218 = vadd.xlane.f32.xlu1 %v1217_v19 }
 0xacd   :  { %v3512_v13 = vpop.eup %3511 }
 0xace   :  { %v1253_v16 = vmul.f32 %v3512_v13, %v1248_v34  ;;  %vm1259_vm9 = vweird.f32 %v3512_v13 }
 0xacf   :  { %vm1260_vm11 = vmor %vm1258_vm10, %vm1259_vm9 }
 0xad0   :  { %v1254_v15 = vmul.f32 %v3512_v13, %v1253_v16  ;;  %v3283_v16 = vld [vmem:[%s4606_s1 + $0x108] sm:$0xff] }
 0xad1   :  { %1989 = vmatpush.bf16.msra.mxu3 %v3283_v16 }
 0xad2   :  { %v1255_v24 = vmul.f32 0.5, %v1254_v15 }
 0xad3   :  { %v1237_v61 = vpop.xlane.xlu0 %1236 }
 0xad4   :  { %v1245_v20 = vmul.f32 %v1237_v61, %v3993_v42  ;;  %v1256_v28 = vsub.f32 1.5, %v1255_v24 }
 0xad6   :  { %v1249_v27 = vadd.f32 1e-05, %v1245_v20  ;;  %v1257_v23 = vmul.f32 %v3512_v13, %v1256_v28 }
 0xad8   :  { %3513 = vrsqrt.f32 %v1249_v27  ;;  %v1261_v53 = vsel %vm1260_vm11, %v3512_v13, %v1257_v23  ;;  %vm1268_vm13 = vweird.f32 %v1249_v27 }
 0xad9   :  { %v1292_v39 = vmul.f32 %v1261_v53, %v1224_v57 }
 0xadb   :  { %v1298_v35 = vmul.f32 %v4297_v37, %v1292_v39 }
 0xadd   :  { %v1304_v1 = vadd.f32 %v4302_v26, %v1298_v35 }
 0xade   :  { %v3514_v55 = vpop.eup %3513 }
 0xadf   :  { %v1263_v21 = vmul.f32 %v3514_v55, %v1249_v27  ;;  %vm1269_vm12 = vweird.f32 %v3514_v55  ;;  %v1996_v14 = vadd.f32 %v4311_v44, %v1304_v1 }
 0xae0   :  { %vm1270_vm14 = vmor %vm1268_vm13, %vm1269_vm12 }
 0xae1   :  { %v1264_v5 = vmul.f32 %v3514_v55, %v1263_v21 }
 0xae3   :  { %v1265_v36 = vmul.f32 0.5, %v1264_v5 }
 0xae5   :  { %v1266_v4 = vsub.f32 1.5, %v1265_v36 }
 0xae7   :  { %v1267_v33 = vmul.f32 %v3514_v55, %v1266_v4 }
 0xae9   :  { %v1271_v50 = vsel %vm1270_vm14, %v3514_v55, %v1267_v33 }
 0xaea   :  { %v1293_v63 = vmul.f32 %v1271_v50, %v1225_v30  ;;  %v3392_v50 = vld [vmem:[%s4608_s2 + $0xa8] ss:$0 sm:$0xff] }
 0xaec   :  { %v1299_v43 = vmul.f32 %v4297_v37, %v1293_v63 }
 0xaee   :  { %v1305_v60 = vadd.f32 %v4302_v26, %v1299_v43 }
 0xaf0   :  { %v1997_v40 = vadd.f32 %v4317_v3, %v1305_v60  ;;  %v2049_v45 = vpack.c.bf16 %v1305_v60, %v1304_v1 }
 0xaf2   :  { %3168 = vmatmul.msk.bf16.vlgmr.msrb.gmra.mxu0 %vm254_vm2, %v2049_v45  ;;  %v2004_v46 = vpack.c.bf16 %v1997_v40, %v1996_v14 }
 0xaf4   :  { %3158 = vmatmul.msk.bf16.vlgmr.msrb.gmra.mxu2 %vm254_vm2, %v2004_v46  ;;  %v3393_v46 = vld [vmem:[%s4608_s2 + $0xb0] ss:$0 sm:$0xff] }
 0xb27   :  { %v1908_v62 = vpop.xlane.xlu1 %1907 }
 0xb28   :  { %v1912_v54 = vmul.f32 %v1908_v62, %v3993_v42 }
 0xb2a   :  { %v4324_v18 = vsub.f32 %v4260_v59, %v1912_v54 }
 0xb2c   :  { %v1916_v31 = vmul.f32 %v4324_v18, %v4324_v18 }
 0xb2e   :  { %v1918_v57 = vsel %vm254_vm2, %v1916_v31, 0.0 }
 0xb2f   :  { %1919 = vadd.xlane.f32.xlu1 %v1918_v57  ;;  %v1911_v47 = vpop.xlane.xlu1 %1910 }
 0xb30   :  { %v1913_v48 = vmul.f32 %v1911_v47, %v3993_v42 }
 0xb32   :  { %v4331_v51 = vsub.f32 %v4264_v2, %v1913_v48 }
 0xb34   :  { %v1917_v52 = vmul.f32 %v4331_v51, %v4331_v51 }
 0xb36   :  { %v1921_v30 = vsel %vm254_vm2, %v1917_v52, 0.0 }
 0xb37   :  { %1922 = vadd.xlane.f32.xlu2 %v1921_v30  ;;  %v1216_v58 = vpop.xlane.xlu1 %1215 }
 0xb38   :  { %v1222_v22 = vmul.f32 %v1216_v58, %v3993_v42 }
 0xb3a   :  { %v4338_v25 = vsub.f32 %v4270_v10, %v1222_v22 }
 0xb3c   :  { %v1230_v32 = vmul.f32 %v4338_v25, %v4338_v25 }
 0xb3e   :  { %v1238_v59 = vsel %vm254_vm2, %v1230_v32, 0.0 }
 0xb3f   :  { %1239 = vadd.xlane.f32.xlu0 %v1238_v59  ;;  %v1219_v0 = vpop.xlane.xlu1 %1218  ;;  %v3573_v59 = vld [vmem:[%s4608_s2 + $0x20] sm:$0xff] }
 0xb40   :  { %v1223_v29 = vmul.f32 %v1219_v0, %v3993_v42 }
 0xb42   :  { %v4345_v2 = vsub.f32 %v4277_v56, %v1223_v29 }
 0xb44   :  { %v1231_v6 = vmul.f32 %v4345_v2, %v4345_v2 }
 0xb46   :  { %v1241_v8 = vsel %vm254_vm2, %v1231_v6, 0.0 }
 0xb47   :  { %1242 = vadd.xlane.f32.xlu1 %v1241_v8 }
 0xb77   :  { %v2035_v10 = vpop.f32.mrf.mxu2 }
 0xb78   :  { %v2036_v49 = vadd.f32 %v4353_v7, %v2035_v10 }
 0xb7f   :  { %v2037_v12 = vpop.f32.mrf.mxu2 }
 0xb80   :  { %v2038_v11 = vadd.f32 %v4353_v7, %v2037_v12 }
 0xb82   :  { %v4357_v34 = vpack.c.bf16 %v2038_v11, %v2036_v49 }
 0xb84   :  { %2115 = vrot.lane.b32.xlu2 %v4357_v34, %s3574_s21  ;;  %2161 = vrot.lane.b32.xlu1 %v4357_v34, %s3580_s27  ;;  %v2096_v56 = vsel %vm329_vm3, %v4357_v34, 0 }
 0xb85   :  { %2105 = vmatpush.bf16.xpose.msrb.mxu1 %v2096_v56 }
 0xba2   :  { %v1920_v41 = vpop.xlane.xlu1 %1919 }
 0xba3   :  { %v1924_v19 = vmul.f32 %v1920_v41, %v3993_v42 }
 0xba5   :  { %v1926_v13 = vadd.f32 1e-05, %v1924_v19 }
 0xba7   :  { %3515 = vrsqrt.f32 %v1926_v13  ;;  %vm1934_vm1 = vweird.f32 %v1926_v13 }
 0xbaa   :  { %v1923_v9 = vpop.xlane.xlu2 %1922 }
 0xbab   :  { %v1925_v17 = vmul.f32 %v1923_v9, %v3993_v42 }
 0xbad   :  { %v3516_v15 = vpop.eup %3515  ;;  %v1927_v61 = vadd.f32 1e-05, %v1925_v17 }
 0xbae   :  { %v1929_v20 = vmul.f32 %v3516_v15, %v1926_v13  ;;  %vm1935_vm15 = vweird.f32 %v3516_v15 }
 0xbaf   :  { %3517 = vrsqrt.f32 %v1927_v61  ;;  %vm1936_vm6 = vmor %vm1934_vm1, %vm1935_vm15  ;;  %vm1944_vm8 = vweird.f32 %v1927_v61 }
 0xbb0   :  { %v1930_v24 = vmul.f32 %v3516_v15, %v1929_v20 }
 0xbb2   :  { %v1931_v27 = vmul.f32 0.5, %v1930_v24  ;;  %v1240_v28 = vpop.xlane.xlu0 %1239  ;;  %v2080_v24 = vpop.f32.mrf.mxu0 }
 0xbb3   :  { %v1246_v23 = vmul.f32 %v1240_v28, %v3993_v42 }
 0xbb4   :  { %v1932_v55 = vsub.f32 1.5, %v1931_v27 }
 0xbb5   :  { %v3518_v21 = vpop.eup %3517  ;;  %v1250_v53 = vadd.f32 1e-05, %v1246_v23 }
 0xbb6   :  { %v1933_v5 = vmul.f32 %v3516_v15, %v1932_v55  ;;  %v1939_v36 = vmul.f32 %v3518_v21, %v1927_v61  ;;  %vm1945_vm7 = vweird.f32 %v3518_v21 }
 0xbb7   :  { %3519 = vrsqrt.f32 %v1250_v53  ;;  %vm1946_vm9 = vmor %vm1944_vm8, %vm1945_vm7  ;;  %vm1278_vm11 = vweird.f32 %v1250_v53 }
 0xbb8   :  { %v1937_v39 = vsel %vm1936_vm6, %v3516_v15, %v1933_v5  ;;  %v1940_v4 = vmul.f32 %v3518_v21, %v1939_v36  ;;  %v3390_v36 = vld [vmem:[%s4608_s2 + $0x98] ss:$0 sm:$0xff] }
 0xbb9   :  { %v1948_v63 = vmul.f32 %v1937_v39, %v4324_v18 }
 0xbba   :  { %v1941_v33 = vmul.f32 0.5, %v1940_v4  ;;  %v1243_v35 = vpop.xlane.xlu1 %1242  ;;  %v2082_v28 = vpop.f32.mrf.mxu0 }
 0xbbb   :  { %v1247_v1 = vmul.f32 %v1243_v35, %v3993_v42  ;;  %v1952_v62 = vmul.f32 %v3392_v50, %v1948_v63  ;;  %v2083_v4 = vadd.f32 %v3390_v36, %v2082_v28 }
 0xbbc   :  { %v1942_v43 = vsub.f32 1.5, %v1941_v33 }
 0xbbd   :  { %v3520_v60 = vpop.eup %3519  ;;  %v1251_v14 = vadd.f32 1e-05, %v1247_v1  ;;  %v4383_v47 = vadd.f32 %v3393_v46, %v1952_v62 }
 0xbbe   :  { %v1943_v40 = vmul.f32 %v3518_v21, %v1942_v43  ;;  %v1273_v45 = vmul.f32 %v3520_v60, %v1250_v53  ;;  %vm1279_vm10 = vweird.f32 %v3520_v60 }
 0xbbf   :  { %3521 = vrsqrt.f32 %v1251_v14  ;;  %v1958_v0 = vadd.f32 %v3573_v59, %v4383_v47  ;;  %vm1280_vm12 = vmor %vm1278_vm11, %vm1279_vm10  ;;  %vm1288_vm14 = vweird.f32 %v1251_v14 }
 0xbc0   :  { %v1947_v54 = vsel %vm1946_vm9, %v3518_v21, %v1943_v40  ;;  %v1274_v31 = vmul.f32 %v3520_v60, %v1273_v45 }
 0xbc1   :  { %v1949_v18 = vmul.f32 %v1947_v54, %v4331_v51 }
 0xbc2   :  { %v1275_v57 = vmul.f32 0.5, %v1274_v31 }
 0xbc3   :  { %v1953_v48 = vmul.f32 %v3392_v50, %v1949_v18  ;;  %v2081_v50 = vadd.f32 %v3390_v36, %v2080_v24 }
 0xbc4   :  { %v1276_v52 = vsub.f32 1.5, %v1275_v57 }
 0xbc5   :  { %v3522_v30 = vpop.eup %3521  ;;  %v4385_v58 = vadd.f32 %v3393_v46, %v1953_v48  ;;  %v4420_v1 = vpack.c.bf16 %v2083_v4, %v2081_v50 }
 0xbc6   :  { %v1277_v22 = vmul.f32 %v3520_v60, %v1276_v52  ;;  %v1283_v32 = vmul.f32 %v3522_v30, %v1251_v14  ;;  %vm1289_vm13 = vweird.f32 %v3522_v30 }
 0xbc7   :  { %v1959_v51 = vadd.f32 %v3573_v59, %v4385_v58  ;;  %vm1290_vm15 = vmor %vm1288_vm14, %vm1289_vm13 }
 0xbc8   :  { %v1281_v29 = vsel %vm1280_vm12, %v3520_v60, %v1277_v22  ;;  %v1284_v6 = vmul.f32 %v3522_v30, %v1283_v32 }
 0xbc9   :  { %v1964_v8 = vpack.c.bf16 %v1959_v51, %v1958_v0  ;;  %v1294_v12 = vmul.f32 %v1281_v29, %v4338_v25 }
 0xbca   :  { %v1285_v10 = vmul.f32 0.5, %v1284_v6 }
 0xbcb   :  { %3149 = vmatmul.msk.bf16.vlgmr.msra.gmra.mxu3 %vm254_vm2, %v1964_v8  ;;  %v1300_v56 = vmul.f32 %v4297_v37, %v1294_v12 }
 0xbcc   :  { %v1286_v49 = vsub.f32 1.5, %v1285_v10 }
 0xbcd   :  { %v1306_v13 = vadd.f32 %v4302_v26, %v1300_v56 }
 0xbce   :  { %v1287_v11 = vmul.f32 %v3522_v30, %v1286_v49 }
 0xbcf   :  { %v1998_v25 = vadd.f32 %v4311_v44, %v1306_v13 }
 0xbd0   :  { %v1291_v41 = vsel %vm1290_vm15, %v3522_v30, %v1287_v11 }
 0xbd1   :  { %v1295_v19 = vmul.f32 %v1291_v41, %v4345_v2 }
 0xbd3   :  { %v1301_v38 = vmul.f32 %v4297_v37, %v1295_v19 }
 0xbd5   :  { %v1307_v16 = vadd.f32 %v4302_v26, %v1301_v38  ;;  %v3394_v26 = vld [vmem:[%s4608_s2 + $0x88] ss:$0 sm:$0xff] }
 0xbd7   :  { %v2050_v9 = vpack.c.bf16 %v1307_v16, %v1306_v13  ;;  %v1999_v17 = vadd.f32 %v4317_v3, %v1307_v16 }
 0xbd9   :  { %3169 = vmatmul.msk.bf16.gmra.mxu0 %vm254_vm2, %v2050_v9  ;;  %v2005_v15 = vpack.c.bf16 %v1999_v17, %v1998_v25 }
 0xbdb   :  { %3159 = vmatmul.msk.bf16.gmra.mxu2 %vm254_vm2, %v2005_v15 }
 0xbde   :  { %v2116_v61 = vpop.permute.xlu2 %2115 }
 0xbdf   :  { %v2121_v20 = vsel %vm329_vm3, %v2116_v61, 0 }
 0xbe0   :  { %2130 = vmatpush.bf16.xpose.msrb.mxu3 %v2121_v20 }
 0xbf6   :  { %v2162_v2 = vpop.permute.xlu1 %2161 }
 0xbf7   :  { %v2167_v37 = vsel %vm329_vm3, %v2162_v2, 0 }
 0xbf8   :  { %2176 = vmatpush.bf16.xpose.msra.mxu3 %v2167_v37 }
 0xc4e   :  { %v1991_v44 = vpop.f32.mrf.mxu3 }
 0xc4f   :  { %v1992_v3 = vadd.f32 %v3394_v26, %v1991_v44 }
 0xc51   :  { %v2090_v27 = vpack.c.bf16 %v1992_v3, %v1992_v3 }
 0xc53   :  { %2136 = vrot.lane.b32.xlu1 %v2090_v27, %s3578_s25  ;;  %2159 = vrot.lane.b32.xlu2 %v2090_v27, %s3580_s27 }
 0xc54   :  { %2112 = vrot.lane.b32.xlu0 %v2090_v27, %s3574_s21  ;;  %3170 = vmatmul.msk.bf16.vlgmr.msrb.gmra.mxu1 %vm329_vm3, %v2090_v27 }
 0xc56   :  { %v1993_v23 = vpop.f32.mrf.mxu3  ;;  %v2085_v53 = vpop.f32.mrf.mxu0 }
 0xc57   :  { %v1994_v55 = vadd.f32 %v3394_v26, %v1993_v23  ;;  %v2086_v14 = vadd.f32 %v3390_v36, %v2085_v53 }
 0xc59   :  { %v2182_v5 = vpack.c.bf16 %v1994_v55, %v1994_v55 }
 0xc5c   :  { %2138 = vrot.lane.b32.xlu0 %v4357_v34, %s3578_s25 }
 0xc5e   :  { %v2040_v21 = vpop.f32.mrf.mxu2  ;;  %v2087_v34 = vpop.f32.mrf.mxu0 }
 0xc5f   :  { %v2041_v33 = vadd.f32 %v4353_v7, %v2040_v21  ;;  %v2088_v60 = vadd.f32 %v3390_v36, %v2087_v34 }
 0xc61   :  { %v4427_v40 = vpack.c.bf16 %v2088_v60, %v2086_v14 }
 0xc64   :  { %2251 = vrot.lane.b32.xlu0 %v2182_v5, %s3580_s27 }
 0xc66   :  { %v2042_v39 = vpop.f32.mrf.mxu2 }
 0xc67   :  { %v2043_v35 = vadd.f32 %v4353_v7, %v2042_v39 }
 0xc69   :  { %v2183_v63 = vpack.c.bf16 %v2043_v35, %v2041_v33 }
 0xc6b   :  { %2230 = vrot.lane.b32.xlu1 %v2183_v63, %s3578_s25  ;;  %2253 = vrot.lane.b32.xlu2 %v2183_v63, %s3580_s27  ;;  %v2188_v43 = vsel %vm329_vm3, %v2183_v63, 0 }
 0xc6c   :  { %2204 = vrot.lane.b32.xlu0 %v2182_v5, %s3574_s21  ;;  %2197 = vmatpush.bf16.xpose.msra.mxu2 %v2188_v43 }
 0xc73   :  { %2207 = vrot.lane.b32.xlu2 %v2183_v63, %s3574_s21  ;;  %3174 = vmatmul.msk.bf16.vlgmr.msra.gmra.mxu2 %vm329_vm3, %v2182_v5 }
 0xc74   :  { %2382 = vmatpush.bf16.msrb.mxu2 %v4420_v1 }
 0xc78   :  { %2476 = vmatpush.bf16.msra.mxu2 %v4427_v40 }
 0xc7b   :  { %2228 = vrot.lane.b32.xlu2 %v2182_v5, %s3578_s25 }
 0xcad   :  { %v2160_v7 = vpop.permute.xlu2 %2159 }
 0xcc5   :  { %v2254_v45 = vpop.permute.xlu2 %2253  ;;  %v2137_v22 = vpop.permute.xlu1 %2136 }
 0xcc6   :  { %v2113_v46 = vpop.permute.xlu0 %2112  ;;  %v2259_v62 = vsel %vm329_vm3, %v2254_v45, 0 }
 0xcc7   :  { %3171 = vmatmul.msk.bf16.vlgmr.msrb.gmra.mxu3 %vm329_vm3, %v2113_v46 }
 0xcc8   :  { %2268 = vmatpush.bf16.xpose.msrb.mxu3 %v2259_v62 }
 0xccd   :  { %v2208_v54 = vpop.permute.xlu2 %2207 }
 0xcce   :  { %v2139_v31 = vpop.permute.xlu0 %2138  ;;  %v2213_v18 = vsel %vm329_vm3, %v2208_v54, 0 }
 0xccf   :  { %v2144_v57 = vsel %vm329_vm3, %v2139_v31, 0  ;;  %2222 = vmatpush.bf16.xpose.msra.mxu0 %v2213_v18 }
 0xcd0   :  { %2153 = vmatpush.bf16.xpose.msra.mxu1 %v2144_v57 }
 0xcd1   :  { %v2107_v48 = vpop.f32.mrf.mxu1 }
 0xcd2   :  { %v4437_v52 = vmul.f32 0.35355338, %v2107_v48 }
 0xcd4   :  { %v2282_v30 = vsel %vm534_vm4, %v4437_v52, -inf }
 0xcd5   :  { %2283 = vmax.xlane.f32.xlu1 %v2282_v30  ;;  %v2229_v6 = vpop.permute.xlu2 %2228 }
 0xcd6   :  { %v2252_v32 = vpop.permute.xlu0 %2251 }
 0xcd7   :  { %3172 = vmatmul.msk.bf16.vlgmr.msra.gmra.mxu1 %vm329_vm3, %v2137_v22  ;;  %3173 = vmatmul.msk.bf16.vlgmr.msra.gmra.mxu3 %vm329_vm3, %v2160_v7 }
 0xcd9   :  { %v2109_v59 = vpop.f32.mrf.mxu1 }
 0xcdd   :  { %v2231_v0 = vpop.permute.xlu1 %2230 }
 0xcde   :  { %v2205_v51 = vpop.permute.xlu0 %2204  ;;  %v2236_v29 = vsel %vm329_vm3, %v2231_v0, 0 }
 0xcdf   :  { %3175 = vmatmul.msk.bf16.vlgmr.msra.gmra.mxu0 %vm329_vm3, %v2205_v51  ;;  %2245 = vmatpush.bf16.xpose.msrb.mxu1 %v2236_v29 }
 0xce7   :  { %3176 = vmatmul.msk.bf16.vlgmr.msrb.gmra.mxu1 %vm329_vm3, %v2229_v6  ;;  %3177 = vmatmul.msk.bf16.vlgmr.msrb.gmra.mxu3 %vm329_vm3, %v2252_v32 }
 0xcf6   :  { %v2199_v8 = vpop.f32.mrf.mxu2 }
 0xcf7   :  { %v4447_v10 = vmul.f32 0.35355338, %v2199_v8 }
 0xcf9   :  { %v2294_v12 = vsel %vm534_vm4, %v4447_v10, -inf }
 0xcfa   :  { %2295 = vmax.xlane.f32.xlu2 %v2294_v12 }
 0xcfe   :  { %v2201_v49 = vpop.f32.mrf.mxu2 }
 0xd48   :  { %v2284_v4 = vpop.xlane.xlu1 %2283 }
 0xd4a   :  { %v2132_v11 = vpop.f32.mrf.mxu3 }
 0xd4b   :  { %v2275_v56 = vmul.f32 0.35355338, %v2132_v11 }
 0xd4d   :  { %v2285_v41 = vsel %vm534_vm4, %v2275_v56, -inf }
 0xd4e   :  { %2286 = vmax.xlane.f32.xlu0 %v2285_v41 }
 0xd52   :  { %v2134_v19 = vpop.f32.mrf.mxu3 }
 0xd54   :  { %v2155_v38 = vpop.f32.mrf.mxu1 }
 0xd55   :  { %v2276_v13 = vmul.f32 0.35355338, %v2155_v38 }
 0xd57   :  { %v2288_v16 = vsel %vm534_vm4, %v2276_v13, -inf }
 0xd58   :  { %2289 = vmax.xlane.f32.xlu2 %v2288_v16 }
 0xd5a   :  { %v2178_v9 = vpop.f32.mrf.mxu3 }
 0xd5b   :  { %v2277_v25 = vmul.f32 0.35355338, %v2178_v9 }
 0xd5c   :  { %v2157_v17 = vpop.f32.mrf.mxu1  ;;  %v2224_v15 = vpop.f32.mrf.mxu0 }
 0xd5d   :  { %v2279_v61 = vmul.f32 0.35355338, %v2224_v15  ;;  %v2291_v20 = vsel %vm534_vm4, %v2277_v25, -inf }
 0xd5e   :  { %2292 = vmax.xlane.f32.xlu1 %v2291_v20 }
 0xd5f   :  { %v2297_v2 = vsel %vm534_vm4, %v2279_v61, -inf }
 0xd60   :  { %2298 = vmax.xlane.f32.xlu0 %v2297_v2 }
 0xd62   :  { %v2180_v37 = vpop.f32.mrf.mxu3 }
 0xd64   :  { %v2226_v26 = vpop.f32.mrf.mxu0  ;;  %v2247_v44 = vpop.f32.mrf.mxu1 }
 0xd65   :  { %v2280_v24 = vmul.f32 0.35355338, %v2247_v44 }
 0xd67   :  { %v2300_v3 = vsel %vm534_vm4, %v2280_v24, -inf }
 0xd68   :  { %2301 = vmax.xlane.f32.xlu2 %v2300_v3 }
 0xd6a   :  { %v2270_v27 = vpop.f32.mrf.mxu3 }
 0xd6b   :  { %v2281_v28 = vmul.f32 0.35355338, %v2270_v27 }
 0xd6c   :  { %v2249_v23 = vpop.f32.mrf.mxu1 }
 0xd6d   :  { %v2303_v55 = vsel %vm534_vm4, %v2281_v28, -inf  ;;  %v2296_v36 = vpop.xlane.xlu2 %2295 }
 0xd6e   :  { %2304 = vmax.xlane.f32.xlu1 %v2303_v55  ;;  %v2310_v19 = vsub.f32 %v4447_v10, %v2296_v36 }
 0xd70   :  { %v2322_v38 = vmul.f32 1.442695, %v2310_v19  ;;  %v3289_v19 = vld [vmem:[%s4606_s1 + $0x138] sm:$0xff] }
 0xd72   :  { %v2272_v21 = vpop.f32.mrf.mxu3 }
 0xd74   :  { %2410 = vrot.lane.b32.xlu0 %v4420_v1, %s3578_s25 }
 0xd80   :  { %2430 = vrot.lane.b32.xlu2 %v4420_v1, %s3580_s27 }
 0xd87   :  { %2390 = vrot.lane.b32.xlu1 %v4420_v1, %s3574_s21 }
 0xdc1   :  { %v2287_v53 = vpop.xlane.xlu0 %2286 }
 0xdc2   :  { %v2307_v5 = vsub.f32 %v2275_v56, %v2287_v53  ;;  %v2306_v56 = vsub.f32 %v4437_v52, %v2284_v4 }
 0xdc4   :  { %v2316_v39 = vmul.f32 1.442695, %v2307_v5  ;;  %v2314_v41 = vmul.f32 1.442695, %v2306_v56 }
 0xdc6   :  { %3523 = vpow2.f32 %v2316_v39 }
 0xdcb   :  { %v2290_v33 = vpop.xlane.xlu2 %2289 }
 0xdcc   :  { %v3524_v35 = vpop.eup %3523  ;;  %v2308_v50 = vsub.f32 %v2276_v13, %v2290_v33 }
 0xdcd   :  { %v2333_v63 = vsel %vm534_vm4, %v3524_v35, 0.0 }
 0xdce   :  { %v2318_v34 = vmul.f32 1.442695, %v2308_v50  ;;  %2334 = vadd.xlane.f32.xlu1 %v2333_v63 }
 0xdd0   :  { %3525 = vpow2.f32 %v2318_v34 }
 0xdd1   :  { %v2293_v43 = vpop.xlane.xlu1 %2292 }
 0xdd2   :  { %v2309_v45 = vsub.f32 %v2277_v25, %v2293_v43 }
 0xdd3   :  { %v2299_v60 = vpop.xlane.xlu0 %2298 }
 0xdd4   :  { %v2311_v14 = vsub.f32 %v2279_v61, %v2299_v60  ;;  %v2320_v62 = vmul.f32 1.442695, %v2309_v45 }
 0xdd6   :  { %v3526_v7 = vpop.eup %3525  ;;  %v2324_v1 = vmul.f32 1.442695, %v2311_v14 }
 0xdd7   :  { %v2336_v46 = vsel %vm534_vm4, %v3526_v7, 0.0 }
 0xdd8   :  { %3527 = vpow2.f32 %v2324_v1  ;;  %2337 = vadd.xlane.f32.xlu0 %v2336_v46 }
 0xdd9   :  { %3529 = vpow2.f32 %v2320_v62 }
 0xddb   :  { %v2302_v54 = vpop.xlane.xlu2 %2301 }
 0xddc   :  { %v2312_v31 = vsub.f32 %v2280_v24, %v2302_v54 }
 0xdde   :  { %v4465_v18 = vpop.eup %3527  ;;  %v2326_v57 = vmul.f32 1.442695, %v2312_v31 }
 0xddf   :  { %v2345_v48 = vsel %vm534_vm4, %v4465_v18, 0.0  ;;  %v3530_v59 = vpop.eup %3529 }
 0xde0   :  { %3531 = vpow2.f32 %v2326_v57  ;;  %2346 = vadd.xlane.f32.xlu0 %v2345_v48  ;;  %v2339_v8 = vsel %vm534_vm4, %v3530_v59, 0.0 }
 0xde1   :  { %v2305_v30 = vpop.xlane.xlu1 %2304 }
 0xde2   :  { %v2313_v22 = vsub.f32 %v2281_v28, %v2305_v30 }
 0xde3   :  { %v2431_v32 = vpop.permute.xlu2 %2430 }
 0xde4   :  { %v2328_v0 = vmul.f32 1.442695, %v2313_v22  ;;  %2443 = vmatpush.bf16.msra.mxu3 %v2431_v32 }
 0xde6   :  { %v3532_v51 = vpop.eup %3531  ;;  %3533 = vpow2.f32 %v2328_v0  ;;  %v2411_v29 = vpop.permute.xlu0 %2410 }
 0xde7   :  { %2423 = vmatpush.bf16.msra.mxu1 %v2411_v29  ;;  %v2348_v6 = vsel %vm534_vm4, %v3532_v51, 0.0  ;;  %3535 = vpow2.f32 %v2314_v41  ;;  %v3290_v41 = vld [vmem:[%s4606_s1 + $0x140] sm:$0xff] }
 0xde8   :  { %2349 = vadd.xlane.f32.xlu1 %v2348_v6  ;;  %2340 = vadd.xlane.f32.xlu0 %v2339_v8  ;;  %3537 = vpow2.f32 %v2322_v38 }
 0xdec   :  { %v3534_v12 = vpop.eup %3533 }
 0xded   :  { %v2351_v49 = vsel %vm534_vm4, %v3534_v12, 0.0  ;;  %v3536_v13 = vpop.eup %3535 }
 0xdee   :  { %2352 = vadd.xlane.f32.xlu2 %v2351_v49  ;;  %v2330_v16 = vsel %vm534_vm4, %v3536_v13, 0.0  ;;  %v3538_v9 = vpop.eup %3537 }
 0xdef   :  { %v2342_v25 = vsel %vm534_vm4, %v3538_v9, 0.0 }
 0xdf9   :  { %v2391_v11 = vpop.permute.xlu1 %2390 }
 0xdfa   :  { %2403 = vmatpush.bf16.msrb.mxu0 %v2391_v11 }
 0xdfc   :  { %2484 = vrot.lane.b32.xlu0 %v4427_v40, %s3574_s21 }
 0xe01   :  { %2504 = vrot.lane.b32.xlu1 %v4427_v40, %s3578_s25 }
 0xe06   :  { %2524 = vrot.lane.b32.xlu2 %v4427_v40, %s3580_s27 }
 0xe26   :  { %2331 = vadd.xlane.f32.xlu0 %v2330_v16 }
 0xe2f   :  { %2343 = vadd.xlane.f32.xlu2 %v2342_v25 }
 0xe41   :  { %v2335_v17 = vpop.xlane.xlu1 %2334 }
 0xe42   :  { %3539 = vrcp.f32 %v2335_v17 }
 0xe48   :  { %v3540_v15 = vpop.eup %3539 }
 0xe49   :  { %v2363_v40 = vmul.f32 %v3540_v15, %v3524_v35 }
 0xe4b   :  { %v2388_v61 = vpack.c.bf16 %v2363_v40, %v2363_v40  ;;  %v2338_v52 = vpop.xlane.xlu0 %2337 }
 0xe4c   :  { %3541 = vrcp.f32 %v2338_v52 }
 0xe4d   :  { %3179 = vmatmul.msk.bf16.vlgmr.msrb.gmra.mxu0 %vm534_vm4, %v2388_v61 }
 0xe52   :  { %v3542_v10 = vpop.eup %3541 }
 0xe53   :  { %v2364_v20 = vmul.f32 %v3542_v10, %v3526_v7  ;;  %v2347_v2 = vpop.xlane.xlu0 %2346 }
 0xe55   :  { %v2409_v37 = vpack.c.bf16 %v2364_v20, %v2364_v20 }
 0xe57   :  { %3180 = vmatmul.msk.bf16.vlgmr.msra.gmra.mxu1 %vm534_vm4, %v2409_v37 }
 0xe5b   :  { %v2341_v26 = vpop.xlane.xlu0 %2340  ;;  %v2350_v27 = vpop.xlane.xlu1 %2349 }
 0xe5c   :  { %3543 = vrcp.f32 %v2341_v26 }
 0xe5d   :  { %3545 = vrcp.f32 %v2347_v2 }
 0xe5e   :  { %3547 = vrcp.f32 %v2350_v27 }
 0xe61   :  { %v2353_v44 = vpop.xlane.xlu2 %2352 }
 0xe62   :  { %v3544_v24 = vpop.eup %3543  ;;  %3549 = vrcp.f32 %v2353_v44 }
 0xe63   :  { %v2365_v3 = vmul.f32 %v3544_v24, %v3530_v59  ;;  %v3546_v23 = vpop.eup %3545  ;;  %v3395_v24 = vld [vmem:[%s4608_s2 + $0xa0] ss:$0 sm:$0xff] }
 0xe64   :  { %v2367_v21 = vmul.f32 %v3546_v23, %v4465_v18  ;;  %v3548_v53 = vpop.eup %3547 }
 0xe65   :  { %v2429_v28 = vpack.c.bf16 %v2365_v3, %v2365_v3  ;;  %v2368_v4 = vmul.f32 %v3548_v53, %v3532_v51 }
 0xe66   :  { %v2482_v39 = vpack.c.bf16 %v2367_v21, %v2367_v21 }
 0xe67   :  { %3181 = vmatmul.msk.bf16.vlgmr.msra.gmra.mxu3 %vm534_vm4, %v2429_v28  ;;  %v2503_v50 = vpack.c.bf16 %v2368_v4, %v2368_v4 }
 0xe68   :  { %v3550_v5 = vpop.eup %3549 }
 0xe69   :  { %v2525_v55 = vpop.permute.xlu2 %2524  ;;  %v2369_v33 = vmul.f32 %v3550_v5, %v3534_v12 }
 0xe6a   :  { %2537 = vmatpush.bf16.msrb.mxu3 %v2525_v55 }
 0xe6b   :  { %v2523_v63 = vpack.c.bf16 %v2369_v33, %v2369_v33 }
 0xe6e   :  { %v2485_v36 = vpop.permute.xlu0 %2484 }
 0xe6f   :  { %2497 = vmatpush.bf16.msra.mxu0 %v2485_v36 }
 0xe72   :  { %3183 = vmatmul.msk.bf16.vlgmr.msra.gmra.mxu0 %vm534_vm4, %v2482_v39 }
 0xe73   :  { %v2505_v35 = vpop.permute.xlu1 %2504 }
 0xe74   :  { %2517 = vmatpush.bf16.msrb.mxu1 %v2505_v35 }
 0xe77   :  { %3184 = vmatmul.msk.bf16.vlgmr.msrb.gmra.mxu1 %vm534_vm4, %v2503_v50  ;;  %3185 = vmatmul.msk.bf16.vlgmr.msrb.gmra.mxu3 %vm534_vm4, %v2523_v63 }
 0xe99   :  { %v2332_v34 = vpop.xlane.xlu0 %2331 }
 0xe9a   :  { %3551 = vrcp.f32 %v2332_v34 }
 0xea0   :  { %v3552_v43 = vpop.eup %3551 }
 0xea1   :  { %v2362_v60 = vmul.f32 %v3552_v43, %v3536_v13 }
 0xea2   :  { %v2344_v7 = vpop.xlane.xlu2 %2343 }
 0xea3   :  { %v2370_v14 = vpack.c.bf16 %v2362_v60, %v2362_v60  ;;  %3553 = vrcp.f32 %v2344_v7 }
 0xea5   :  { %3178 = vmatmul.msk.bf16.vlgmr.msrb.gmra.mxu2 %vm534_vm4, %v2370_v14 }
 0xea6   :  { %2586 = vmatpush.bf16.msrb.mxu2 %v3290_v41 }
 0xea9   :  { %v3554_v45 = vpop.eup %3553 }
 0xeaa   :  { %v2366_v1 = vmul.f32 %v3554_v45, %v3538_v9  ;;  %2587 = vmatpush.bf16.msrb.mxu2 %v3289_v19  ;;  %v3291_v45 = vld [vmem:[%s4606_s1 + $0x148] sm:$0xff] }
 0xeac   :  { %v2464_v46 = vpack.c.bf16 %v2366_v1, %v2366_v1 }
 0xeb5   :  { %3182 = vmatmul.msk.bf16.vlgmr.msra.gmra.mxu2 %vm534_vm4, %v2464_v46 }
 0xeca   :  { %v2405_v62 = vpop.f32.mrf.mxu0 }
 0xed2   :  { %v2407_v54 = vpop.f32.mrf.mxu0 }
 0xed4   :  { %v2425_v31 = vpop.f32.mrf.mxu1 }
 0xedc   :  { %v2427_v18 = vpop.f32.mrf.mxu1 }
 0xeea   :  { %v2445_v57 = vpop.f32.mrf.mxu3 }
 0xeef   :  { %v2499_v48 = vpop.f32.mrf.mxu0 }
 0xef0   :  { %v3366_v29 = vpack.i.bf16 %v2499_v48, %v2405_v62 }
 0xef2   :  { %v2447_v30 = vpop.f32.mrf.mxu3 }
 0xef4   :  { %v2519_v22 = vpop.f32.mrf.mxu1 }
 0xef5   :  { %v3361_v32 = vpack.i.bf16 %v2519_v22, %v2425_v31 }
 0xef7   :  { %v2501_v59 = vpop.f32.mrf.mxu0  ;;  %3362 = vrot.lane.b32.xlu1 %v3361_v32, %s3583_s4 }
 0xefa   :  { %v2539_v0 = vpop.f32.mrf.mxu3 }
 0xefb   :  { %v3371_v8 = vpack.i.bf16 %v2539_v0, %v2445_v57 }
 0xefc   :  { %v2521_v51 = vpop.f32.mrf.mxu1 }
 0xeff   :  { %3367 = vrot.lane.b32.xlu1 %v3366_v29, %s3581_s30 }
 0xf02   :  { %v2541_v6 = vpop.f32.mrf.mxu3 }
 0xf03   :  { %v3396_v6 = vld [vmem:[%s4608_s2 + $0xb8] ss:$0 sm:$0xff] }
 0xf07   :  { %3372 = vrot.lane.b32.xlu1 %v3371_v8, %s3582_s0 }
 0xf28   :  { %v2384_v12 = vpop.f32.mrf.mxu2 }
 0xf30   :  { %v2386_v49 = vpop.f32.mrf.mxu2 }
 0xf38   :  { %v2478_v11 = vpop.f32.mrf.mxu2 }
 0xf40   :  { %v2480_v56 = vpop.f32.mrf.mxu2 }
 0xf69   :  { %v3363_v38 = vpop.permute.xlu1 %3362 }
 0xf6a   :  { %v3365_v15 = vunpack.i.h.bf16 %v3363_v38  ;;  %v3364_v40 = vunpack.i.l.bf16 %v3363_v38 }
 0xf71   :  { %v3368_v13 = vpop.permute.xlu1 %3367 }
 0xf72   :  { %v3370_v16 = vunpack.i.h.bf16 %v3368_v13  ;;  %v3369_v9 = vunpack.i.l.bf16 %v3368_v13 }
 0xf74   :  { %v2555_v25 = vsel %vm329_vm3, %v2478_v11, %v3370_v16  ;;  %v2461_v17 = vsel %vm329_vm3, %v2384_v12, %v3369_v9  ;;  %v3397_v11 = vld [vmem:[%s4608_s2 + $0xc0] ss:$0 sm:$0xff]  ;;  %v3296_v9 = vld [vmem:[%s4606_s1 + $0x170] sm:$0xff] }
 0xf75   :  { %v2462_v20 = vsel %vm534_vm4, %v2461_v17, %v3364_v40  ;;  %v2556_v2 = vsel %vm534_vm4, %v2555_v25, %v3365_v15  ;;  %2728 = vmatpush.bf16.msra.mxu1 %v3296_v9  ;;  %v3295_v25 = vld [vmem:[%s4606_s1 + $0x168] sm:$0xff]  ;;  %v3294_v17 = vld [vmem:[%s4606_s1 + $0x160] sm:$0xff]  ;;  %v3293_v15 = vld [vmem:[%s4606_s1 + $0x158] sm:$0xff] }
 0xf76   :  { %v3402_v9 = vld [vmem:[%s4608_s2 + $0xe8] ss:$0 sm:$0xff] }
 0xf79   :  { %v3373_v61 = vpop.permute.xlu1 %3372  ;;  %2729 = vmatpush.bf16.msra.mxu1 %v3295_v25 }
 0xf7a   :  { %v3375_v52 = vunpack.i.h.bf16 %v3373_v61  ;;  %v3374_v10 = vunpack.i.l.bf16 %v3373_v61  ;;  %v3398_v61 = vld [vmem:[%s4608_s2 + $0xd8] ss:$0 sm:$0xff] }
 0xf7c   :  { %v2463_v37 = vsel %vm822_vm5, %v2462_v20, %v3374_v10  ;;  %v2557_v26 = vsel %vm822_vm5, %v2556_v2, %v3375_v52 }
 0xf7d   :  { %v2562_v44 = vpack.c.bf16 %v2557_v26, %v2463_v37  ;;  %2730 = vmatpush.bf16.msra.mxu1 %v3294_v17 }
 0xf7f   :  { %3194 = vmatmul.msk.bf16.vlgmr.msrb.gmra.mxu2 %vm254_vm2, %v2562_v44  ;;  %v3399_v44 = vld [vmem:[%s4608_s2 + $0xe0] ss:$0 sm:$0xff] }
 0xf81   :  { %2731 = vmatpush.bf16.msra.mxu1 %v3293_v15 }
0x1002   :  { %v2589_v3 = vpop.f32.mrf.mxu2 }
0x1003   :  { %v2590_v27 = vadd.f32 %v3395_v24, %v2589_v3 }
0x1005   :  { %v2594_v28 = vadd.f32 %v2590_v27, %v4383_v47 }
0x1007   :  { %v2596_v23 = vsel %vm254_vm2, %v2594_v28, 0.0 }
0x1008   :  { %2597 = vadd.xlane.f32.xlu1 %v2596_v23 }
0x100a   :  { %v2591_v55 = vpop.f32.mrf.mxu2 }
0x100b   :  { %v2592_v21 = vadd.f32 %v3395_v24, %v2591_v55 }
0x100d   :  { %v2595_v53 = vadd.f32 %v2592_v21, %v4385_v58  ;;  %v3292_v58 = vld [vmem:[%s4606_s1 + $0x150] sm:$0xff] }
0x100e   :  { %2676 = vmatpush.bf16.msrb.mxu0 %v3292_v58 }
0x100f   :  { %v2599_v5 = vsel %vm254_vm2, %v2595_v53, 0.0 }
0x1010   :  { %2600 = vadd.xlane.f32.xlu0 %v2599_v5 }
0x1012   :  { %2677 = vmatpush.bf16.msrb.mxu0 %v3291_v45 }
0x107b   :  { %v2598_v36 = vpop.xlane.xlu1 %2597 }
0x107c   :  { %v2602_v39 = vmul.f32 %v2598_v36, %v3993_v42 }
0x107e   :  { %v2604_v4 = vsub.f32 %v2594_v28, %v2602_v39 }
0x1080   :  { %v2606_v33 = vmul.f32 %v2604_v4, %v2604_v4 }
0x1082   :  { %v2608_v35 = vsel %vm254_vm2, %v2606_v33, 0.0 }
0x1083   :  { %v2601_v50 = vpop.xlane.xlu0 %2600  ;;  %2609 = vadd.xlane.f32.xlu2 %v2608_v35 }
0x1084   :  { %v2603_v47 = vmul.f32 %v2601_v50, %v3993_v42 }
0x1086   :  { %v2605_v63 = vsub.f32 %v2595_v53, %v2603_v47 }
0x1088   :  { %v2607_v34 = vmul.f32 %v2605_v63, %v2605_v63 }
0x108a   :  { %v2611_v43 = vsel %vm254_vm2, %v2607_v34, 0.0 }
0x108b   :  { %2612 = vadd.xlane.f32.xlu0 %v2611_v43  ;;  %v3298_v43 = vld [vmem:[%s4606_s1 + $0x180] sm:$0xff] }
0x108c   :  { %2820 = vmatpush.bf16.msra.mxu3 %v3298_v43 }
0x10f6   :  { %v2610_v60 = vpop.xlane.xlu2 %2609 }
0x10f7   :  { %v2614_v14 = vmul.f32 %v2610_v60, %v3993_v42 }
0x10f9   :  { %v2616_v7 = vadd.f32 1e-05, %v2614_v14 }
0x10fb   :  { %3555 = vrsqrt.f32 %v2616_v7  ;;  %vm2624_vm5 = vweird.f32 %v2616_v7 }
0x10fe   :  { %v2613_v1 = vpop.xlane.xlu0 %2612 }
0x10ff   :  { %v2615_v46 = vmul.f32 %v2613_v1, %v3993_v42 }
0x1101   :  { %v3556_v62 = vpop.eup %3555  ;;  %v2617_v54 = vadd.f32 1e-05, %v2615_v46 }
0x1102   :  { %v2619_v31 = vmul.f32 %v3556_v62, %v2616_v7  ;;  %vm2625_vm4 = vweird.f32 %v3556_v62  ;;  %v3297_v7 = vld [vmem:[%s4606_s1 + $0x178] sm:$0xff] }
0x1103   :  { %3557 = vrsqrt.f32 %v2617_v54  ;;  %vm2626_vm1 = vmor %vm2624_vm5, %vm2625_vm4  ;;  %vm2634_vm7 = vweird.f32 %v2617_v54  ;;  %2821 = vmatpush.bf16.msra.mxu3 %v3297_v7  ;;  %vm2950_vm4 = vcmask 31744  }
0x1104   :  { %v2620_v18 = vmul.f32 %v3556_v62, %v2619_v31 }
0x1106   :  { %v2621_v57 = vmul.f32 0.5, %v2620_v18 }
0x1108   :  { %v2622_v48 = vsub.f32 1.5, %v2621_v57 }
0x1109   :  { %v3558_v30 = vpop.eup %3557 }
0x110a   :  { %v2623_v22 = vmul.f32 %v3556_v62, %v2622_v48  ;;  %v2629_v32 = vmul.f32 %v3558_v30, %v2617_v54  ;;  %vm2635_vm6 = vweird.f32 %v3558_v30 }
0x110b   :  { %vm2636_vm8 = vmor %vm2634_vm7, %vm2635_vm6 }
0x110c   :  { %v2630_v59 = vmul.f32 %v3558_v30, %v2629_v32  ;;  %v2627_v0 = vsel %vm2626_vm1, %v3556_v62, %v2623_v22 }
0x110d   :  { %v2638_v8 = vmul.f32 %v2627_v0, %v2604_v4 }
0x110e   :  { %v2631_v51 = vmul.f32 0.5, %v2630_v59 }
0x110f   :  { %v2642_v56 = vmul.f32 %v3396_v6, %v2638_v8 }
0x1110   :  { %v2632_v29 = vsub.f32 1.5, %v2631_v51 }
0x1111   :  { %v2646_v38 = vadd.f32 %v3397_v11, %v2642_v56 }
0x1112   :  { %v2633_v12 = vmul.f32 %v3558_v30, %v2632_v29 }
0x1114   :  { %v2637_v49 = vsel %vm2636_vm8, %v3558_v30, %v2633_v12  ;;  %v3401_v12 = vld [vmem:[%s4608_s2 + $0xd0] ss:$0 sm:$0xff] }
0x1115   :  { %v2639_v41 = vmul.f32 %v2637_v49, %v2605_v63 }
0x1117   :  { %v2643_v19 = vmul.f32 %v3396_v6, %v2639_v41 }
0x1119   :  { %v2647_v13 = vadd.f32 %v3397_v11, %v2643_v19 }
0x111b   :  { %v2652_v16 = vpack.c.bf16 %v2647_v13, %v2646_v38 }
0x111d   :  { %3203 = vmatmul.msk.bf16.vlgmr.msrb.gmra.mxu0 %vm254_vm2, %v2652_v16  ;;  %v3299_v16 = vld [vmem:[%s4606_s1 + $0x188] sm:$0xff] }
0x119a   :  { %v2679_v40 = vpop.f32.mrf.mxu0 }
0x119b   :  { %v2680_v52 = vadd.f32 %v3398_v61, %v2679_v40 }
0x119d   :  { %v2684_v2 = vmax.f32 %v2680_v52, 0.0 }
0x11a2   :  { %v2681_v10 = vpop.f32.mrf.mxu0 }
0x11a3   :  { %v2682_v20 = vadd.f32 %v3398_v61, %v2681_v10 }
0x11a5   :  { %v2685_v37 = vmax.f32 %v2682_v20, 0.0  ;;  %v3302_v20 = vld [vmem:[%s4606_s1 + $0x1a0] sm:$0xff] }
0x11a6   :  { %2896 = vmatpush.bf16.msra.mxu0 %v3302_v20 }
0x11a7   :  { %v2694_v26 = vpack.c.bf16 %v2685_v37, %v2684_v2  ;;  %v3301_v2 = vld [vmem:[%s4606_s1 + $0x198] sm:$0xff] }
0x11a9   :  { %3220 = vmatmul.msk.bf16.vlgmr.msra.gmra.mxu1 %vm125_vm0, %v2694_v26  ;;  %v3403_v26 = vld [vmem:[%s4608_s2 + $0xf0] ss:$0 sm:$0xff] }
0x11aa   :  { %2897 = vmatpush.bf16.msra.mxu0 %v3301_v2 }
0x1226   :  { %v2733_v24 = vpop.f32.mrf.mxu1 }
0x1227   :  { %v2734_v3 = vadd.f32 %v3399_v44, %v2733_v24 }
0x1229   :  { %v2738_v27 = vadd.f32 %v2734_v3, %v2646_v38 }
0x122b   :  { %v2740_v28 = vsel %vm254_vm2, %v2738_v27, 0.0 }
0x122c   :  { %2741 = vadd.xlane.f32.xlu2 %v2740_v28 }
0x122e   :  { %v2735_v23 = vpop.f32.mrf.mxu1 }
0x122f   :  { %v2736_v55 = vadd.f32 %v3399_v44, %v2735_v23 }
0x1231   :  { %v2739_v21 = vadd.f32 %v2736_v55, %v2647_v13  ;;  %v3300_v13 = vld [vmem:[%s4606_s1 + $0x190] sm:$0xff]  ;;  %v3404_v55 = vld [vmem:[%s4608_s2 + $0xf8] ss:$0 sm:$0xff] }
0x1232   :  { %2858 = vmatpush.bf16.msra.mxu2 %v3300_v13 }
0x1233   :  { %v2743_v53 = vsel %vm254_vm2, %v2739_v21, 0.0 }
0x1234   :  { %2744 = vadd.xlane.f32.xlu0 %v2743_v53 }
0x1236   :  { %2859 = vmatpush.bf16.msra.mxu2 %v3299_v16 }
0x129f   :  { %v2742_v5 = vpop.xlane.xlu2 %2741 }
0x12a0   :  { %v2746_v36 = vmul.f32 %v2742_v5, %v3993_v42 }
0x12a2   :  { %v2748_v39 = vsub.f32 %v2738_v27, %v2746_v36 }
0x12a4   :  { %v2750_v4 = vmul.f32 %v2748_v39, %v2748_v39 }
0x12a6   :  { %v2752_v33 = vsel %vm254_vm2, %v2750_v4, 0.0 }
0x12a7   :  { %v2745_v35 = vpop.xlane.xlu0 %2744  ;;  %2753 = vadd.xlane.f32.xlu2 %v2752_v33 }
0x12a8   :  { %v2747_v50 = vmul.f32 %v2745_v35, %v3993_v42 }
0x12aa   :  { %v2749_v47 = vsub.f32 %v2739_v21, %v2747_v50 }
0x12ac   :  { %v2751_v63 = vmul.f32 %v2749_v47, %v2749_v47 }
0x12ae   :  { %v2755_v34 = vsel %vm254_vm2, %v2751_v63, 0.0 }
0x12af   :  { %2756 = vadd.xlane.f32.xlu0 %v2755_v34 }
0x131a   :  { %v2754_v58 = vpop.xlane.xlu2 %2753 }
0x131b   :  { %v2758_v60 = vmul.f32 %v2754_v58, %v3993_v42 }
0x131d   :  { %v2760_v14 = vadd.f32 1e-05, %v2758_v60 }
0x131f   :  { %3559 = vrsqrt.f32 %v2760_v14  ;;  %vm2768_vm9 = vweird.f32 %v2760_v14 }
0x1322   :  { %v2757_v45 = vpop.xlane.xlu0 %2756 }
0x1323   :  { %v2759_v1 = vmul.f32 %v2757_v45, %v3993_v42  ;;  %v3400_v42 = vld [vmem:[%s4608_s2 + $0xc8] ss:$0 sm:$0xff] }
0x1325   :  { %v3560_v46 = vpop.eup %3559  ;;  %v2761_v62 = vadd.f32 1e-05, %v2759_v1 }
0x1326   :  { %v2763_v54 = vmul.f32 %v3560_v46, %v2760_v14  ;;  %vm2769_vm0 = vweird.f32 %v3560_v46 }
0x1327   :  { %3561 = vrsqrt.f32 %v2761_v62  ;;  %vm2770_vm10 = vmor %vm2768_vm9, %vm2769_vm0  ;;  %vm2778_vm12 = vweird.f32 %v2761_v62 }
0x1328   :  { %v2764_v31 = vmul.f32 %v3560_v46, %v2763_v54 }
0x132a   :  { %v2765_v18 = vmul.f32 0.5, %v2764_v31 }
0x132c   :  { %v2766_v57 = vsub.f32 1.5, %v2765_v18 }
0x132d   :  { %v3562_v48 = vpop.eup %3561 }
0x132e   :  { %v2767_v30 = vmul.f32 %v3560_v46, %v2766_v57  ;;  %v2773_v22 = vmul.f32 %v3562_v48, %v2761_v62  ;;  %vm2779_vm11 = vweird.f32 %v3562_v48 }
0x132f   :  { %vm2780_vm13 = vmor %vm2778_vm12, %vm2779_vm11 }
0x1330   :  { %v2774_v32 = vmul.f32 %v3562_v48, %v2773_v22  ;;  %v2771_v59 = vsel %vm2770_vm10, %v3560_v46, %v2767_v30 }
0x1331   :  { %v2782_v29 = vmul.f32 %v2771_v59, %v2748_v39 }
0x1332   :  { %v2775_v0 = vmul.f32 0.5, %v2774_v32 }
0x1333   :  { %v2786_v49 = vmul.f32 %v3400_v42, %v2782_v29 }
0x1334   :  { %v2776_v51 = vsub.f32 1.5, %v2775_v0 }
0x1335   :  { %v2790_v41 = vadd.f32 %v3401_v12, %v2786_v49 }
0x1336   :  { %v2777_v6 = vmul.f32 %v3562_v48, %v2776_v51 }
0x1338   :  { %v2781_v8 = vsel %vm2780_vm13, %v3562_v48, %v2777_v6 }
0x1339   :  { %v2783_v11 = vmul.f32 %v2781_v8, %v2749_v47 }
0x133b   :  { %v2787_v56 = vmul.f32 %v3400_v42, %v2783_v11 }
0x133d   :  { %v2791_v19 = vadd.f32 %v3401_v12, %v2787_v56 }
0x133f   :  { %v2796_v38 = vpack.c.bf16 %v2791_v19, %v2790_v41 }
0x1341   :  { %3229 = vmatmul.msk.bf16.vlgmr.msra.gmra.mxu3 %vm254_vm2, %v2796_v38 }
0x13c4   :  { %v2823_v25 = vpop.f32.mrf.mxu3 }
0x13c5   :  { %v2824_v17 = vadd.f32 %v3402_v9, %v2823_v25 }
0x13c7   :  { %2944 = vrot.lane.b32.xlu2 %v2824_v17, %s3586_s29  ;;  %v2828_v61 = vmax.f32 %v2824_v17, 0.0 }
0x13cc   :  { %v2825_v15 = vpop.f32.mrf.mxu3 }
0x13cd   :  { %v2826_v40 = vadd.f32 %v3402_v9, %v2825_v15 }
0x13cf   :  { %v2829_v52 = vmax.f32 %v2826_v40, 0.0  ;;  %2946 = vrot.lane.b32.xlu1 %v2826_v40, %s3586_s29 }
0x13d1   :  { %v2834_v10 = vpack.c.bf16 %v2829_v52, %v2828_v61 }
0x13d3   :  { %3238 = vmatmul.msk.bf16.vlgmr.msra.gmra.mxu2 %vm254_vm2, %v2834_v10 }
0x1421   :  { %v2945_v54 = vpop.permute.xlu2 %2944 }
0x1441   :  { %v2947_v42 = vpop.permute.xlu1 %2946 }
0x1456   :  { %v2861_v37 = vpop.f32.mrf.mxu2 }
0x1457   :  { %v2862_v44 = vadd.f32 %v3403_v26, %v2861_v37 }
0x1459   :  { %v2866_v27 = vmax.f32 %v2862_v44, 0.0 }
0x145e   :  { %v2863_v24 = vpop.f32.mrf.mxu2 }
0x145f   :  { %v2864_v3 = vadd.f32 %v3403_v26, %v2863_v24 }
0x1461   :  { %v2867_v28 = vmax.f32 %v2864_v3, 0.0 }
0x1463   :  { %v2872_v23 = vpack.c.bf16 %v2867_v28, %v2866_v27 }
0x1465   :  { %3247 = vmatmul.msk.bf16.vlgmr.msra.gmra.mxu0 %vm254_vm2, %v2872_v23 }
0x14e2   :  { %v2899_v21 = vpop.f32.mrf.mxu0 }
0x14e3   :  { %v2900_v53 = vadd.f32 %v3404_v55, %v2899_v21 }
0x14e5   :  { %v3248_v5 = vmul.f32 -1.442695, %v2900_v53 }
0x14e7   :  { %3563 = vpow2.f32 %v3248_v5 }
0x14ea   :  { %v2901_v36 = vpop.f32.mrf.mxu0 }
0x14eb   :  { %v2902_v39 = vadd.f32 %v3404_v55, %v2901_v36 }
0x14ed   :  { %v3564_v4 = vpop.eup %3563  ;;  %v3249_v33 = vmul.f32 -1.442695, %v2902_v39 }
0x14ee   :  { %v2910_v35 = vadd.f32 1.0, %v3564_v4 }
0x14ef   :  { %3565 = vpow2.f32 %v3249_v33 }
0x14f0   :  { %3567 = vrcp.f32 %v2910_v35  ;;  %v2923_v58 = vand.u32 2147483648, %v2910_v35  ;;  %v2921_v14 = vand.u32 2147483647, %v2910_v35  ;;  %vm2917_vm14 = vweird.f32 %v2910_v35 }
0x14f2   :  { %v2924_v1 = vor.u32 1.1754944e-38, %v2923_v58  ;;  %vm2922_vm5 = vcmp.eq.f32.partialorder %v2921_v14, 8.507059e+37 }
0x14f5   :  { %v3566_v50 = vpop.eup %3565 }
0x14f6   :  { %v3568_v47 = vpop.eup %3567  ;;  %v2911_v63 = vadd.f32 1.0, %v3566_v50 }
0x14f7   :  { %v2913_v34 = vmul.f32 %v3568_v47, %v2910_v35  ;;  %vm2918_vm2 = vweird.f32 %v3568_v47 }
0x14f8   :  { %3569 = vrcp.f32 %v2911_v63  ;;  %vm2919_vm15 = vmor %vm2917_vm14, %vm2918_vm2  ;;  %v2938_v30 = vand.u32 2147483648, %v2911_v63  ;;  %v2936_v32 = vand.u32 2147483647, %v2911_v63  ;;  %vm2932_vm6 = vweird.f32 %v2911_v63 }
0x14f9   :  { %v2914_v43 = vsub.f32 1.0, %v2913_v34 }
0x14fa   :  { %v2939_v0 = vor.u32 1.1754944e-38, %v2938_v30  ;;  %vm2937_vm8 = vcmp.eq.f32.partialorder %v2936_v32, 8.507059e+37 }
0x14fb   :  { %v2915_v60 = vmul.f32 %v3568_v47, %v2914_v43 }
0x14fd   :  { %v2916_v7 = vadd.f32 %v3568_v47, %v2915_v60 }
0x14fe   :  { %v3570_v45 = vpop.eup %3569 }
0x14ff   :  { %v2920_v46 = vsel %vm2919_vm15, %v3568_v47, %v2916_v7  ;;  %v2928_v62 = vmul.f32 %v3570_v45, %v2911_v63  ;;  %vm2933_vm1 = vweird.f32 %v3570_v45 }
0x1500   :  { %v2925_v31 = vsel %vm2922_vm5, %v2924_v1, %v2920_v46  ;;  %vm2934_vm7 = vmor %vm2932_vm6, %vm2933_vm1 }
0x1501   :  { %v2951_v18 = vsel %vm2950_vm4, %v2925_v31, %v2945_v54  ;;  %v2929_v57 = vsub.f32 1.0, %v2928_v62 }
0x1502   :  { %v2953_v48 = vsel %vm329_vm3, %v2951_v18, 0.0 }
0x1503   :  { %2955 = vst [vmem:[%s4609_s3] sm:$0xff] %v2953_v48  ;;  %v2930_v22 = vmul.f32 %v3570_v45, %v2929_v57 }
0x1505   :  { %v2931_v59 = vadd.f32 %v3570_v45, %v2930_v22 }
0x1507   :  { %v2935_v51 = vsel %vm2934_vm7, %v3570_v45, %v2931_v59 }
0x1508   :  { %v2940_v29 = vsel %vm2937_vm8, %v2939_v0, %v2935_v51 }
0x1509   :  { %v2952_v6 = vsel %vm2950_vm4, %v2940_v29, %v2947_v42 }
0x150a   :  { %v2954_v8 = vsel %vm329_vm3, %v2952_v6, 0.0 }
0x150b   :  { %2956 = vst [vmem:[%s4609_s3 + $0x8] sm:$0xff] %v2954_v8 }

</bundles_post_ra>
